<compile_context>
chip_gen: v7x
topology: tpu7x:2x2x1
jax: 0.10.0
libtpu: 0.0.40
codegen_flags: <defaults>
</compile_context>

<pallas_src>
import math
from functools import partial
from types import SimpleNamespace

import jax
import jax.numpy as jnp
from jax.experimental import pallas as pl
from jax.experimental.pallas import tpu as pltpu

F32 = jnp.float32


# ----------------------------- in-kernel helpers -----------------------------

def _prelu(x, a):
    return jnp.where(x >= 0, x, a * x)


def _layernorm(x, gamma, beta, eps=1e-5):
    mu = jnp.mean(x, axis=-1, keepdims=True)
    var = jnp.mean((x - mu) ** 2, axis=-1, keepdims=True)
    return (x - mu) * jax.lax.rsqrt(var + eps) * gamma + beta


def _round_up(v, m):
    return ((v + m - 1) // m) * m


# -------------------------------- fused kernel --------------------------------

def _fused_kernel(x_ref, pkf_ref, relint_ref,
                  kp_w1, kp_b1, kp_w2, kp_b2,
                  rp_w1t, rp_b1t, rp_w2t, rp_b2t,
                  enc_w1, enc_b1, enc_w2, enc_b2,
                  a_wqkv, a_bqkv, a_wo, a_bo, a_g, a_b,
                  f_w1, f_b1, f_w2, f_b2, f_g, f_b,
                  fin_g, fin_b,
                  dec_w1, dec_b1, dec_w2, dec_b2,
                  alphas_ref,
                  o_ref, *, n_layers, n_heads, d_head, pre_ln, T, bblk):
    """Full forward for one block of `bblk` batch elements (grid axis g)."""
    a_kp = alphas_ref[0]
    a_rp = alphas_ref[1]
    a_e1 = alphas_ref[2]
    a_e2 = alphas_ref[3]
    a_dec = alphas_ref[4]

    # ---- keyframe positional encoding: (T, d_model) ----
    hk = jnp.dot(pkf_ref[...], kp_w1[...], preferred_element_type=F32) + kp_b1[...]
    kpos = jnp.dot(_prelu(hk, a_kp), kp_w2[...], preferred_element_type=F32) + kp_b2[...]

    # ---- relative-position table, computed transposed: E^T (d_head, R),
    #      column r = relative_pos_encoder(r - (T-1))  (exact lookup_table) ----
    gt = jnp.dot(rp_w1t[...], relint_ref[...], preferred_element_type=F32) + rp_b1t[...]
    e_t = jnp.dot(rp_w2t[...], _prelu(gt, a_rp), preferred_element_type=F32) + rp_b2t[...]

    # ---- encoder MLP (Linear-PReLU-Linear-PReLU) + keyframe positional add ----
    x = x_ref[...]                                            # (bblk*T, 128)
    h = _prelu(jnp.dot(x, enc_w1[...], preferred_element_type=F32) + enc_b1[...], a_e1)
    h = _prelu(jnp.dot(h, enc_w2[...], preferred_element_type=F32) + enc_b2[...], a_e2)
    d_model = h.shape[-1]
    if bblk == 1:
        h = h + kpos
    else:
        h = (h.reshape(bblk, T, d_model) + kpos[None]).reshape(bblk * T, d_model)

    hd = n_heads * d_head
    scale = 1.0 / math.sqrt(d_head)

    for l in range(n_layers):                                 # static unroll
        # -------------------- multi-head self-attention --------------------
        g_a = a_g[l]
        b_a = a_b[l]
        res = h
        xa = _layernorm(h, g_a, b_a) if pre_ln else h

        # fused QKV projection over all packed rows at once
        qkv = jnp.dot(xa, a_wqkv[l], preferred_element_type=F32) + a_bqkv[l]
        q = qkv[:, 0:hd] * scale            # fold 1/sqrt(d_head) into q
        k = qkv[:, hd:2 * hd]
        v = qkv[:, 2 * hd:3 * hd]

        ctx_rows = []
        for bb in range(bblk):              # static loop (attention is per batch elem)
            r0 = bb * T
            qb = q[r0:r0 + T]
            kb = k[r0:r0 + T]
            vb = v[r0:r0 + T]
            heads = []
            for hh in range(n_heads):       # static loop, tiny H
                sl = slice(hh * d_head, (hh + 1) * d_head)
                qh = qb[:, sl]
                kh = kb[:, sl]
                vh = vb[:, sl]
                s = jnp.dot(qh, kh.T, preferred_element_type=F32)        # (T, T)
                # relative bias on the MXU: (T,dh)@(dh,R) then skew
                r = jnp.dot(qh, e_t, preferred_element_type=F32)         # (T, R)
                bias = jnp.concatenate(
                    [r[i:i + 1, T - 1 - i:2 * T - 1 - i] for i in range(T)], axis=0)
                s = s + bias
                s = s - jnp.max(s, axis=-1, keepdims=True)
                p = jnp.exp(s)
                p = p * pl.reciprocal(jnp.sum(p, axis=-1, keepdims=True), approx=True)
                heads.append(jnp.dot(p, vh, preferred_element_type=F32))  # (T, dh)
            ctx_rows.append(jnp.concatenate(heads, axis=1))               # (T, hd)
        ctx = ctx_rows[0] if bblk == 1 else jnp.concatenate(ctx_rows, axis=0)

        # single output projection for all heads / all packed rows
        out = jnp.dot(ctx, a_wo[l], preferred_element_type=F32) + a_bo[l] + res
        h = out if pre_ln else _layernorm(out, g_a, b_a)

        # ------------------------------ PFFN ------------------------------
        g_f = f_g[l]
        b_f = f_b[l]
        res = h
        xf = _layernorm(h, g_f, b_f) if pre_ln else h
        u = jax.nn.relu(jnp.dot(xf, f_w1[l], preferred_element_type=F32) + f_b1[l])
        out = jnp.dot(u, f_w2[l], preferred_element_type=F32) + f_b2[l] + res
        h = out if pre_ln else _layernorm(out, g_f, b_f)

    # ---- final LayerNorm (pre-LN mode only) + decoder MLP ----
    if pre_ln:
        h = _layernorm(h, fin_g[...], fin_b[...])
    d1 = _prelu(jnp.dot(h, dec_w1[...], preferred_element_type=F32) + dec_b1[...], a_dec)
    o_ref[...] = jnp.dot(d1, dec_w2[...], preferred_element_type=F32) + dec_b2[...]


# ------------------------------ parameters & forward --------------------------

def init_params(key, d_motion, cfg):
    """Packed / padded / per-layer-stacked parameter pytree."""
    d_model, n_heads, d_ff, n_layers = cfg.d_model, cfg.n_heads, cfg.d_ff, cfg.n_layers
    d_head = d_model // n_heads
    hd = n_heads * d_head
    din = d_motion + 1
    din_p = 128                               # lane-dense encoder input contraction
    dout = d_motion - 3
    dout_p = _round_up(dout, 128)             # lane-dense decoder output
    keys = iter(jax.random.split(key, 256))

    def w(di, do):
        return 0.05 * jax.random.normal(next(keys), (di, do), F32)

    def b(do):
        return 0.01 * jax.random.normal(next(keys), (1, do), F32)

    def pad_rows(m, rows):
        return jnp.pad(m, ((0, rows - m.shape[0]), (0, 0)))

    def pad_cols(m, cols):
        return jnp.pad(m, ((0, 0), (0, cols - m.shape[1])))

    p = {}
    # encoder: Linear(d_motion+1, d_model) PReLU Linear(d_model, d_model) PReLU
    p["enc_w1"] = pad_rows(w(din, d_model), din_p)
    p["enc_b1"] = b(d_model)
    p["enc_w2"] = w(d_model, d_model)
    p["enc_b2"] = b(d_model)
    # keyframe_pos_encoder: Linear(2, d_model) PReLU Linear(d_model, d_model)
    p["kpos_w1"] = pad_rows(w(2, d_model), 8)
    p["kpos_b1"] = b(d_model)
    p["kpos_w2"] = w(d_model, d_model)
    p["kpos_b2"] = b(d_model)
    # relative_pos_encoder: Linear(1, d_model) PReLU Linear(d_model, d_head),
    # stored transposed so the kernel produces E^T (d_head, R) directly (no
    # in-kernel transpose before the q @ E^T matmul).
    rw1 = pad_rows(w(1, d_model), 8)
    p["rel_w1t"] = rw1.T                                      # (d_model, 8)
    p["rel_b1t"] = b(d_model).T                               # (d_model, 1)
    p["rel_w2t"] = w(d_model, d_head).T                       # (d_head, d_model)
    p["rel_b2t"] = b(d_head).T                                # (d_head, 1)
    # final LayerNorm
    p["fin_g"] = jnp.ones((1, d_model), F32)
    p["fin_b"] = jnp.zeros((1, d_model), F32)

    # per-layer attention + PFFN weights, stacked along a leading L axis
    wqkv, bqkv, wol, bol = [], [], [], []
    fw1, fb1, fw2, fb2 = [], [], [], []
    for _ in range(n_layers):
        wqkv.append(jnp.concatenate([w(d_model, hd), w(d_model, hd), w(d_model, hd)], axis=1))
        bqkv.append(jnp.concatenate([b(hd), b(hd), b(hd)], axis=1))
        wol.append(w(hd, d_model))
        bol.append(b(d_model))
        fw1.append(w(d_model, d_ff))
        fb1.append(b(d_ff))
        fw2.append(w(d_ff, d_model))
        fb2.append(b(d_model))
    p["attn_wqkv"] = jnp.stack(wqkv)                          # (L, d_model, 3*hd)
    p["attn_bqkv"] = jnp.stack(bqkv)                          # (L, 1, 3*hd)
    p["attn_wo"] = jnp.stack(wol)                             # (L, hd, d_model)
    p["attn_bo"] = jnp.stack(bol)                             # (L, 1, d_model)
    p["attn_g"] = jnp.ones((n_layers, 1, d_model), F32)
    p["attn_b"] = jnp.zeros((n_layers, 1, d_model), F32)
    p["ffn_w1"] = jnp.stack(fw1)                              # (L, d_model, d_ff)
    p["ffn_b1"] = jnp.stack(fb1)
    p["ffn_w2"] = jnp.stack(fw2)                              # (L, d_ff, d_model)
    p["ffn_b2"] = jnp.stack(fb2)
    p["ffn_g"] = jnp.ones((n_layers, 1, d_model), F32)
    p["ffn_b"] = jnp.zeros((n_layers, 1, d_model), F32)

    # decoder: Linear(d_model, d_model) PReLU Linear(d_model, d_motion-3)
    p["dec_w1"] = w(d_model, d_model)
    p["dec_b1"] = b(d_model)
    p["dec_w2"] = pad_cols(w(d_model, dout), dout_p)
    p["dec_b2"] = pad_cols(b(dout), dout_p)

    # PReLU scalars (nn.PReLU() default init 0.25): [kpos, rel, enc1, enc2, dec]
    p["alphas"] = jnp.full((5,), 0.25, F32)
    return p


def _pick_bblk(B):
    # Default: keep >= 2 "parallel" grid steps (v7x has 2 TensorCores) while
    # packing as many batch rows per step as that allows.  On single-TC
    # v5e/v6e pass batch_block=B to amortize per-step overhead maximally.
    for bb in range(max(B // 2, 1), 0, -1):
        if B % bb == 0:
            return bb
    return 1


def keyframe_transformer_forward(x, params, d_motion, cfg, batch_block=None):
    B, T, D = x.shape
    d_model = cfg.d_model
    n_heads = cfg.n_heads
    d_head = d_model // n_heads
    pre_ln = cfg.pre_layernorm
    ctx = cfg.context_frames
    dout = d_motion - 3
    L = cfg.n_layers
    d_ff = cfg.d_ff
    hd = n_heads * d_head
    din_p = params["enc_w1"].shape[0]        # 128
    dout_p = params["dec_w2"].shape[1]       # 128

    # get_mask: ones, zeroed for frames [context_frames, T-1)
    t = jnp.arange(T)
    maskvec = jnp.where((t >= ctx) & (t < T - 1), 0.0, 1.0).astype(x.dtype)
    batch_mask = jnp.broadcast_to(maskvec[None, :, None], (B, T, 1))
    motion, traj = x[..., :D - 3], x[..., D - 3:]
    enc_in = jnp.concatenate([motion * batch_mask, traj, batch_mask], axis=-1)   # (B,T,D+1)
    enc_in = jnp.pad(enc_in, ((0, 0), (0, 0), (0, din_p - (D + 1))))
    enc_in = enc_in.reshape(B * T, din_p)                                        # row-packed

    # keyframe positional-encoder input (T, 2) -> pad contraction dim to 8
    pos = jnp.arange(T, dtype=F32)
    pkf = jnp.stack([pos - (ctx - 1), pos - (T - 1)], axis=-1)
    pkf = jnp.pad(pkf, ((0, 0), (0, 8 - 2)))

    # relative offsets lookup-table input, transposed: (8, R); row 0 holds
    # arange(-T+1, T) (the reference lookup_table), remaining rows/cols are zero
    # padding matched by zero rows of rel_w1t.
    R = _round_up(2 * T - 1, 8)
    offsets = jnp.arange(-T + 1, T, dtype=F32)
    relint = jnp.zeros((8, R), F32).at[0, :2 * T - 1].set(offsets)

    bblk = batch_block if batch_block is not None else _pick_bblk(B)
    assert B % bblk == 0
    G = B // bblk
    assert (bblk * T) % 8 == 0 or G == 1

    def c(shape):
        nd = len(shape)
        return pl.BlockSpec(tuple(shape), lambda g, _nd=nd: (0,) * _nd)

    smem = pl.BlockSpec(memory_space=pltpu.MemorySpace.SMEM)

    kernel = partial(_fused_kernel, n_layers=L, n_heads=n_heads, d_head=d_head,
                     pre_ln=pre_ln, T=T, bblk=bblk)

    out_flat = pl.pallas_call(
        kernel,
        out_shape=jax.ShapeDtypeStruct((B * T, dout_p), F32),
        grid=(G,),
        in_specs=[pl.BlockSpec((bblk * T, din_p), lambda g: (g, 0)),
                  c((T, 8)), c((8, R)),
                  c((8, d_model)), c((1, d_model)), c((d_model, d_model)), c((1, d_model)),
                  c((d_model, 8)), c((d_model, 1)), c((d_head, d_model)), c((d_head, 1)),
                  c((din_p, d_model)), c((1, d_model)), c((d_model, d_model)), c((1, d_model)),
                  c((L, d_model, 3 * hd)), c((L, 1, 3 * hd)),
                  c((L, hd, d_model)), c((L, 1, d_model)),
                  c((L, 1, d_model)), c((L, 1, d_model)),
                  c((L, d_model, d_ff)), c((L, 1, d_ff)),
                  c((L, d_ff, d_model)), c((L, 1, d_model)),
                  c((L, 1, d_model)), c((L, 1, d_model)),
                  c((1, d_model)), c((1, d_model)),
                  c((d_model, d_model)), c((1, d_model)),
                  c((d_model, dout_p)), c((1, dout_p)),
                  smem],
        out_specs=pl.BlockSpec((bblk * T, dout_p), lambda g: (g, 0)),
        compiler_params=pltpu.CompilerParams(dimension_semantics=("parallel",)),
    )(enc_in, pkf, relint,
      params["kpos_w1"], params["kpos_b1"], params["kpos_w2"], params["kpos_b2"],
      params["rel_w1t"], params["rel_b1t"], params["rel_w2t"], params["rel_b2t"],
      params["enc_w1"], params["enc_b1"], params["enc_w2"], params["enc_b2"],
      params["attn_wqkv"], params["attn_bqkv"], params["attn_wo"], params["attn_bo"],
      params["attn_g"], params["attn_b"],
      params["ffn_w1"], params["ffn_b1"], params["ffn_w2"], params["ffn_b2"],
      params["ffn_g"], params["ffn_b"],
      params["fin_g"], params["fin_b"],
      params["dec_w1"], params["dec_b1"], params["dec_w2"], params["dec_b2"],
      params["alphas"])

    return out_flat.reshape(B, T, dout_p)[:, :, :dout]


# ----------------------------------- main --------------------------------------

if __name__ == "__main__":
    cfg = SimpleNamespace(d_model=32, n_layers=2, n_heads=4, d_ff=64,
                          pre_layernorm=True, dropout=0.0, context_frames=4)
    d_motion = 16
    B, T = 2, 8

    key = jax.random.PRNGKey(0)
    kx, kp = jax.random.split(key)
    x = jax.random.normal(kx, (B, T, d_motion), dtype=F32)
    params = init_params(kp, d_motion, cfg)

    fwd = jax.jit(lambda xx, pp: keyframe_transformer_forward(xx, pp, d_motion, cfg))
    out = fwd(x, params)
    out = jax.block_until_ready(out)

    assert out.shape == (B, T, d_motion - 3), out.shape
    assert bool(jnp.all(jnp.isfinite(out)))
    print("KERNEL_OK")
</pallas_src>

<mosaic_0001>
module attributes {stable_mosaic.version = 11 : i64} {
  func.func @_fused_kernel(%arg0: i32, %arg1: memref<8x128xf32, #tpu.memory_space<vmem>>, %arg2: memref<8x8xf32, #tpu.memory_space<vmem>>, %arg3: memref<8x16xf32, #tpu.memory_space<vmem>>, %arg4: memref<8x32xf32, #tpu.memory_space<vmem>>, %arg5: memref<1x32xf32, #tpu.memory_space<vmem>>, %arg6: memref<32x32xf32, #tpu.memory_space<vmem>>, %arg7: memref<1x32xf32, #tpu.memory_space<vmem>>, %arg8: memref<32x8xf32, #tpu.memory_space<vmem>>, %arg9: memref<32x1xf32, #tpu.memory_space<vmem>>, %arg10: memref<8x32xf32, #tpu.memory_space<vmem>>, %arg11: memref<8x1xf32, #tpu.memory_space<vmem>>, %arg12: memref<128x32xf32, #tpu.memory_space<vmem>>, %arg13: memref<1x32xf32, #tpu.memory_space<vmem>>, %arg14: memref<32x32xf32, #tpu.memory_space<vmem>>, %arg15: memref<1x32xf32, #tpu.memory_space<vmem>>, %arg16: memref<2x32x96xf32, #tpu.memory_space<vmem>>, %arg17: memref<2x1x96xf32, #tpu.memory_space<vmem>>, %arg18: memref<2x32x32xf32, #tpu.memory_space<vmem>>, %arg19: memref<2x1x32xf32, #tpu.memory_space<vmem>>, %arg20: memref<2x1x32xf32, #tpu.memory_space<vmem>>, %arg21: memref<2x1x32xf32, #tpu.memory_space<vmem>>, %arg22: memref<2x32x64xf32, #tpu.memory_space<vmem>>, %arg23: memref<2x1x64xf32, #tpu.memory_space<vmem>>, %arg24: memref<2x64x32xf32, #tpu.memory_space<vmem>>, %arg25: memref<2x1x32xf32, #tpu.memory_space<vmem>>, %arg26: memref<2x1x32xf32, #tpu.memory_space<vmem>>, %arg27: memref<2x1x32xf32, #tpu.memory_space<vmem>>, %arg28: memref<1x32xf32, #tpu.memory_space<vmem>>, %arg29: memref<1x32xf32, #tpu.memory_space<vmem>>, %arg30: memref<32x32xf32, #tpu.memory_space<vmem>>, %arg31: memref<1x32xf32, #tpu.memory_space<vmem>>, %arg32: memref<32x128xf32, #tpu.memory_space<vmem>>, %arg33: memref<1x128xf32, #tpu.memory_space<vmem>>, %arg34: memref<5xf32, #tpu.memory_space<smem>>, %arg35: memref<8x128xf32, #tpu.memory_space<vmem>>) attributes {dimension_semantics = [#tpu.dimension_semantics<parallel>], iteration_bounds = array<i64: 2>, scalar_prefetch = 0 : i64, scratch_operands = 0 : i64, tpu.core_type = #tpu.core_type<tc>, window_params = [{transform_indices = @transform_0, window_bounds = array<i64: 8, 128>}, {pipeline_mode = #tpu.pipeline_mode<synchronous>, transform_indices = @transform_1, window_bounds = array<i64: 8, 8>}, {pipeline_mode = #tpu.pipeline_mode<synchronous>, transform_indices = @transform_2, window_bounds = array<i64: 8, 16>}, {pipeline_mode = #tpu.pipeline_mode<synchronous>, transform_indices = @transform_3, window_bounds = array<i64: 8, 32>}, {pipeline_mode = #tpu.pipeline_mode<synchronous>, transform_indices = @transform_4, window_bounds = array<i64: 1, 32>}, {pipeline_mode = #tpu.pipeline_mode<synchronous>, transform_indices = @transform_5, window_bounds = array<i64: 32, 32>}, {pipeline_mode = #tpu.pipeline_mode<synchronous>, transform_indices = @transform_6, window_bounds = array<i64: 1, 32>}, {pipeline_mode = #tpu.pipeline_mode<synchronous>, transform_indices = @transform_7, window_bounds = array<i64: 32, 8>}, {pipeline_mode = #tpu.pipeline_mode<synchronous>, transform_indices = @transform_8, window_bounds = array<i64: 32, 1>}, {pipeline_mode = #tpu.pipeline_mode<synchronous>, transform_indices = @transform_9, window_bounds = array<i64: 8, 32>}, {pipeline_mode = #tpu.pipeline_mode<synchronous>, transform_indices = @transform_10, window_bounds = array<i64: 8, 1>}, {pipeline_mode = #tpu.pipeline_mode<synchronous>, transform_indices = @transform_11, window_bounds = array<i64: 128, 32>}, {pipeline_mode = #tpu.pipeline_mode<synchronous>, transform_indices = @transform_12, window_bounds = array<i64: 1, 32>}, {pipeline_mode = #tpu.pipeline_mode<synchronous>, transform_indices = @transform_13, window_bounds = array<i64: 32, 32>}, {pipeline_mode = #tpu.pipeline_mode<synchronous>, transform_indices = @transform_14, window_bounds = array<i64: 1, 32>}, {pipeline_mode = #tpu.pipeline_mode<synchronous>, transform_indices = @transform_15, window_bounds = array<i64: 2, 32, 96>}, {pipeline_mode = #tpu.pipeline_mode<synchronous>, transform_indices = @transform_16, window_bounds = array<i64: 2, 1, 96>}, {pipeline_mode = #tpu.pipeline_mode<synchronous>, transform_indices = @transform_17, window_bounds = array<i64: 2, 32, 32>}, {pipeline_mode = #tpu.pipeline_mode<synchronous>, transform_indices = @transform_18, window_bounds = array<i64: 2, 1, 32>}, {pipeline_mode = #tpu.pipeline_mode<synchronous>, transform_indices = @transform_19, window_bounds = array<i64: 2, 1, 32>}, {pipeline_mode = #tpu.pipeline_mode<synchronous>, transform_indices = @transform_20, window_bounds = array<i64: 2, 1, 32>}, {pipeline_mode = #tpu.pipeline_mode<synchronous>, transform_indices = @transform_21, window_bounds = array<i64: 2, 32, 64>}, {pipeline_mode = #tpu.pipeline_mode<synchronous>, transform_indices = @transform_22, window_bounds = array<i64: 2, 1, 64>}, {pipeline_mode = #tpu.pipeline_mode<synchronous>, transform_indices = @transform_23, window_bounds = array<i64: 2, 64, 32>}, {pipeline_mode = #tpu.pipeline_mode<synchronous>, transform_indices = @transform_24, window_bounds = array<i64: 2, 1, 32>}, {pipeline_mode = #tpu.pipeline_mode<synchronous>, transform_indices = @transform_25, window_bounds = array<i64: 2, 1, 32>}, {pipeline_mode = #tpu.pipeline_mode<synchronous>, transform_indices = @transform_26, window_bounds = array<i64: 2, 1, 32>}, {pipeline_mode = #tpu.pipeline_mode<synchronous>, transform_indices = @transform_27, window_bounds = array<i64: 1, 32>}, {pipeline_mode = #tpu.pipeline_mode<synchronous>, transform_indices = @transform_28, window_bounds = array<i64: 1, 32>}, {pipeline_mode = #tpu.pipeline_mode<synchronous>, transform_indices = @transform_29, window_bounds = array<i64: 32, 32>}, {pipeline_mode = #tpu.pipeline_mode<synchronous>, transform_indices = @transform_30, window_bounds = array<i64: 1, 32>}, {pipeline_mode = #tpu.pipeline_mode<synchronous>, transform_indices = @transform_31, window_bounds = array<i64: 32, 128>}, {pipeline_mode = #tpu.pipeline_mode<synchronous>, transform_indices = @transform_32, window_bounds = array<i64: 1, 128>}, {transform_indices = @transform_33, window_bounds = array<i64: 5>}, {transform_indices = @transform_34, window_bounds = array<i64: 8, 128>}]} {
    %c0 = arith.constant 0 : index
    %0 = memref.load %arg34[%c0] : memref<5xf32, #tpu.memory_space<smem>>
    %c1 = arith.constant 1 : index
    %1 = memref.load %arg34[%c1] : memref<5xf32, #tpu.memory_space<smem>>
    %c2 = arith.constant 2 : index
    %2 = memref.load %arg34[%c2] : memref<5xf32, #tpu.memory_space<smem>>
    %c3 = arith.constant 3 : index
    %3 = memref.load %arg34[%c3] : memref<5xf32, #tpu.memory_space<smem>>
    %c4 = arith.constant 4 : index
    %4 = memref.load %arg34[%c4] : memref<5xf32, #tpu.memory_space<smem>>
    %c0_0 = arith.constant 0 : index
    %c0_1 = arith.constant 0 : index
    %5 = vector.load %arg2[%c0_0, %c0_1] : memref<8x8xf32, #tpu.memory_space<vmem>>, vector<8x8xf32>
    %c0_2 = arith.constant 0 : index
    %c0_3 = arith.constant 0 : index
    %6 = vector.load %arg4[%c0_2, %c0_3] : memref<8x32xf32, #tpu.memory_space<vmem>>, vector<8x32xf32>
    %cst = arith.constant dense<0.000000e+00> : vector<8x32xf32>
    %7 = tpu.matmul %5, %6, %cst {dimension_numbers = #tpu.dot_dimension_numbers<[1], [0], [0], [1], [0, 0, 1, 1], [], []>} : vector<8x8xf32>, vector<8x32xf32>, vector<8x32xf32> -> vector<8x32xf32>
    %c0_4 = arith.constant 0 : index
    %c0_5 = arith.constant 0 : index
    %8 = vector.load %arg5[%c0_4, %c0_5] : memref<1x32xf32, #tpu.memory_space<vmem>>, vector<1x32xf32>
    %9 = vector.broadcast %8 : vector<1x32xf32> to vector<8x32xf32>
    %10 = arith.addf %7, %9 : vector<8x32xf32>
    %cst_6 = arith.constant 0.000000e+00 : f32
    %11 = vector.broadcast %cst_6 : f32 to vector<8x32xf32>
    %12 = arith.cmpf oge, %10, %11 : vector<8x32xf32>
    %13 = vector.broadcast %0 : f32 to vector<8x32xf32>
    %14 = arith.mulf %13, %10 : vector<8x32xf32>
    %15 = arith.select %12, %10, %14 : vector<8x32xi1>, vector<8x32xf32>
    %c0_7 = arith.constant 0 : index
    %c0_8 = arith.constant 0 : index
    %16 = vector.load %arg6[%c0_7, %c0_8] : memref<32x32xf32, #tpu.memory_space<vmem>>, vector<32x32xf32>
    %cst_9 = arith.constant dense<0.000000e+00> : vector<8x32xf32>
    %17 = tpu.matmul %15, %16, %cst_9 {dimension_numbers = #tpu.dot_dimension_numbers<[1], [0], [0], [1], [0, 0, 1, 1], [], []>} : vector<8x32xf32>, vector<32x32xf32>, vector<8x32xf32> -> vector<8x32xf32>
    %c0_10 = arith.constant 0 : index
    %c0_11 = arith.constant 0 : index
    %18 = vector.load %arg7[%c0_10, %c0_11] : memref<1x32xf32, #tpu.memory_space<vmem>>, vector<1x32xf32>
    %19 = vector.broadcast %18 : vector<1x32xf32> to vector<8x32xf32>
    %20 = arith.addf %17, %19 : vector<8x32xf32>
    %c0_12 = arith.constant 0 : index
    %c0_13 = arith.constant 0 : index
    %21 = vector.load %arg8[%c0_12, %c0_13] : memref<32x8xf32, #tpu.memory_space<vmem>>, vector<32x8xf32>
    %c0_14 = arith.constant 0 : index
    %c0_15 = arith.constant 0 : index
    %22 = vector.load %arg3[%c0_14, %c0_15] : memref<8x16xf32, #tpu.memory_space<vmem>>, vector<8x16xf32>
    %cst_16 = arith.constant dense<0.000000e+00> : vector<32x16xf32>
    %23 = tpu.matmul %21, %22, %cst_16 {dimension_numbers = #tpu.dot_dimension_numbers<[1], [0], [0], [1], [0, 0, 1, 1], [], []>} : vector<32x8xf32>, vector<8x16xf32>, vector<32x16xf32> -> vector<32x16xf32>
    %c0_17 = arith.constant 0 : index
    %c0_18 = arith.constant 0 : index
    %24 = vector.load %arg9[%c0_17, %c0_18] : memref<32x1xf32, #tpu.memory_space<vmem>>, vector<32x1xf32>
    %25 = vector.broadcast %24 : vector<32x1xf32> to vector<32x16xf32>
    %26 = arith.addf %23, %25 : vector<32x16xf32>
    %c0_19 = arith.constant 0 : index
    %c0_20 = arith.constant 0 : index
    %27 = vector.load %arg10[%c0_19, %c0_20] : memref<8x32xf32, #tpu.memory_space<vmem>>, vector<8x32xf32>
    %cst_21 = arith.constant 0.000000e+00 : f32
    %28 = vector.broadcast %cst_21 : f32 to vector<32x16xf32>
    %29 = arith.cmpf oge, %26, %28 : vector<32x16xf32>
    %30 = vector.broadcast %1 : f32 to vector<32x16xf32>
    %31 = arith.mulf %30, %26 : vector<32x16xf32>
    %32 = arith.select %29, %26, %31 : vector<32x16xi1>, vector<32x16xf32>
    %cst_22 = arith.constant dense<0.000000e+00> : vector<8x16xf32>
    %33 = tpu.matmul %27, %32, %cst_22 {dimension_numbers = #tpu.dot_dimension_numbers<[1], [0], [0], [1], [0, 0, 1, 1], [], []>} : vector<8x32xf32>, vector<32x16xf32>, vector<8x16xf32> -> vector<8x16xf32>
    %c0_23 = arith.constant 0 : index
    %c0_24 = arith.constant 0 : index
    %34 = vector.load %arg11[%c0_23, %c0_24] : memref<8x1xf32, #tpu.memory_space<vmem>>, vector<8x1xf32>
    %35 = vector.broadcast %34 : vector<8x1xf32> to vector<8x16xf32>
    %36 = arith.addf %33, %35 : vector<8x16xf32>
    %c0_25 = arith.constant 0 : index
    %c0_26 = arith.constant 0 : index
    %37 = vector.load %arg1[%c0_25, %c0_26] : memref<8x128xf32, #tpu.memory_space<vmem>>, vector<8x128xf32>
    %c0_27 = arith.constant 0 : index
    %c0_28 = arith.constant 0 : index
    %38 = vector.load %arg12[%c0_27, %c0_28] : memref<128x32xf32, #tpu.memory_space<vmem>>, vector<128x32xf32>
    %cst_29 = arith.constant dense<0.000000e+00> : vector<8x32xf32>
    %39 = tpu.matmul %37, %38, %cst_29 {dimension_numbers = #tpu.dot_dimension_numbers<[1], [0], [0], [1], [0, 0, 1, 1], [], []>} : vector<8x128xf32>, vector<128x32xf32>, vector<8x32xf32> -> vector<8x32xf32>
    %c0_30 = arith.constant 0 : index
    %c0_31 = arith.constant 0 : index
    %40 = vector.load %arg13[%c0_30, %c0_31] : memref<1x32xf32, #tpu.memory_space<vmem>>, vector<1x32xf32>
    %41 = vector.broadcast %40 : vector<1x32xf32> to vector<8x32xf32>
    %42 = arith.addf %39, %41 : vector<8x32xf32>
    %cst_32 = arith.constant 0.000000e+00 : f32
    %43 = vector.broadcast %cst_32 : f32 to vector<8x32xf32>
    %44 = arith.cmpf oge, %42, %43 : vector<8x32xf32>
    %45 = vector.broadcast %2 : f32 to vector<8x32xf32>
    %46 = arith.mulf %45, %42 : vector<8x32xf32>
    %47 = arith.select %44, %42, %46 : vector<8x32xi1>, vector<8x32xf32>
    %c0_33 = arith.constant 0 : index
    %c0_34 = arith.constant 0 : index
    %48 = vector.load %arg14[%c0_33, %c0_34] : memref<32x32xf32, #tpu.memory_space<vmem>>, vector<32x32xf32>
    %cst_35 = arith.constant dense<0.000000e+00> : vector<8x32xf32>
    %49 = tpu.matmul %47, %48, %cst_35 {dimension_numbers = #tpu.dot_dimension_numbers<[1], [0], [0], [1], [0, 0, 1, 1], [], []>} : vector<8x32xf32>, vector<32x32xf32>, vector<8x32xf32> -> vector<8x32xf32>
    %c0_36 = arith.constant 0 : index
    %c0_37 = arith.constant 0 : index
    %50 = vector.load %arg15[%c0_36, %c0_37] : memref<1x32xf32, #tpu.memory_space<vmem>>, vector<1x32xf32>
    %51 = vector.broadcast %50 : vector<1x32xf32> to vector<8x32xf32>
    %52 = arith.addf %49, %51 : vector<8x32xf32>
    %cst_38 = arith.constant 0.000000e+00 : f32
    %53 = vector.broadcast %cst_38 : f32 to vector<8x32xf32>
    %54 = arith.cmpf oge, %52, %53 : vector<8x32xf32>
    %55 = vector.broadcast %3 : f32 to vector<8x32xf32>
    %56 = arith.mulf %55, %52 : vector<8x32xf32>
    %57 = arith.select %54, %52, %56 : vector<8x32xi1>, vector<8x32xf32>
    %58 = arith.addf %57, %20 : vector<8x32xf32>
    %c0_39 = arith.constant 0 : index
    %c0_40 = arith.constant 0 : index
    %c0_41 = arith.constant 0 : index
    %59 = vector.load %arg20[%c0_39, %c0_40, %c0_41] : memref<2x1x32xf32, #tpu.memory_space<vmem>>, vector<1x1x32xf32>
    %60 = vector.shape_cast %59 : vector<1x1x32xf32> to vector<1x32xf32>
    %c0_42 = arith.constant 0 : index
    %c0_43 = arith.constant 0 : index
    %c0_44 = arith.constant 0 : index
    %61 = vector.load %arg21[%c0_42, %c0_43, %c0_44] : memref<2x1x32xf32, #tpu.memory_space<vmem>>, vector<1x1x32xf32>
    %62 = vector.shape_cast %61 : vector<1x1x32xf32> to vector<1x32xf32>
    %cst_45 = arith.constant dense<0.000000e+00> : vector<8xf32>
    %63 = vector.multi_reduction <add>, %58, %cst_45 [1] : vector<8x32xf32> to vector<8xf32>
    %64 = vector.shape_cast %63 : vector<8xf32> to vector<8x1xf32>
    %cst_46 = arith.constant 3.200000e+01 : f32
    %65 = vector.broadcast %cst_46 : f32 to vector<8x1xf32>
    %66 = arith.divf %64, %65 : vector<8x1xf32>
    %67 = vector.broadcast %66 : vector<8x1xf32> to vector<8x32xf32>
    %68 = arith.subf %58, %67 : vector<8x32xf32>
    %69 = arith.mulf %68, %68 : vector<8x32xf32>
    %cst_47 = arith.constant dense<0.000000e+00> : vector<8xf32>
    %70 = vector.multi_reduction <add>, %69, %cst_47 [1] : vector<8x32xf32> to vector<8xf32>
    %71 = vector.shape_cast %70 : vector<8xf32> to vector<8x1xf32>
    %cst_48 = arith.constant 3.200000e+01 : f32
    %72 = vector.broadcast %cst_48 : f32 to vector<8x1xf32>
    %73 = arith.divf %71, %72 : vector<8x1xf32>
    %74 = vector.broadcast %66 : vector<8x1xf32> to vector<8x32xf32>
    %75 = arith.subf %58, %74 : vector<8x32xf32>
    %cst_49 = arith.constant 9.99999974E-6 : f32
    %76 = vector.broadcast %cst_49 : f32 to vector<8x1xf32>
    %77 = arith.addf %73, %76 : vector<8x1xf32>
    %78 = math.rsqrt %77 : vector<8x1xf32>
    %79 = vector.broadcast %78 : vector<8x1xf32> to vector<8x32xf32>
    %80 = arith.mulf %75, %79 : vector<8x32xf32>
    %81 = vector.broadcast %60 : vector<1x32xf32> to vector<8x32xf32>
    %82 = arith.mulf %80, %81 : vector<8x32xf32>
    %83 = vector.broadcast %62 : vector<1x32xf32> to vector<8x32xf32>
    %84 = arith.addf %82, %83 : vector<8x32xf32>
    %c0_50 = arith.constant 0 : index
    %c0_51 = arith.constant 0 : index
    %c0_52 = arith.constant 0 : index
    %85 = vector.load %arg16[%c0_50, %c0_51, %c0_52] : memref<2x32x96xf32, #tpu.memory_space<vmem>>, vector<1x32x96xf32>
    %86 = vector.shape_cast %85 : vector<1x32x96xf32> to vector<32x96xf32>
    %cst_53 = arith.constant dense<0.000000e+00> : vector<8x96xf32>
    %87 = tpu.matmul %84, %86, %cst_53 {dimension_numbers = #tpu.dot_dimension_numbers<[1], [0], [0], [1], [0, 0, 1, 1], [], []>} : vector<8x32xf32>, vector<32x96xf32>, vector<8x96xf32> -> vector<8x96xf32>
    %c0_54 = arith.constant 0 : index
    %c0_55 = arith.constant 0 : index
    %c0_56 = arith.constant 0 : index
    %88 = vector.load %arg17[%c0_54, %c0_55, %c0_56] : memref<2x1x96xf32, #tpu.memory_space<vmem>>, vector<1x1x96xf32>
    %89 = vector.shape_cast %88 : vector<1x1x96xf32> to vector<1x96xf32>
    %90 = vector.broadcast %89 : vector<1x96xf32> to vector<8x96xf32>
    %91 = arith.addf %87, %90 : vector<8x96xf32>
    %92 = vector.extract_strided_slice %91 {offsets = [0, 0], sizes = [8, 32], strides = [1, 1]} : vector<8x96xf32> to vector<8x32xf32>
    %cst_57 = arith.constant 0.353553385 : f32
    %93 = vector.broadcast %cst_57 : f32 to vector<8x32xf32>
    %94 = arith.mulf %92, %93 : vector<8x32xf32>
    %95 = vector.extract_strided_slice %91 {offsets = [0, 32], sizes = [8, 32], strides = [1, 1]} : vector<8x96xf32> to vector<8x32xf32>
    %96 = vector.extract_strided_slice %91 {offsets = [0, 64], sizes = [8, 32], strides = [1, 1]} : vector<8x96xf32> to vector<8x32xf32>
    %97 = vector.extract_strided_slice %94 {offsets = [0, 0], sizes = [8, 8], strides = [1, 1]} : vector<8x32xf32> to vector<8x8xf32>
    %98 = vector.extract_strided_slice %95 {offsets = [0, 0], sizes = [8, 8], strides = [1, 1]} : vector<8x32xf32> to vector<8x8xf32>
    %99 = vector.extract_strided_slice %96 {offsets = [0, 0], sizes = [8, 8], strides = [1, 1]} : vector<8x32xf32> to vector<8x8xf32>
    %100 = tpu.transpose %98, [1, 0] : vector<8x8xf32> -> vector<8x8xf32>
    %cst_58 = arith.constant dense<0.000000e+00> : vector<8x8xf32>
    %101 = tpu.matmul %97, %100, %cst_58 {dimension_numbers = #tpu.dot_dimension_numbers<[1], [0], [0], [1], [0, 0, 1, 1], [], []>} : vector<8x8xf32>, vector<8x8xf32>, vector<8x8xf32> -> vector<8x8xf32>
    %cst_59 = arith.constant dense<0.000000e+00> : vector<8x16xf32>
    %102 = tpu.matmul %97, %36, %cst_59 {dimension_numbers = #tpu.dot_dimension_numbers<[1], [0], [0], [1], [0, 0, 1, 1], [], []>} : vector<8x8xf32>, vector<8x16xf32>, vector<8x16xf32> -> vector<8x16xf32>
    %103 = vector.extract_strided_slice %102 {offsets = [0, 7], sizes = [1, 8], strides = [1, 1]} : vector<8x16xf32> to vector<1x8xf32>
    %104 = vector.extract_strided_slice %102 {offsets = [1, 6], sizes = [1, 8], strides = [1, 1]} : vector<8x16xf32> to vector<1x8xf32>
    %105 = vector.extract_strided_slice %102 {offsets = [2, 5], sizes = [1, 8], strides = [1, 1]} : vector<8x16xf32> to vector<1x8xf32>
    %106 = vector.extract_strided_slice %102 {offsets = [3, 4], sizes = [1, 8], strides = [1, 1]} : vector<8x16xf32> to vector<1x8xf32>
    %107 = vector.extract_strided_slice %102 {offsets = [4, 3], sizes = [1, 8], strides = [1, 1]} : vector<8x16xf32> to vector<1x8xf32>
    %108 = vector.extract_strided_slice %102 {offsets = [5, 2], sizes = [1, 8], strides = [1, 1]} : vector<8x16xf32> to vector<1x8xf32>
    %109 = vector.extract_strided_slice %102 {offsets = [6, 1], sizes = [1, 8], strides = [1, 1]} : vector<8x16xf32> to vector<1x8xf32>
    %110 = vector.extract_strided_slice %102 {offsets = [7, 0], sizes = [1, 8], strides = [1, 1]} : vector<8x16xf32> to vector<1x8xf32>
    %111 = tpu.concatenate %103, %104, %105, %106, %107, %108, %109, %110 in 0 : vector<1x8xf32>, vector<1x8xf32>, vector<1x8xf32>, vector<1x8xf32>, vector<1x8xf32>, vector<1x8xf32>, vector<1x8xf32>, vector<1x8xf32> -> vector<8x8xf32>
    %112 = arith.addf %101, %111 : vector<8x8xf32>
    %cst_60 = arith.constant dense<0xFF800000> : vector<8xf32>
    %113 = vector.multi_reduction <maximumf>, %112, %cst_60 [1] : vector<8x8xf32> to vector<8xf32>
    %114 = vector.shape_cast %113 : vector<8xf32> to vector<8x1xf32>
    %115 = vector.broadcast %114 : vector<8x1xf32> to vector<8x8xf32>
    %116 = arith.subf %112, %115 : vector<8x8xf32>
    %117 = math.exp %116 : vector<8x8xf32>
    %cst_61 = arith.constant dense<0.000000e+00> : vector<8xf32>
    %118 = vector.multi_reduction <add>, %117, %cst_61 [1] : vector<8x8xf32> to vector<8xf32>
    %119 = vector.shape_cast %118 : vector<8xf32> to vector<8x1xf32>
    %120 = tpu.reciprocal %119 {approx = true} : vector<8x1xf32> -> vector<8x1xf32>
    %121 = vector.broadcast %120 : vector<8x1xf32> to vector<8x8xf32>
    %122 = arith.mulf %117, %121 : vector<8x8xf32>
    %cst_62 = arith.constant dense<0.000000e+00> : vector<8x8xf32>
    %123 = tpu.matmul %122, %99, %cst_62 {dimension_numbers = #tpu.dot_dimension_numbers<[1], [0], [0], [1], [0, 0, 1, 1], [], []>} : vector<8x8xf32>, vector<8x8xf32>, vector<8x8xf32> -> vector<8x8xf32>
    %124 = vector.extract_strided_slice %94 {offsets = [0, 8], sizes = [8, 8], strides = [1, 1]} : vector<8x32xf32> to vector<8x8xf32>
    %125 = vector.extract_strided_slice %95 {offsets = [0, 8], sizes = [8, 8], strides = [1, 1]} : vector<8x32xf32> to vector<8x8xf32>
    %126 = vector.extract_strided_slice %96 {offsets = [0, 8], sizes = [8, 8], strides = [1, 1]} : vector<8x32xf32> to vector<8x8xf32>
    %127 = tpu.transpose %125, [1, 0] : vector<8x8xf32> -> vector<8x8xf32>
    %cst_63 = arith.constant dense<0.000000e+00> : vector<8x8xf32>
    %128 = tpu.matmul %124, %127, %cst_63 {dimension_numbers = #tpu.dot_dimension_numbers<[1], [0], [0], [1], [0, 0, 1, 1], [], []>} : vector<8x8xf32>, vector<8x8xf32>, vector<8x8xf32> -> vector<8x8xf32>
    %cst_64 = arith.constant dense<0.000000e+00> : vector<8x16xf32>
    %129 = tpu.matmul %124, %36, %cst_64 {dimension_numbers = #tpu.dot_dimension_numbers<[1], [0], [0], [1], [0, 0, 1, 1], [], []>} : vector<8x8xf32>, vector<8x16xf32>, vector<8x16xf32> -> vector<8x16xf32>
    %130 = vector.extract_strided_slice %129 {offsets = [0, 7], sizes = [1, 8], strides = [1, 1]} : vector<8x16xf32> to vector<1x8xf32>
    %131 = vector.extract_strided_slice %129 {offsets = [1, 6], sizes = [1, 8], strides = [1, 1]} : vector<8x16xf32> to vector<1x8xf32>
    %132 = vector.extract_strided_slice %129 {offsets = [2, 5], sizes = [1, 8], strides = [1, 1]} : vector<8x16xf32> to vector<1x8xf32>
    %133 = vector.extract_strided_slice %129 {offsets = [3, 4], sizes = [1, 8], strides = [1, 1]} : vector<8x16xf32> to vector<1x8xf32>
    %134 = vector.extract_strided_slice %129 {offsets = [4, 3], sizes = [1, 8], strides = [1, 1]} : vector<8x16xf32> to vector<1x8xf32>
    %135 = vector.extract_strided_slice %129 {offsets = [5, 2], sizes = [1, 8], strides = [1, 1]} : vector<8x16xf32> to vector<1x8xf32>
    %136 = vector.extract_strided_slice %129 {offsets = [6, 1], sizes = [1, 8], strides = [1, 1]} : vector<8x16xf32> to vector<1x8xf32>
    %137 = vector.extract_strided_slice %129 {offsets = [7, 0], sizes = [1, 8], strides = [1, 1]} : vector<8x16xf32> to vector<1x8xf32>
    %138 = tpu.concatenate %130, %131, %132, %133, %134, %135, %136, %137 in 0 : vector<1x8xf32>, vector<1x8xf32>, vector<1x8xf32>, vector<1x8xf32>, vector<1x8xf32>, vector<1x8xf32>, vector<1x8xf32>, vector<1x8xf32> -> vector<8x8xf32>
    %139 = arith.addf %128, %138 : vector<8x8xf32>
    %cst_65 = arith.constant dense<0xFF800000> : vector<8xf32>
    %140 = vector.multi_reduction <maximumf>, %139, %cst_65 [1] : vector<8x8xf32> to vector<8xf32>
    %141 = vector.shape_cast %140 : vector<8xf32> to vector<8x1xf32>
    %142 = vector.broadcast %141 : vector<8x1xf32> to vector<8x8xf32>
    %143 = arith.subf %139, %142 : vector<8x8xf32>
    %144 = math.exp %143 : vector<8x8xf32>
    %cst_66 = arith.constant dense<0.000000e+00> : vector<8xf32>
    %145 = vector.multi_reduction <add>, %144, %cst_66 [1] : vector<8x8xf32> to vector<8xf32>
    %146 = vector.shape_cast %145 : vector<8xf32> to vector<8x1xf32>
    %147 = tpu.reciprocal %146 {approx = true} : vector<8x1xf32> -> vector<8x1xf32>
    %148 = vector.broadcast %147 : vector<8x1xf32> to vector<8x8xf32>
    %149 = arith.mulf %144, %148 : vector<8x8xf32>
    %cst_67 = arith.constant dense<0.000000e+00> : vector<8x8xf32>
    %150 = tpu.matmul %149, %126, %cst_67 {dimension_numbers = #tpu.dot_dimension_numbers<[1], [0], [0], [1], [0, 0, 1, 1], [], []>} : vector<8x8xf32>, vector<8x8xf32>, vector<8x8xf32> -> vector<8x8xf32>
    %151 = vector.extract_strided_slice %94 {offsets = [0, 16], sizes = [8, 8], strides = [1, 1]} : vector<8x32xf32> to vector<8x8xf32>
    %152 = vector.extract_strided_slice %95 {offsets = [0, 16], sizes = [8, 8], strides = [1, 1]} : vector<8x32xf32> to vector<8x8xf32>
    %153 = vector.extract_strided_slice %96 {offsets = [0, 16], sizes = [8, 8], strides = [1, 1]} : vector<8x32xf32> to vector<8x8xf32>
    %154 = tpu.transpose %152, [1, 0] : vector<8x8xf32> -> vector<8x8xf32>
    %cst_68 = arith.constant dense<0.000000e+00> : vector<8x8xf32>
    %155 = tpu.matmul %151, %154, %cst_68 {dimension_numbers = #tpu.dot_dimension_numbers<[1], [0], [0], [1], [0, 0, 1, 1], [], []>} : vector<8x8xf32>, vector<8x8xf32>, vector<8x8xf32> -> vector<8x8xf32>
    %cst_69 = arith.constant dense<0.000000e+00> : vector<8x16xf32>
    %156 = tpu.matmul %151, %36, %cst_69 {dimension_numbers = #tpu.dot_dimension_numbers<[1], [0], [0], [1], [0, 0, 1, 1], [], []>} : vector<8x8xf32>, vector<8x16xf32>, vector<8x16xf32> -> vector<8x16xf32>
    %157 = vector.extract_strided_slice %156 {offsets = [0, 7], sizes = [1, 8], strides = [1, 1]} : vector<8x16xf32> to vector<1x8xf32>
    %158 = vector.extract_strided_slice %156 {offsets = [1, 6], sizes = [1, 8], strides = [1, 1]} : vector<8x16xf32> to vector<1x8xf32>
    %159 = vector.extract_strided_slice %156 {offsets = [2, 5], sizes = [1, 8], strides = [1, 1]} : vector<8x16xf32> to vector<1x8xf32>
    %160 = vector.extract_strided_slice %156 {offsets = [3, 4], sizes = [1, 8], strides = [1, 1]} : vector<8x16xf32> to vector<1x8xf32>
    %161 = vector.extract_strided_slice %156 {offsets = [4, 3], sizes = [1, 8], strides = [1, 1]} : vector<8x16xf32> to vector<1x8xf32>
    %162 = vector.extract_strided_slice %156 {offsets = [5, 2], sizes = [1, 8], strides = [1, 1]} : vector<8x16xf32> to vector<1x8xf32>
    %163 = vector.extract_strided_slice %156 {offsets = [6, 1], sizes = [1, 8], strides = [1, 1]} : vector<8x16xf32> to vector<1x8xf32>
    %164 = vector.extract_strided_slice %156 {offsets = [7, 0], sizes = [1, 8], strides = [1, 1]} : vector<8x16xf32> to vector<1x8xf32>
    %165 = tpu.concatenate %157, %158, %159, %160, %161, %162, %163, %164 in 0 : vector<1x8xf32>, vector<1x8xf32>, vector<1x8xf32>, vector<1x8xf32>, vector<1x8xf32>, vector<1x8xf32>, vector<1x8xf32>, vector<1x8xf32> -> vector<8x8xf32>
    %166 = arith.addf %155, %165 : vector<8x8xf32>
    %cst_70 = arith.constant dense<0xFF800000> : vector<8xf32>
    %167 = vector.multi_reduction <maximumf>, %166, %cst_70 [1] : vector<8x8xf32> to vector<8xf32>
    %168 = vector.shape_cast %167 : vector<8xf32> to vector<8x1xf32>
    %169 = vector.broadcast %168 : vector<8x1xf32> to vector<8x8xf32>
    %170 = arith.subf %166, %169 : vector<8x8xf32>
    %171 = math.exp %170 : vector<8x8xf32>
    %cst_71 = arith.constant dense<0.000000e+00> : vector<8xf32>
    %172 = vector.multi_reduction <add>, %171, %cst_71 [1] : vector<8x8xf32> to vector<8xf32>
    %173 = vector.shape_cast %172 : vector<8xf32> to vector<8x1xf32>
    %174 = tpu.reciprocal %173 {approx = true} : vector<8x1xf32> -> vector<8x1xf32>
    %175 = vector.broadcast %174 : vector<8x1xf32> to vector<8x8xf32>
    %176 = arith.mulf %171, %175 : vector<8x8xf32>
    %cst_72 = arith.constant dense<0.000000e+00> : vector<8x8xf32>
    %177 = tpu.matmul %176, %153, %cst_72 {dimension_numbers = #tpu.dot_dimension_numbers<[1], [0], [0], [1], [0, 0, 1, 1], [], []>} : vector<8x8xf32>, vector<8x8xf32>, vector<8x8xf32> -> vector<8x8xf32>
    %178 = vector.extract_strided_slice %94 {offsets = [0, 24], sizes = [8, 8], strides = [1, 1]} : vector<8x32xf32> to vector<8x8xf32>
    %179 = vector.extract_strided_slice %95 {offsets = [0, 24], sizes = [8, 8], strides = [1, 1]} : vector<8x32xf32> to vector<8x8xf32>
    %180 = vector.extract_strided_slice %96 {offsets = [0, 24], sizes = [8, 8], strides = [1, 1]} : vector<8x32xf32> to vector<8x8xf32>
    %181 = tpu.transpose %179, [1, 0] : vector<8x8xf32> -> vector<8x8xf32>
    %cst_73 = arith.constant dense<0.000000e+00> : vector<8x8xf32>
    %182 = tpu.matmul %178, %181, %cst_73 {dimension_numbers = #tpu.dot_dimension_numbers<[1], [0], [0], [1], [0, 0, 1, 1], [], []>} : vector<8x8xf32>, vector<8x8xf32>, vector<8x8xf32> -> vector<8x8xf32>
    %cst_74 = arith.constant dense<0.000000e+00> : vector<8x16xf32>
    %183 = tpu.matmul %178, %36, %cst_74 {dimension_numbers = #tpu.dot_dimension_numbers<[1], [0], [0], [1], [0, 0, 1, 1], [], []>} : vector<8x8xf32>, vector<8x16xf32>, vector<8x16xf32> -> vector<8x16xf32>
    %184 = vector.extract_strided_slice %183 {offsets = [0, 7], sizes = [1, 8], strides = [1, 1]} : vector<8x16xf32> to vector<1x8xf32>
    %185 = vector.extract_strided_slice %183 {offsets = [1, 6], sizes = [1, 8], strides = [1, 1]} : vector<8x16xf32> to vector<1x8xf32>
    %186 = vector.extract_strided_slice %183 {offsets = [2, 5], sizes = [1, 8], strides = [1, 1]} : vector<8x16xf32> to vector<1x8xf32>
    %187 = vector.extract_strided_slice %183 {offsets = [3, 4], sizes = [1, 8], strides = [1, 1]} : vector<8x16xf32> to vector<1x8xf32>
    %188 = vector.extract_strided_slice %183 {offsets = [4, 3], sizes = [1, 8], strides = [1, 1]} : vector<8x16xf32> to vector<1x8xf32>
    %189 = vector.extract_strided_slice %183 {offsets = [5, 2], sizes = [1, 8], strides = [1, 1]} : vector<8x16xf32> to vector<1x8xf32>
    %190 = vector.extract_strided_slice %183 {offsets = [6, 1], sizes = [1, 8], strides = [1, 1]} : vector<8x16xf32> to vector<1x8xf32>
    %191 = vector.extract_strided_slice %183 {offsets = [7, 0], sizes = [1, 8], strides = [1, 1]} : vector<8x16xf32> to vector<1x8xf32>
    %192 = tpu.concatenate %184, %185, %186, %187, %188, %189, %190, %191 in 0 : vector<1x8xf32>, vector<1x8xf32>, vector<1x8xf32>, vector<1x8xf32>, vector<1x8xf32>, vector<1x8xf32>, vector<1x8xf32>, vector<1x8xf32> -> vector<8x8xf32>
    %193 = arith.addf %182, %192 : vector<8x8xf32>
    %cst_75 = arith.constant dense<0xFF800000> : vector<8xf32>
    %194 = vector.multi_reduction <maximumf>, %193, %cst_75 [1] : vector<8x8xf32> to vector<8xf32>
    %195 = vector.shape_cast %194 : vector<8xf32> to vector<8x1xf32>
    %196 = vector.broadcast %195 : vector<8x1xf32> to vector<8x8xf32>
    %197 = arith.subf %193, %196 : vector<8x8xf32>
    %198 = math.exp %197 : vector<8x8xf32>
    %cst_76 = arith.constant dense<0.000000e+00> : vector<8xf32>
    %199 = vector.multi_reduction <add>, %198, %cst_76 [1] : vector<8x8xf32> to vector<8xf32>
    %200 = vector.shape_cast %199 : vector<8xf32> to vector<8x1xf32>
    %201 = tpu.reciprocal %200 {approx = true} : vector<8x1xf32> -> vector<8x1xf32>
    %202 = vector.broadcast %201 : vector<8x1xf32> to vector<8x8xf32>
    %203 = arith.mulf %198, %202 : vector<8x8xf32>
    %cst_77 = arith.constant dense<0.000000e+00> : vector<8x8xf32>
    %204 = tpu.matmul %203, %180, %cst_77 {dimension_numbers = #tpu.dot_dimension_numbers<[1], [0], [0], [1], [0, 0, 1, 1], [], []>} : vector<8x8xf32>, vector<8x8xf32>, vector<8x8xf32> -> vector<8x8xf32>
    %205 = tpu.concatenate %123, %150, %177, %204 in 1 : vector<8x8xf32>, vector<8x8xf32>, vector<8x8xf32>, vector<8x8xf32> -> vector<8x32xf32>
    %c0_78 = arith.constant 0 : index
    %c0_79 = arith.constant 0 : index
    %c0_80 = arith.constant 0 : index
    %206 = vector.load %arg18[%c0_78, %c0_79, %c0_80] : memref<2x32x32xf32, #tpu.memory_space<vmem>>, vector<1x32x32xf32>
    %207 = vector.shape_cast %206 : vector<1x32x32xf32> to vector<32x32xf32>
    %cst_81 = arith.constant dense<0.000000e+00> : vector<8x32xf32>
    %208 = tpu.matmul %205, %207, %cst_81 {dimension_numbers = #tpu.dot_dimension_numbers<[1], [0], [0], [1], [0, 0, 1, 1], [], []>} : vector<8x32xf32>, vector<32x32xf32>, vector<8x32xf32> -> vector<8x32xf32>
    %c0_82 = arith.constant 0 : index
    %c0_83 = arith.constant 0 : index
    %c0_84 = arith.constant 0 : index
    %209 = vector.load %arg19[%c0_82, %c0_83, %c0_84] : memref<2x1x32xf32, #tpu.memory_space<vmem>>, vector<1x1x32xf32>
    %210 = vector.shape_cast %209 : vector<1x1x32xf32> to vector<1x32xf32>
    %211 = vector.broadcast %210 : vector<1x32xf32> to vector<8x32xf32>
    %212 = arith.addf %208, %211 : vector<8x32xf32>
    %213 = arith.addf %212, %58 : vector<8x32xf32>
    %c0_85 = arith.constant 0 : index
    %c0_86 = arith.constant 0 : index
    %c0_87 = arith.constant 0 : index
    %214 = vector.load %arg26[%c0_85, %c0_86, %c0_87] : memref<2x1x32xf32, #tpu.memory_space<vmem>>, vector<1x1x32xf32>
    %215 = vector.shape_cast %214 : vector<1x1x32xf32> to vector<1x32xf32>
    %c0_88 = arith.constant 0 : index
    %c0_89 = arith.constant 0 : index
    %c0_90 = arith.constant 0 : index
    %216 = vector.load %arg27[%c0_88, %c0_89, %c0_90] : memref<2x1x32xf32, #tpu.memory_space<vmem>>, vector<1x1x32xf32>
    %217 = vector.shape_cast %216 : vector<1x1x32xf32> to vector<1x32xf32>
    %cst_91 = arith.constant dense<0.000000e+00> : vector<8xf32>
    %218 = vector.multi_reduction <add>, %213, %cst_91 [1] : vector<8x32xf32> to vector<8xf32>
    %219 = vector.shape_cast %218 : vector<8xf32> to vector<8x1xf32>
    %cst_92 = arith.constant 3.200000e+01 : f32
    %220 = vector.broadcast %cst_92 : f32 to vector<8x1xf32>
    %221 = arith.divf %219, %220 : vector<8x1xf32>
    %222 = vector.broadcast %221 : vector<8x1xf32> to vector<8x32xf32>
    %223 = arith.subf %213, %222 : vector<8x32xf32>
    %224 = arith.mulf %223, %223 : vector<8x32xf32>
    %cst_93 = arith.constant dense<0.000000e+00> : vector<8xf32>
    %225 = vector.multi_reduction <add>, %224, %cst_93 [1] : vector<8x32xf32> to vector<8xf32>
    %226 = vector.shape_cast %225 : vector<8xf32> to vector<8x1xf32>
    %cst_94 = arith.constant 3.200000e+01 : f32
    %227 = vector.broadcast %cst_94 : f32 to vector<8x1xf32>
    %228 = arith.divf %226, %227 : vector<8x1xf32>
    %229 = vector.broadcast %221 : vector<8x1xf32> to vector<8x32xf32>
    %230 = arith.subf %213, %229 : vector<8x32xf32>
    %cst_95 = arith.constant 9.99999974E-6 : f32
    %231 = vector.broadcast %cst_95 : f32 to vector<8x1xf32>
    %232 = arith.addf %228, %231 : vector<8x1xf32>
    %233 = math.rsqrt %232 : vector<8x1xf32>
    %234 = vector.broadcast %233 : vector<8x1xf32> to vector<8x32xf32>
    %235 = arith.mulf %230, %234 : vector<8x32xf32>
    %236 = vector.broadcast %215 : vector<1x32xf32> to vector<8x32xf32>
    %237 = arith.mulf %235, %236 : vector<8x32xf32>
    %238 = vector.broadcast %217 : vector<1x32xf32> to vector<8x32xf32>
    %239 = arith.addf %237, %238 : vector<8x32xf32>
    %c0_96 = arith.constant 0 : index
    %c0_97 = arith.constant 0 : index
    %c0_98 = arith.constant 0 : index
    %240 = vector.load %arg22[%c0_96, %c0_97, %c0_98] : memref<2x32x64xf32, #tpu.memory_space<vmem>>, vector<1x32x64xf32>
    %241 = vector.shape_cast %240 : vector<1x32x64xf32> to vector<32x64xf32>
    %cst_99 = arith.constant dense<0.000000e+00> : vector<8x64xf32>
    %242 = tpu.matmul %239, %241, %cst_99 {dimension_numbers = #tpu.dot_dimension_numbers<[1], [0], [0], [1], [0, 0, 1, 1], [], []>} : vector<8x32xf32>, vector<32x64xf32>, vector<8x64xf32> -> vector<8x64xf32>
    %c0_100 = arith.constant 0 : index
    %c0_101 = arith.constant 0 : index
    %c0_102 = arith.constant 0 : index
    %243 = vector.load %arg23[%c0_100, %c0_101, %c0_102] : memref<2x1x64xf32, #tpu.memory_space<vmem>>, vector<1x1x64xf32>
    %244 = vector.shape_cast %243 : vector<1x1x64xf32> to vector<1x64xf32>
    %245 = vector.broadcast %244 : vector<1x64xf32> to vector<8x64xf32>
    %246 = arith.addf %242, %245 : vector<8x64xf32>
    %cst_103 = arith.constant 0.000000e+00 : f32
    %247 = vector.broadcast %cst_103 : f32 to vector<8x64xf32>
    %248 = arith.maximumf %246, %247 : vector<8x64xf32>
    %c0_104 = arith.constant 0 : index
    %c0_105 = arith.constant 0 : index
    %c0_106 = arith.constant 0 : index
    %249 = vector.load %arg24[%c0_104, %c0_105, %c0_106] : memref<2x64x32xf32, #tpu.memory_space<vmem>>, vector<1x64x32xf32>
    %250 = vector.shape_cast %249 : vector<1x64x32xf32> to vector<64x32xf32>
    %cst_107 = arith.constant dense<0.000000e+00> : vector<8x32xf32>
    %251 = tpu.matmul %248, %250, %cst_107 {dimension_numbers = #tpu.dot_dimension_numbers<[1], [0], [0], [1], [0, 0, 1, 1], [], []>} : vector<8x64xf32>, vector<64x32xf32>, vector<8x32xf32> -> vector<8x32xf32>
    %c0_108 = arith.constant 0 : index
    %c0_109 = arith.constant 0 : index
    %c0_110 = arith.constant 0 : index
    %252 = vector.load %arg25[%c0_108, %c0_109, %c0_110] : memref<2x1x32xf32, #tpu.memory_space<vmem>>, vector<1x1x32xf32>
    %253 = vector.shape_cast %252 : vector<1x1x32xf32> to vector<1x32xf32>
    %254 = vector.broadcast %253 : vector<1x32xf32> to vector<8x32xf32>
    %255 = arith.addf %251, %254 : vector<8x32xf32>
    %256 = arith.addf %255, %213 : vector<8x32xf32>
    %c1_111 = arith.constant 1 : index
    %c0_112 = arith.constant 0 : index
    %c0_113 = arith.constant 0 : index
    %257 = vector.load %arg20[%c1_111, %c0_112, %c0_113] : memref<2x1x32xf32, #tpu.memory_space<vmem>>, vector<1x1x32xf32>
    %258 = vector.shape_cast %257 : vector<1x1x32xf32> to vector<1x32xf32>
    %c1_114 = arith.constant 1 : index
    %c0_115 = arith.constant 0 : index
    %c0_116 = arith.constant 0 : index
    %259 = vector.load %arg21[%c1_114, %c0_115, %c0_116] : memref<2x1x32xf32, #tpu.memory_space<vmem>>, vector<1x1x32xf32>
    %260 = vector.shape_cast %259 : vector<1x1x32xf32> to vector<1x32xf32>
    %cst_117 = arith.constant dense<0.000000e+00> : vector<8xf32>
    %261 = vector.multi_reduction <add>, %256, %cst_117 [1] : vector<8x32xf32> to vector<8xf32>
    %262 = vector.shape_cast %261 : vector<8xf32> to vector<8x1xf32>
    %cst_118 = arith.constant 3.200000e+01 : f32
    %263 = vector.broadcast %cst_118 : f32 to vector<8x1xf32>
    %264 = arith.divf %262, %263 : vector<8x1xf32>
    %265 = vector.broadcast %264 : vector<8x1xf32> to vector<8x32xf32>
    %266 = arith.subf %256, %265 : vector<8x32xf32>
    %267 = arith.mulf %266, %266 : vector<8x32xf32>
    %cst_119 = arith.constant dense<0.000000e+00> : vector<8xf32>
    %268 = vector.multi_reduction <add>, %267, %cst_119 [1] : vector<8x32xf32> to vector<8xf32>
    %269 = vector.shape_cast %268 : vector<8xf32> to vector<8x1xf32>
    %cst_120 = arith.constant 3.200000e+01 : f32
    %270 = vector.broadcast %cst_120 : f32 to vector<8x1xf32>
    %271 = arith.divf %269, %270 : vector<8x1xf32>
    %272 = vector.broadcast %264 : vector<8x1xf32> to vector<8x32xf32>
    %273 = arith.subf %256, %272 : vector<8x32xf32>
    %cst_121 = arith.constant 9.99999974E-6 : f32
    %274 = vector.broadcast %cst_121 : f32 to vector<8x1xf32>
    %275 = arith.addf %271, %274 : vector<8x1xf32>
    %276 = math.rsqrt %275 : vector<8x1xf32>
    %277 = vector.broadcast %276 : vector<8x1xf32> to vector<8x32xf32>
    %278 = arith.mulf %273, %277 : vector<8x32xf32>
    %279 = vector.broadcast %258 : vector<1x32xf32> to vector<8x32xf32>
    %280 = arith.mulf %278, %279 : vector<8x32xf32>
    %281 = vector.broadcast %260 : vector<1x32xf32> to vector<8x32xf32>
    %282 = arith.addf %280, %281 : vector<8x32xf32>
    %c1_122 = arith.constant 1 : index
    %c0_123 = arith.constant 0 : index
    %c0_124 = arith.constant 0 : index
    %283 = vector.load %arg16[%c1_122, %c0_123, %c0_124] : memref<2x32x96xf32, #tpu.memory_space<vmem>>, vector<1x32x96xf32>
    %284 = vector.shape_cast %283 : vector<1x32x96xf32> to vector<32x96xf32>
    %cst_125 = arith.constant dense<0.000000e+00> : vector<8x96xf32>
    %285 = tpu.matmul %282, %284, %cst_125 {dimension_numbers = #tpu.dot_dimension_numbers<[1], [0], [0], [1], [0, 0, 1, 1], [], []>} : vector<8x32xf32>, vector<32x96xf32>, vector<8x96xf32> -> vector<8x96xf32>
    %c1_126 = arith.constant 1 : index
    %c0_127 = arith.constant 0 : index
    %c0_128 = arith.constant 0 : index
    %286 = vector.load %arg17[%c1_126, %c0_127, %c0_128] : memref<2x1x96xf32, #tpu.memory_space<vmem>>, vector<1x1x96xf32>
    %287 = vector.shape_cast %286 : vector<1x1x96xf32> to vector<1x96xf32>
    %288 = vector.broadcast %287 : vector<1x96xf32> to vector<8x96xf32>
    %289 = arith.addf %285, %288 : vector<8x96xf32>
    %290 = vector.extract_strided_slice %289 {offsets = [0, 0], sizes = [8, 32], strides = [1, 1]} : vector<8x96xf32> to vector<8x32xf32>
    %cst_129 = arith.constant 0.353553385 : f32
    %291 = vector.broadcast %cst_129 : f32 to vector<8x32xf32>
    %292 = arith.mulf %290, %291 : vector<8x32xf32>
    %293 = vector.extract_strided_slice %289 {offsets = [0, 32], sizes = [8, 32], strides = [1, 1]} : vector<8x96xf32> to vector<8x32xf32>
    %294 = vector.extract_strided_slice %289 {offsets = [0, 64], sizes = [8, 32], strides = [1, 1]} : vector<8x96xf32> to vector<8x32xf32>
    %295 = vector.extract_strided_slice %292 {offsets = [0, 0], sizes = [8, 8], strides = [1, 1]} : vector<8x32xf32> to vector<8x8xf32>
    %296 = vector.extract_strided_slice %293 {offsets = [0, 0], sizes = [8, 8], strides = [1, 1]} : vector<8x32xf32> to vector<8x8xf32>
    %297 = vector.extract_strided_slice %294 {offsets = [0, 0], sizes = [8, 8], strides = [1, 1]} : vector<8x32xf32> to vector<8x8xf32>
    %298 = tpu.transpose %296, [1, 0] : vector<8x8xf32> -> vector<8x8xf32>
    %cst_130 = arith.constant dense<0.000000e+00> : vector<8x8xf32>
    %299 = tpu.matmul %295, %298, %cst_130 {dimension_numbers = #tpu.dot_dimension_numbers<[1], [0], [0], [1], [0, 0, 1, 1], [], []>} : vector<8x8xf32>, vector<8x8xf32>, vector<8x8xf32> -> vector<8x8xf32>
    %cst_131 = arith.constant dense<0.000000e+00> : vector<8x16xf32>
    %300 = tpu.matmul %295, %36, %cst_131 {dimension_numbers = #tpu.dot_dimension_numbers<[1], [0], [0], [1], [0, 0, 1, 1], [], []>} : vector<8x8xf32>, vector<8x16xf32>, vector<8x16xf32> -> vector<8x16xf32>
    %301 = vector.extract_strided_slice %300 {offsets = [0, 7], sizes = [1, 8], strides = [1, 1]} : vector<8x16xf32> to vector<1x8xf32>
    %302 = vector.extract_strided_slice %300 {offsets = [1, 6], sizes = [1, 8], strides = [1, 1]} : vector<8x16xf32> to vector<1x8xf32>
    %303 = vector.extract_strided_slice %300 {offsets = [2, 5], sizes = [1, 8], strides = [1, 1]} : vector<8x16xf32> to vector<1x8xf32>
    %304 = vector.extract_strided_slice %300 {offsets = [3, 4], sizes = [1, 8], strides = [1, 1]} : vector<8x16xf32> to vector<1x8xf32>
    %305 = vector.extract_strided_slice %300 {offsets = [4, 3], sizes = [1, 8], strides = [1, 1]} : vector<8x16xf32> to vector<1x8xf32>
    %306 = vector.extract_strided_slice %300 {offsets = [5, 2], sizes = [1, 8], strides = [1, 1]} : vector<8x16xf32> to vector<1x8xf32>
    %307 = vector.extract_strided_slice %300 {offsets = [6, 1], sizes = [1, 8], strides = [1, 1]} : vector<8x16xf32> to vector<1x8xf32>
    %308 = vector.extract_strided_slice %300 {offsets = [7, 0], sizes = [1, 8], strides = [1, 1]} : vector<8x16xf32> to vector<1x8xf32>
    %309 = tpu.concatenate %301, %302, %303, %304, %305, %306, %307, %308 in 0 : vector<1x8xf32>, vector<1x8xf32>, vector<1x8xf32>, vector<1x8xf32>, vector<1x8xf32>, vector<1x8xf32>, vector<1x8xf32>, vector<1x8xf32> -> vector<8x8xf32>
    %310 = arith.addf %299, %309 : vector<8x8xf32>
    %cst_132 = arith.constant dense<0xFF800000> : vector<8xf32>
    %311 = vector.multi_reduction <maximumf>, %310, %cst_132 [1] : vector<8x8xf32> to vector<8xf32>
    %312 = vector.shape_cast %311 : vector<8xf32> to vector<8x1xf32>
    %313 = vector.broadcast %312 : vector<8x1xf32> to vector<8x8xf32>
    %314 = arith.subf %310, %313 : vector<8x8xf32>
    %315 = math.exp %314 : vector<8x8xf32>
    %cst_133 = arith.constant dense<0.000000e+00> : vector<8xf32>
    %316 = vector.multi_reduction <add>, %315, %cst_133 [1] : vector<8x8xf32> to vector<8xf32>
    %317 = vector.shape_cast %316 : vector<8xf32> to vector<8x1xf32>
    %318 = tpu.reciprocal %317 {approx = true} : vector<8x1xf32> -> vector<8x1xf32>
    %319 = vector.broadcast %318 : vector<8x1xf32> to vector<8x8xf32>
    %320 = arith.mulf %315, %319 : vector<8x8xf32>
    %cst_134 = arith.constant dense<0.000000e+00> : vector<8x8xf32>
    %321 = tpu.matmul %320, %297, %cst_134 {dimension_numbers = #tpu.dot_dimension_numbers<[1], [0], [0], [1], [0, 0, 1, 1], [], []>} : vector<8x8xf32>, vector<8x8xf32>, vector<8x8xf32> -> vector<8x8xf32>
    %322 = vector.extract_strided_slice %292 {offsets = [0, 8], sizes = [8, 8], strides = [1, 1]} : vector<8x32xf32> to vector<8x8xf32>
    %323 = vector.extract_strided_slice %293 {offsets = [0, 8], sizes = [8, 8], strides = [1, 1]} : vector<8x32xf32> to vector<8x8xf32>
    %324 = vector.extract_strided_slice %294 {offsets = [0, 8], sizes = [8, 8], strides = [1, 1]} : vector<8x32xf32> to vector<8x8xf32>
    %325 = tpu.transpose %323, [1, 0] : vector<8x8xf32> -> vector<8x8xf32>
    %cst_135 = arith.constant dense<0.000000e+00> : vector<8x8xf32>
    %326 = tpu.matmul %322, %325, %cst_135 {dimension_numbers = #tpu.dot_dimension_numbers<[1], [0], [0], [1], [0, 0, 1, 1], [], []>} : vector<8x8xf32>, vector<8x8xf32>, vector<8x8xf32> -> vector<8x8xf32>
    %cst_136 = arith.constant dense<0.000000e+00> : vector<8x16xf32>
    %327 = tpu.matmul %322, %36, %cst_136 {dimension_numbers = #tpu.dot_dimension_numbers<[1], [0], [0], [1], [0, 0, 1, 1], [], []>} : vector<8x8xf32>, vector<8x16xf32>, vector<8x16xf32> -> vector<8x16xf32>
    %328 = vector.extract_strided_slice %327 {offsets = [0, 7], sizes = [1, 8], strides = [1, 1]} : vector<8x16xf32> to vector<1x8xf32>
    %329 = vector.extract_strided_slice %327 {offsets = [1, 6], sizes = [1, 8], strides = [1, 1]} : vector<8x16xf32> to vector<1x8xf32>
    %330 = vector.extract_strided_slice %327 {offsets = [2, 5], sizes = [1, 8], strides = [1, 1]} : vector<8x16xf32> to vector<1x8xf32>
    %331 = vector.extract_strided_slice %327 {offsets = [3, 4], sizes = [1, 8], strides = [1, 1]} : vector<8x16xf32> to vector<1x8xf32>
    %332 = vector.extract_strided_slice %327 {offsets = [4, 3], sizes = [1, 8], strides = [1, 1]} : vector<8x16xf32> to vector<1x8xf32>
    %333 = vector.extract_strided_slice %327 {offsets = [5, 2], sizes = [1, 8], strides = [1, 1]} : vector<8x16xf32> to vector<1x8xf32>
    %334 = vector.extract_strided_slice %327 {offsets = [6, 1], sizes = [1, 8], strides = [1, 1]} : vector<8x16xf32> to vector<1x8xf32>
    %335 = vector.extract_strided_slice %327 {offsets = [7, 0], sizes = [1, 8], strides = [1, 1]} : vector<8x16xf32> to vector<1x8xf32>
    %336 = tpu.concatenate %328, %329, %330, %331, %332, %333, %334, %335 in 0 : vector<1x8xf32>, vector<1x8xf32>, vector<1x8xf32>, vector<1x8xf32>, vector<1x8xf32>, vector<1x8xf32>, vector<1x8xf32>, vector<1x8xf32> -> vector<8x8xf32>
    %337 = arith.addf %326, %336 : vector<8x8xf32>
    %cst_137 = arith.constant dense<0xFF800000> : vector<8xf32>
    %338 = vector.multi_reduction <maximumf>, %337, %cst_137 [1] : vector<8x8xf32> to vector<8xf32>
    %339 = vector.shape_cast %338 : vector<8xf32> to vector<8x1xf32>
    %340 = vector.broadcast %339 : vector<8x1xf32> to vector<8x8xf32>
    %341 = arith.subf %337, %340 : vector<8x8xf32>
    %342 = math.exp %341 : vector<8x8xf32>
    %cst_138 = arith.constant dense<0.000000e+00> : vector<8xf32>
    %343 = vector.multi_reduction <add>, %342, %cst_138 [1] : vector<8x8xf32> to vector<8xf32>
    %344 = vector.shape_cast %343 : vector<8xf32> to vector<8x1xf32>
    %345 = tpu.reciprocal %344 {approx = true} : vector<8x1xf32> -> vector<8x1xf32>
    %346 = vector.broadcast %345 : vector<8x1xf32> to vector<8x8xf32>
    %347 = arith.mulf %342, %346 : vector<8x8xf32>
    %cst_139 = arith.constant dense<0.000000e+00> : vector<8x8xf32>
    %348 = tpu.matmul %347, %324, %cst_139 {dimension_numbers = #tpu.dot_dimension_numbers<[1], [0], [0], [1], [0, 0, 1, 1], [], []>} : vector<8x8xf32>, vector<8x8xf32>, vector<8x8xf32> -> vector<8x8xf32>
    %349 = vector.extract_strided_slice %292 {offsets = [0, 16], sizes = [8, 8], strides = [1, 1]} : vector<8x32xf32> to vector<8x8xf32>
    %350 = vector.extract_strided_slice %293 {offsets = [0, 16], sizes = [8, 8], strides = [1, 1]} : vector<8x32xf32> to vector<8x8xf32>
    %351 = vector.extract_strided_slice %294 {offsets = [0, 16], sizes = [8, 8], strides = [1, 1]} : vector<8x32xf32> to vector<8x8xf32>
    %352 = tpu.transpose %350, [1, 0] : vector<8x8xf32> -> vector<8x8xf32>
    %cst_140 = arith.constant dense<0.000000e+00> : vector<8x8xf32>
    %353 = tpu.matmul %349, %352, %cst_140 {dimension_numbers = #tpu.dot_dimension_numbers<[1], [0], [0], [1], [0, 0, 1, 1], [], []>} : vector<8x8xf32>, vector<8x8xf32>, vector<8x8xf32> -> vector<8x8xf32>
    %cst_141 = arith.constant dense<0.000000e+00> : vector<8x16xf32>
    %354 = tpu.matmul %349, %36, %cst_141 {dimension_numbers = #tpu.dot_dimension_numbers<[1], [0], [0], [1], [0, 0, 1, 1], [], []>} : vector<8x8xf32>, vector<8x16xf32>, vector<8x16xf32> -> vector<8x16xf32>
    %355 = vector.extract_strided_slice %354 {offsets = [0, 7], sizes = [1, 8], strides = [1, 1]} : vector<8x16xf32> to vector<1x8xf32>
    %356 = vector.extract_strided_slice %354 {offsets = [1, 6], sizes = [1, 8], strides = [1, 1]} : vector<8x16xf32> to vector<1x8xf32>
    %357 = vector.extract_strided_slice %354 {offsets = [2, 5], sizes = [1, 8], strides = [1, 1]} : vector<8x16xf32> to vector<1x8xf32>
    %358 = vector.extract_strided_slice %354 {offsets = [3, 4], sizes = [1, 8], strides = [1, 1]} : vector<8x16xf32> to vector<1x8xf32>
    %359 = vector.extract_strided_slice %354 {offsets = [4, 3], sizes = [1, 8], strides = [1, 1]} : vector<8x16xf32> to vector<1x8xf32>
    %360 = vector.extract_strided_slice %354 {offsets = [5, 2], sizes = [1, 8], strides = [1, 1]} : vector<8x16xf32> to vector<1x8xf32>
    %361 = vector.extract_strided_slice %354 {offsets = [6, 1], sizes = [1, 8], strides = [1, 1]} : vector<8x16xf32> to vector<1x8xf32>
    %362 = vector.extract_strided_slice %354 {offsets = [7, 0], sizes = [1, 8], strides = [1, 1]} : vector<8x16xf32> to vector<1x8xf32>
    %363 = tpu.concatenate %355, %356, %357, %358, %359, %360, %361, %362 in 0 : vector<1x8xf32>, vector<1x8xf32>, vector<1x8xf32>, vector<1x8xf32>, vector<1x8xf32>, vector<1x8xf32>, vector<1x8xf32>, vector<1x8xf32> -> vector<8x8xf32>
    %364 = arith.addf %353, %363 : vector<8x8xf32>
    %cst_142 = arith.constant dense<0xFF800000> : vector<8xf32>
    %365 = vector.multi_reduction <maximumf>, %364, %cst_142 [1] : vector<8x8xf32> to vector<8xf32>
    %366 = vector.shape_cast %365 : vector<8xf32> to vector<8x1xf32>
    %367 = vector.broadcast %366 : vector<8x1xf32> to vector<8x8xf32>
    %368 = arith.subf %364, %367 : vector<8x8xf32>
    %369 = math.exp %368 : vector<8x8xf32>
    %cst_143 = arith.constant dense<0.000000e+00> : vector<8xf32>
    %370 = vector.multi_reduction <add>, %369, %cst_143 [1] : vector<8x8xf32> to vector<8xf32>
    %371 = vector.shape_cast %370 : vector<8xf32> to vector<8x1xf32>
    %372 = tpu.reciprocal %371 {approx = true} : vector<8x1xf32> -> vector<8x1xf32>
    %373 = vector.broadcast %372 : vector<8x1xf32> to vector<8x8xf32>
    %374 = arith.mulf %369, %373 : vector<8x8xf32>
    %cst_144 = arith.constant dense<0.000000e+00> : vector<8x8xf32>
    %375 = tpu.matmul %374, %351, %cst_144 {dimension_numbers = #tpu.dot_dimension_numbers<[1], [0], [0], [1], [0, 0, 1, 1], [], []>} : vector<8x8xf32>, vector<8x8xf32>, vector<8x8xf32> -> vector<8x8xf32>
    %376 = vector.extract_strided_slice %292 {offsets = [0, 24], sizes = [8, 8], strides = [1, 1]} : vector<8x32xf32> to vector<8x8xf32>
    %377 = vector.extract_strided_slice %293 {offsets = [0, 24], sizes = [8, 8], strides = [1, 1]} : vector<8x32xf32> to vector<8x8xf32>
    %378 = vector.extract_strided_slice %294 {offsets = [0, 24], sizes = [8, 8], strides = [1, 1]} : vector<8x32xf32> to vector<8x8xf32>
    %379 = tpu.transpose %377, [1, 0] : vector<8x8xf32> -> vector<8x8xf32>
    %cst_145 = arith.constant dense<0.000000e+00> : vector<8x8xf32>
    %380 = tpu.matmul %376, %379, %cst_145 {dimension_numbers = #tpu.dot_dimension_numbers<[1], [0], [0], [1], [0, 0, 1, 1], [], []>} : vector<8x8xf32>, vector<8x8xf32>, vector<8x8xf32> -> vector<8x8xf32>
    %cst_146 = arith.constant dense<0.000000e+00> : vector<8x16xf32>
    %381 = tpu.matmul %376, %36, %cst_146 {dimension_numbers = #tpu.dot_dimension_numbers<[1], [0], [0], [1], [0, 0, 1, 1], [], []>} : vector<8x8xf32>, vector<8x16xf32>, vector<8x16xf32> -> vector<8x16xf32>
    %382 = vector.extract_strided_slice %381 {offsets = [0, 7], sizes = [1, 8], strides = [1, 1]} : vector<8x16xf32> to vector<1x8xf32>
    %383 = vector.extract_strided_slice %381 {offsets = [1, 6], sizes = [1, 8], strides = [1, 1]} : vector<8x16xf32> to vector<1x8xf32>
    %384 = vector.extract_strided_slice %381 {offsets = [2, 5], sizes = [1, 8], strides = [1, 1]} : vector<8x16xf32> to vector<1x8xf32>
    %385 = vector.extract_strided_slice %381 {offsets = [3, 4], sizes = [1, 8], strides = [1, 1]} : vector<8x16xf32> to vector<1x8xf32>
    %386 = vector.extract_strided_slice %381 {offsets = [4, 3], sizes = [1, 8], strides = [1, 1]} : vector<8x16xf32> to vector<1x8xf32>
    %387 = vector.extract_strided_slice %381 {offsets = [5, 2], sizes = [1, 8], strides = [1, 1]} : vector<8x16xf32> to vector<1x8xf32>
    %388 = vector.extract_strided_slice %381 {offsets = [6, 1], sizes = [1, 8], strides = [1, 1]} : vector<8x16xf32> to vector<1x8xf32>
    %389 = vector.extract_strided_slice %381 {offsets = [7, 0], sizes = [1, 8], strides = [1, 1]} : vector<8x16xf32> to vector<1x8xf32>
    %390 = tpu.concatenate %382, %383, %384, %385, %386, %387, %388, %389 in 0 : vector<1x8xf32>, vector<1x8xf32>, vector<1x8xf32>, vector<1x8xf32>, vector<1x8xf32>, vector<1x8xf32>, vector<1x8xf32>, vector<1x8xf32> -> vector<8x8xf32>
    %391 = arith.addf %380, %390 : vector<8x8xf32>
    %cst_147 = arith.constant dense<0xFF800000> : vector<8xf32>
    %392 = vector.multi_reduction <maximumf>, %391, %cst_147 [1] : vector<8x8xf32> to vector<8xf32>
    %393 = vector.shape_cast %392 : vector<8xf32> to vector<8x1xf32>
    %394 = vector.broadcast %393 : vector<8x1xf32> to vector<8x8xf32>
    %395 = arith.subf %391, %394 : vector<8x8xf32>
    %396 = math.exp %395 : vector<8x8xf32>
    %cst_148 = arith.constant dense<0.000000e+00> : vector<8xf32>
    %397 = vector.multi_reduction <add>, %396, %cst_148 [1] : vector<8x8xf32> to vector<8xf32>
    %398 = vector.shape_cast %397 : vector<8xf32> to vector<8x1xf32>
    %399 = tpu.reciprocal %398 {approx = true} : vector<8x1xf32> -> vector<8x1xf32>
    %400 = vector.broadcast %399 : vector<8x1xf32> to vector<8x8xf32>
    %401 = arith.mulf %396, %400 : vector<8x8xf32>
    %cst_149 = arith.constant dense<0.000000e+00> : vector<8x8xf32>
    %402 = tpu.matmul %401, %378, %cst_149 {dimension_numbers = #tpu.dot_dimension_numbers<[1], [0], [0], [1], [0, 0, 1, 1], [], []>} : vector<8x8xf32>, vector<8x8xf32>, vector<8x8xf32> -> vector<8x8xf32>
    %403 = tpu.concatenate %321, %348, %375, %402 in 1 : vector<8x8xf32>, vector<8x8xf32>, vector<8x8xf32>, vector<8x8xf32> -> vector<8x32xf32>
    %c1_150 = arith.constant 1 : index
    %c0_151 = arith.constant 0 : index
    %c0_152 = arith.constant 0 : index
    %404 = vector.load %arg18[%c1_150, %c0_151, %c0_152] : memref<2x32x32xf32, #tpu.memory_space<vmem>>, vector<1x32x32xf32>
    %405 = vector.shape_cast %404 : vector<1x32x32xf32> to vector<32x32xf32>
    %cst_153 = arith.constant dense<0.000000e+00> : vector<8x32xf32>
    %406 = tpu.matmul %403, %405, %cst_153 {dimension_numbers = #tpu.dot_dimension_numbers<[1], [0], [0], [1], [0, 0, 1, 1], [], []>} : vector<8x32xf32>, vector<32x32xf32>, vector<8x32xf32> -> vector<8x32xf32>
    %c1_154 = arith.constant 1 : index
    %c0_155 = arith.constant 0 : index
    %c0_156 = arith.constant 0 : index
    %407 = vector.load %arg19[%c1_154, %c0_155, %c0_156] : memref<2x1x32xf32, #tpu.memory_space<vmem>>, vector<1x1x32xf32>
    %408 = vector.shape_cast %407 : vector<1x1x32xf32> to vector<1x32xf32>
    %409 = vector.broadcast %408 : vector<1x32xf32> to vector<8x32xf32>
    %410 = arith.addf %406, %409 : vector<8x32xf32>
    %411 = arith.addf %410, %256 : vector<8x32xf32>
    %c1_157 = arith.constant 1 : index
    %c0_158 = arith.constant 0 : index
    %c0_159 = arith.constant 0 : index
    %412 = vector.load %arg26[%c1_157, %c0_158, %c0_159] : memref<2x1x32xf32, #tpu.memory_space<vmem>>, vector<1x1x32xf32>
    %413 = vector.shape_cast %412 : vector<1x1x32xf32> to vector<1x32xf32>
    %c1_160 = arith.constant 1 : index
    %c0_161 = arith.constant 0 : index
    %c0_162 = arith.constant 0 : index
    %414 = vector.load %arg27[%c1_160, %c0_161, %c0_162] : memref<2x1x32xf32, #tpu.memory_space<vmem>>, vector<1x1x32xf32>
    %415 = vector.shape_cast %414 : vector<1x1x32xf32> to vector<1x32xf32>
    %cst_163 = arith.constant dense<0.000000e+00> : vector<8xf32>
    %416 = vector.multi_reduction <add>, %411, %cst_163 [1] : vector<8x32xf32> to vector<8xf32>
    %417 = vector.shape_cast %416 : vector<8xf32> to vector<8x1xf32>
    %cst_164 = arith.constant 3.200000e+01 : f32
    %418 = vector.broadcast %cst_164 : f32 to vector<8x1xf32>
    %419 = arith.divf %417, %418 : vector<8x1xf32>
    %420 = vector.broadcast %419 : vector<8x1xf32> to vector<8x32xf32>
    %421 = arith.subf %411, %420 : vector<8x32xf32>
    %422 = arith.mulf %421, %421 : vector<8x32xf32>
    %cst_165 = arith.constant dense<0.000000e+00> : vector<8xf32>
    %423 = vector.multi_reduction <add>, %422, %cst_165 [1] : vector<8x32xf32> to vector<8xf32>
    %424 = vector.shape_cast %423 : vector<8xf32> to vector<8x1xf32>
    %cst_166 = arith.constant 3.200000e+01 : f32
    %425 = vector.broadcast %cst_166 : f32 to vector<8x1xf32>
    %426 = arith.divf %424, %425 : vector<8x1xf32>
    %427 = vector.broadcast %419 : vector<8x1xf32> to vector<8x32xf32>
    %428 = arith.subf %411, %427 : vector<8x32xf32>
    %cst_167 = arith.constant 9.99999974E-6 : f32
    %429 = vector.broadcast %cst_167 : f32 to vector<8x1xf32>
    %430 = arith.addf %426, %429 : vector<8x1xf32>
    %431 = math.rsqrt %430 : vector<8x1xf32>
    %432 = vector.broadcast %431 : vector<8x1xf32> to vector<8x32xf32>
    %433 = arith.mulf %428, %432 : vector<8x32xf32>
    %434 = vector.broadcast %413 : vector<1x32xf32> to vector<8x32xf32>
    %435 = arith.mulf %433, %434 : vector<8x32xf32>
    %436 = vector.broadcast %415 : vector<1x32xf32> to vector<8x32xf32>
    %437 = arith.addf %435, %436 : vector<8x32xf32>
    %c1_168 = arith.constant 1 : index
    %c0_169 = arith.constant 0 : index
    %c0_170 = arith.constant 0 : index
    %438 = vector.load %arg22[%c1_168, %c0_169, %c0_170] : memref<2x32x64xf32, #tpu.memory_space<vmem>>, vector<1x32x64xf32>
    %439 = vector.shape_cast %438 : vector<1x32x64xf32> to vector<32x64xf32>
    %cst_171 = arith.constant dense<0.000000e+00> : vector<8x64xf32>
    %440 = tpu.matmul %437, %439, %cst_171 {dimension_numbers = #tpu.dot_dimension_numbers<[1], [0], [0], [1], [0, 0, 1, 1], [], []>} : vector<8x32xf32>, vector<32x64xf32>, vector<8x64xf32> -> vector<8x64xf32>
    %c1_172 = arith.constant 1 : index
    %c0_173 = arith.constant 0 : index
    %c0_174 = arith.constant 0 : index
    %441 = vector.load %arg23[%c1_172, %c0_173, %c0_174] : memref<2x1x64xf32, #tpu.memory_space<vmem>>, vector<1x1x64xf32>
    %442 = vector.shape_cast %441 : vector<1x1x64xf32> to vector<1x64xf32>
    %443 = vector.broadcast %442 : vector<1x64xf32> to vector<8x64xf32>
    %444 = arith.addf %440, %443 : vector<8x64xf32>
    %cst_175 = arith.constant 0.000000e+00 : f32
    %445 = vector.broadcast %cst_175 : f32 to vector<8x64xf32>
    %446 = arith.maximumf %444, %445 : vector<8x64xf32>
    %c1_176 = arith.constant 1 : index
    %c0_177 = arith.constant 0 : index
    %c0_178 = arith.constant 0 : index
    %447 = vector.load %arg24[%c1_176, %c0_177, %c0_178] : memref<2x64x32xf32, #tpu.memory_space<vmem>>, vector<1x64x32xf32>
    %448 = vector.shape_cast %447 : vector<1x64x32xf32> to vector<64x32xf32>
    %cst_179 = arith.constant dense<0.000000e+00> : vector<8x32xf32>
    %449 = tpu.matmul %446, %448, %cst_179 {dimension_numbers = #tpu.dot_dimension_numbers<[1], [0], [0], [1], [0, 0, 1, 1], [], []>} : vector<8x64xf32>, vector<64x32xf32>, vector<8x32xf32> -> vector<8x32xf32>
    %c1_180 = arith.constant 1 : index
    %c0_181 = arith.constant 0 : index
    %c0_182 = arith.constant 0 : index
    %450 = vector.load %arg25[%c1_180, %c0_181, %c0_182] : memref<2x1x32xf32, #tpu.memory_space<vmem>>, vector<1x1x32xf32>
    %451 = vector.shape_cast %450 : vector<1x1x32xf32> to vector<1x32xf32>
    %452 = vector.broadcast %451 : vector<1x32xf32> to vector<8x32xf32>
    %453 = arith.addf %449, %452 : vector<8x32xf32>
    %454 = arith.addf %453, %411 : vector<8x32xf32>
    %c0_183 = arith.constant 0 : index
    %c0_184 = arith.constant 0 : index
    %455 = vector.load %arg28[%c0_183, %c0_184] : memref<1x32xf32, #tpu.memory_space<vmem>>, vector<1x32xf32>
    %c0_185 = arith.constant 0 : index
    %c0_186 = arith.constant 0 : index
    %456 = vector.load %arg29[%c0_185, %c0_186] : memref<1x32xf32, #tpu.memory_space<vmem>>, vector<1x32xf32>
    %cst_187 = arith.constant dense<0.000000e+00> : vector<8xf32>
    %457 = vector.multi_reduction <add>, %454, %cst_187 [1] : vector<8x32xf32> to vector<8xf32>
    %458 = vector.shape_cast %457 : vector<8xf32> to vector<8x1xf32>
    %cst_188 = arith.constant 3.200000e+01 : f32
    %459 = vector.broadcast %cst_188 : f32 to vector<8x1xf32>
    %460 = arith.divf %458, %459 : vector<8x1xf32>
    %461 = vector.broadcast %460 : vector<8x1xf32> to vector<8x32xf32>
    %462 = arith.subf %454, %461 : vector<8x32xf32>
    %463 = arith.mulf %462, %462 : vector<8x32xf32>
    %cst_189 = arith.constant dense<0.000000e+00> : vector<8xf32>
    %464 = vector.multi_reduction <add>, %463, %cst_189 [1] : vector<8x32xf32> to vector<8xf32>
    %465 = vector.shape_cast %464 : vector<8xf32> to vector<8x1xf32>
    %cst_190 = arith.constant 3.200000e+01 : f32
    %466 = vector.broadcast %cst_190 : f32 to vector<8x1xf32>
    %467 = arith.divf %465, %466 : vector<8x1xf32>
    %468 = vector.broadcast %460 : vector<8x1xf32> to vector<8x32xf32>
    %469 = arith.subf %454, %468 : vector<8x32xf32>
    %cst_191 = arith.constant 9.99999974E-6 : f32
    %470 = vector.broadcast %cst_191 : f32 to vector<8x1xf32>
    %471 = arith.addf %467, %470 : vector<8x1xf32>
    %472 = math.rsqrt %471 : vector<8x1xf32>
    %473 = vector.broadcast %472 : vector<8x1xf32> to vector<8x32xf32>
    %474 = arith.mulf %469, %473 : vector<8x32xf32>
    %475 = vector.broadcast %455 : vector<1x32xf32> to vector<8x32xf32>
    %476 = arith.mulf %474, %475 : vector<8x32xf32>
    %477 = vector.broadcast %456 : vector<1x32xf32> to vector<8x32xf32>
    %478 = arith.addf %476, %477 : vector<8x32xf32>
    %c0_192 = arith.constant 0 : index
    %c0_193 = arith.constant 0 : index
    %479 = vector.load %arg30[%c0_192, %c0_193] : memref<32x32xf32, #tpu.memory_space<vmem>>, vector<32x32xf32>
    %cst_194 = arith.constant dense<0.000000e+00> : vector<8x32xf32>
    %480 = tpu.matmul %478, %479, %cst_194 {dimension_numbers = #tpu.dot_dimension_numbers<[1], [0], [0], [1], [0, 0, 1, 1], [], []>} : vector<8x32xf32>, vector<32x32xf32>, vector<8x32xf32> -> vector<8x32xf32>
    %c0_195 = arith.constant 0 : index
    %c0_196 = arith.constant 0 : index
    %481 = vector.load %arg31[%c0_195, %c0_196] : memref<1x32xf32, #tpu.memory_space<vmem>>, vector<1x32xf32>
    %482 = vector.broadcast %481 : vector<1x32xf32> to vector<8x32xf32>
    %483 = arith.addf %480, %482 : vector<8x32xf32>
    %cst_197 = arith.constant 0.000000e+00 : f32
    %484 = vector.broadcast %cst_197 : f32 to vector<8x32xf32>
    %485 = arith.cmpf oge, %483, %484 : vector<8x32xf32>
    %486 = vector.broadcast %4 : f32 to vector<8x32xf32>
    %487 = arith.mulf %486, %483 : vector<8x32xf32>
    %488 = arith.select %485, %483, %487 : vector<8x32xi1>, vector<8x32xf32>
    %c0_198 = arith.constant 0 : index
    %c0_199 = arith.constant 0 : index
    %489 = vector.load %arg32[%c0_198, %c0_199] : memref<32x128xf32, #tpu.memory_space<vmem>>, vector<32x128xf32>
    %cst_200 = arith.constant dense<0.000000e+00> : vector<8x128xf32>
    %490 = tpu.matmul %488, %489, %cst_200 {dimension_numbers = #tpu.dot_dimension_numbers<[1], [0], [0], [1], [0, 0, 1, 1], [], []>} : vector<8x32xf32>, vector<32x128xf32>, vector<8x128xf32> -> vector<8x128xf32>
    %c0_201 = arith.constant 0 : index
    %c0_202 = arith.constant 0 : index
    %491 = vector.load %arg33[%c0_201, %c0_202] : memref<1x128xf32, #tpu.memory_space<vmem>>, vector<1x128xf32>
    %492 = vector.broadcast %491 : vector<1x128xf32> to vector<8x128xf32>
    %493 = arith.addf %490, %492 : vector<8x128xf32>
    %c0_203 = arith.constant 0 : index
    %c0_204 = arith.constant 0 : index
    %494 = vector.load %arg35[%c0_203, %c0_204] : memref<8x128xf32, #tpu.memory_space<vmem>>, vector<8x128xf32>
    tpu.vector_store %arg35[%c0_203, %c0_204], %493 {strides = array<i32>} : memref<8x128xf32, #tpu.memory_space<vmem>>, vector<8x128xf32>,
    return
  }
  func.func @transform_0(%arg0: i32) -> (i32, i32) {
    %c0_i32 = arith.constant 0 : i32
    %c0_i32_0 = arith.constant 0 : i32
    return %arg0, %c0_i32 : i32, i32
  }
  func.func @transform_1(%arg0: i32) -> (i32, i32) {
    %c0_i32 = arith.constant 0 : i32
    %c0_i32_0 = arith.constant 0 : i32
    %c0_i32_1 = arith.constant 0 : i32
    return %c0_i32, %c0_i32_0 : i32, i32
  }
  func.func @transform_2(%arg0: i32) -> (i32, i32) {
    %c0_i32 = arith.constant 0 : i32
    %c0_i32_0 = arith.constant 0 : i32
    %c0_i32_1 = arith.constant 0 : i32
    return %c0_i32, %c0_i32_0 : i32, i32
  }
  func.func @transform_3(%arg0: i32) -> (i32, i32) {
    %c0_i32 = arith.constant 0 : i32
    %c0_i32_0 = arith.constant 0 : i32
    %c0_i32_1 = arith.constant 0 : i32
    return %c0_i32, %c0_i32_0 : i32, i32
  }
  func.func @transform_4(%arg0: i32) -> (i32, i32) {
    %c0_i32 = arith.constant 0 : i32
    %c0_i32_0 = arith.constant 0 : i32
    %c0_i32_1 = arith.constant 0 : i32
    return %c0_i32, %c0_i32_0 : i32, i32
  }
  func.func @transform_5(%arg0: i32) -> (i32, i32) {
    %c0_i32 = arith.constant 0 : i32
    %c0_i32_0 = arith.constant 0 : i32
    %c0_i32_1 = arith.constant 0 : i32
    return %c0_i32, %c0_i32_0 : i32, i32
  }
  func.func @transform_6(%arg0: i32) -> (i32, i32) {
    %c0_i32 = arith.constant 0 : i32
    %c0_i32_0 = arith.constant 0 : i32
    %c0_i32_1 = arith.constant 0 : i32
    return %c0_i32, %c0_i32_0 : i32, i32
  }
  func.func @transform_7(%arg0: i32) -> (i32, i32) {
    %c0_i32 = arith.constant 0 : i32
    %c0_i32_0 = arith.constant 0 : i32
    %c0_i32_1 = arith.constant 0 : i32
    return %c0_i32, %c0_i32_0 : i32, i32
  }
  func.func @transform_8(%arg0: i32) -> (i32, i32) {
    %c0_i32 = arith.constant 0 : i32
    %c0_i32_0 = arith.constant 0 : i32
    %c0_i32_1 = arith.constant 0 : i32
    return %c0_i32, %c0_i32_0 : i32, i32
  }
  func.func @transform_9(%arg0: i32) -> (i32, i32) {
    %c0_i32 = arith.constant 0 : i32
    %c0_i32_0 = arith.constant 0 : i32
    %c0_i32_1 = arith.constant 0 : i32
    return %c0_i32, %c0_i32_0 : i32, i32
  }
  func.func @transform_10(%arg0: i32) -> (i32, i32) {
    %c0_i32 = arith.constant 0 : i32
    %c0_i32_0 = arith.constant 0 : i32
    %c0_i32_1 = arith.constant 0 : i32
    return %c0_i32, %c0_i32_0 : i32, i32
  }
  func.func @transform_11(%arg0: i32) -> (i32, i32) {
    %c0_i32 = arith.constant 0 : i32
    %c0_i32_0 = arith.constant 0 : i32
    %c0_i32_1 = arith.constant 0 : i32
    return %c0_i32, %c0_i32_0 : i32, i32
  }
  func.func @transform_12(%arg0: i32) -> (i32, i32) {
    %c0_i32 = arith.constant 0 : i32
    %c0_i32_0 = arith.constant 0 : i32
    %c0_i32_1 = arith.constant 0 : i32
    return %c0_i32, %c0_i32_0 : i32, i32
  }
  func.func @transform_13(%arg0: i32) -> (i32, i32) {
    %c0_i32 = arith.constant 0 : i32
    %c0_i32_0 = arith.constant 0 : i32
    %c0_i32_1 = arith.constant 0 : i32
    return %c0_i32, %c0_i32_0 : i32, i32
  }
  func.func @transform_14(%arg0: i32) -> (i32, i32) {
    %c0_i32 = arith.constant 0 : i32
    %c0_i32_0 = arith.constant 0 : i32
    %c0_i32_1 = arith.constant 0 : i32
    return %c0_i32, %c0_i32_0 : i32, i32
  }
  func.func @transform_15(%arg0: i32) -> (i32, i32, i32) {
    %c0_i32 = arith.constant 0 : i32
    %c0_i32_0 = arith.constant 0 : i32
    %c0_i32_1 = arith.constant 0 : i32
    %c0_i32_2 = arith.constant 0 : i32
    return %c0_i32, %c0_i32_0, %c0_i32_1 : i32, i32, i32
  }
  func.func @transform_16(%arg0: i32) -> (i32, i32, i32) {
    %c0_i32 = arith.constant 0 : i32
    %c0_i32_0 = arith.constant 0 : i32
    %c0_i32_1 = arith.constant 0 : i32
    %c0_i32_2 = arith.constant 0 : i32
    return %c0_i32, %c0_i32_0, %c0_i32_1 : i32, i32, i32
  }
  func.func @transform_17(%arg0: i32) -> (i32, i32, i32) {
    %c0_i32 = arith.constant 0 : i32
    %c0_i32_0 = arith.constant 0 : i32
    %c0_i32_1 = arith.constant 0 : i32
    %c0_i32_2 = arith.constant 0 : i32
    return %c0_i32, %c0_i32_0, %c0_i32_1 : i32, i32, i32
  }
  func.func @transform_18(%arg0: i32) -> (i32, i32, i32) {
    %c0_i32 = arith.constant 0 : i32
    %c0_i32_0 = arith.constant 0 : i32
    %c0_i32_1 = arith.constant 0 : i32
    %c0_i32_2 = arith.constant 0 : i32
    return %c0_i32, %c0_i32_0, %c0_i32_1 : i32, i32, i32
  }
  func.func @transform_19(%arg0: i32) -> (i32, i32, i32) {
    %c0_i32 = arith.constant 0 : i32
    %c0_i32_0 = arith.constant 0 : i32
    %c0_i32_1 = arith.constant 0 : i32
    %c0_i32_2 = arith.constant 0 : i32
    return %c0_i32, %c0_i32_0, %c0_i32_1 : i32, i32, i32
  }
  func.func @transform_20(%arg0: i32) -> (i32, i32, i32) {
    %c0_i32 = arith.constant 0 : i32
    %c0_i32_0 = arith.constant 0 : i32
    %c0_i32_1 = arith.constant 0 : i32
    %c0_i32_2 = arith.constant 0 : i32
    return %c0_i32, %c0_i32_0, %c0_i32_1 : i32, i32, i32
  }
  func.func @transform_21(%arg0: i32) -> (i32, i32, i32) {
    %c0_i32 = arith.constant 0 : i32
    %c0_i32_0 = arith.constant 0 : i32
    %c0_i32_1 = arith.constant 0 : i32
    %c0_i32_2 = arith.constant 0 : i32
    return %c0_i32, %c0_i32_0, %c0_i32_1 : i32, i32, i32
  }
  func.func @transform_22(%arg0: i32) -> (i32, i32, i32) {
    %c0_i32 = arith.constant 0 : i32
    %c0_i32_0 = arith.constant 0 : i32
    %c0_i32_1 = arith.constant 0 : i32
    %c0_i32_2 = arith.constant 0 : i32
    return %c0_i32, %c0_i32_0, %c0_i32_1 : i32, i32, i32
  }
  func.func @transform_23(%arg0: i32) -> (i32, i32, i32) {
    %c0_i32 = arith.constant 0 : i32
    %c0_i32_0 = arith.constant 0 : i32
    %c0_i32_1 = arith.constant 0 : i32
    %c0_i32_2 = arith.constant 0 : i32
    return %c0_i32, %c0_i32_0, %c0_i32_1 : i32, i32, i32
  }
  func.func @transform_24(%arg0: i32) -> (i32, i32, i32) {
    %c0_i32 = arith.constant 0 : i32
    %c0_i32_0 = arith.constant 0 : i32
    %c0_i32_1 = arith.constant 0 : i32
    %c0_i32_2 = arith.constant 0 : i32
    return %c0_i32, %c0_i32_0, %c0_i32_1 : i32, i32, i32
  }
  func.func @transform_25(%arg0: i32) -> (i32, i32, i32) {
    %c0_i32 = arith.constant 0 : i32
    %c0_i32_0 = arith.constant 0 : i32
    %c0_i32_1 = arith.constant 0 : i32
    %c0_i32_2 = arith.constant 0 : i32
    return %c0_i32, %c0_i32_0, %c0_i32_1 : i32, i32, i32
  }
  func.func @transform_26(%arg0: i32) -> (i32, i32, i32) {
    %c0_i32 = arith.constant 0 : i32
    %c0_i32_0 = arith.constant 0 : i32
    %c0_i32_1 = arith.constant 0 : i32
    %c0_i32_2 = arith.constant 0 : i32
    return %c0_i32, %c0_i32_0, %c0_i32_1 : i32, i32, i32
  }
  func.func @transform_27(%arg0: i32) -> (i32, i32) {
    %c0_i32 = arith.constant 0 : i32
    %c0_i32_0 = arith.constant 0 : i32
    %c0_i32_1 = arith.constant 0 : i32
    return %c0_i32, %c0_i32_0 : i32, i32
  }
  func.func @transform_28(%arg0: i32) -> (i32, i32) {
    %c0_i32 = arith.constant 0 : i32
    %c0_i32_0 = arith.constant 0 : i32
    %c0_i32_1 = arith.constant 0 : i32
    return %c0_i32, %c0_i32_0 : i32, i32
  }
  func.func @transform_29(%arg0: i32) -> (i32, i32) {
    %c0_i32 = arith.constant 0 : i32
    %c0_i32_0 = arith.constant 0 : i32
    %c0_i32_1 = arith.constant 0 : i32
    return %c0_i32, %c0_i32_0 : i32, i32
  }
  func.func @transform_30(%arg0: i32) -> (i32, i32) {
    %c0_i32 = arith.constant 0 : i32
    %c0_i32_0 = arith.constant 0 : i32
    %c0_i32_1 = arith.constant 0 : i32
    return %c0_i32, %c0_i32_0 : i32, i32
  }
  func.func @transform_31(%arg0: i32) -> (i32, i32) {
    %c0_i32 = arith.constant 0 : i32
    %c0_i32_0 = arith.constant 0 : i32
    %c0_i32_1 = arith.constant 0 : i32
    return %c0_i32, %c0_i32_0 : i32, i32
  }
  func.func @transform_32(%arg0: i32) -> (i32, i32) {
    %c0_i32 = arith.constant 0 : i32
    %c0_i32_0 = arith.constant 0 : i32
    %c0_i32_1 = arith.constant 0 : i32
    return %c0_i32, %c0_i32_0 : i32, i32
  }
  func.func @transform_33(%arg0: i32) -> i32 {
    %c0_i32 = arith.constant 0 : i32
    %c0_i32_0 = arith.constant 0 : i32
    return %c0_i32 : i32
  }
  func.func @transform_34(%arg0: i32) -> (i32, i32) {
    %c0_i32 = arith.constant 0 : i32
    %c0_i32_0 = arith.constant 0 : i32
    return %arg0, %c0_i32 : i32, i32
  }
}

</mosaic_0001>

<bundles_post_ra>
// kernel: _lambda_.1
= control target key start
LH: loop header
LB: loop body
LE: loop exit
PB: predicated region body
PF: predicated region fallthrough
CT: control target
= control target key end

     0   :  { %s5898_s6 = smov 1   ;;  %s5899_s10 = smov 2   ;;  %s6798_s0 = inlined_call_operand.smem [shape: u32[35], index: -1, kind: input, shape index: {}] }
   0x1   :  { %s5968_s5 = sld [smem:[%s6798_s0]]   ;;  %s5900_s14 = smov 3  }
   0x2   :  { %s5973_s9 = sld [smem:[%s6798_s0 + %s5898_s6]]   ;;  %s5901_s18 = smov 4  }
   0x3   :  { %s5978_s13 = sld [smem:[%s6798_s0 + %s5899_s10]]   ;;  %s5902_s22 = smov 5  }
   0x4   :  { %s5983_s17 = sld [smem:[%s6798_s0 + %s5900_s14]]   ;;  %s5903_s26 = smov 6  }
   0x5   :  { %s5988_s21 = sld [smem:[%s6798_s0 + %s5901_s18]]   ;;  %s5904_s30 = smov 7  }
   0x6   :  { %s5993_s25 = sld [smem:[%s6798_s0 + %s5902_s22]]   ;;  %s5905_s4 = smov 8  }
   0x7   :  { %6851 = sst [smem:[#allocation8_spill]] %s5968_s5  ;;  %s5906_s10 = smov 9  }
   0x8   :  { %6852 = sst [smem:[#allocation9_spill]] %s5973_s9  ;;  %s5907_s15 = smov 10  }
   0x9   :  { %6853 = sst [smem:[#allocation10_spill]] %s5978_s13  ;;  %s5908_s20 = smov 11  }
   0xa   :  { %6854 = sst [smem:[#allocation11_spill]] %s5983_s17  ;;  %s5910_s1 = smov 13  }
   0xb   :  { %6855 = sst [smem:[#allocation12_spill]] %s5988_s21  ;;  %s5911_s7 = smov 14  }
   0xc   :  { %6856 = sst [smem:[#allocation13_spill]] %s5993_s25  ;;  %s5913_s22 = smov 16  }
   0xd   :  { %s5998_s29 = sld [smem:[%s6798_s0 + %s5903_s26]]   ;;  %s5909_s26 = smov 12  }
   0xe   :  { %s6003_s3 = sld [smem:[%s6798_s0 + %s5904_s30]]   ;;  %s5914_s28 = smov 17  }
   0xf   :  { %s6008_s8 = sld [smem:[%s6798_s0 + %s5905_s4]]  }
  0x10   :  { %s6013_s14 = sld [smem:[%s6798_s0 + %s5906_s10]]  }
  0x11   :  { %s6018_s19 = sld [smem:[%s6798_s0 + %s5907_s15]]   ;;  %s5912_s15 = smov 15  }
  0x12   :  { %s6023_s24 = sld [smem:[%s6798_s0 + %s5908_s20]]  }
  0x13   :  { %6857 = sst [smem:[#allocation14_spill]] %s5998_s29 }
  0x14   :  { %6858 = sst [smem:[#allocation15_spill]] %s6003_s3 }
  0x15   :  { %6859 = sst [smem:[#allocation16_spill]] %s6008_s8 }
  0x16   :  { %6860 = sst [smem:[#allocation17_spill]] %s6013_s14 }
  0x17   :  { %6861 = sst [smem:[#allocation18_spill]] %s6018_s19 }
  0x18   :  { %6862 = sst [smem:[#allocation19_spill]] %s6023_s24 }
  0x19   :  { %s6028_s30 = sld [smem:[%s6798_s0 + %s5909_s26]]  }
  0x1a   :  { %s6033_s6 = sld [smem:[%s6798_s0 + %s5910_s1]]  }
  0x1b   :  { %s6038_s12 = sld [smem:[%s6798_s0 + %s5911_s7]]   ;;  %s5915_s7 = smov 18  }
  0x1c   :  { %s6043_s20 = sld [smem:[%s6798_s0 + %s5912_s15]]   ;;  %s5916_s15 = smov 19  }
  0x1d   :  { %s6048_s27 = sld [smem:[%s6798_s0 + %s5913_s22]]   ;;  %s5917_s22 = smov 20  }
  0x1e   :  { %s6053_s4 = sld [smem:[%s6798_s0 + %s5914_s28]]   ;;  %s5918_s28 = smov 21  }
  0x1f   :  { %6863 = sst [smem:[#allocation20_spill]] %s6028_s30 }
  0x20   :  { %6864 = sst [smem:[#allocation21_spill]] %s6033_s6 }
  0x21   :  { %6865 = sst [smem:[#allocation22_spill]] %s6038_s12 }
  0x22   :  { %6866 = sst [smem:[#allocation23_spill]] %s6043_s20 }
  0x23   :  { %6867 = sst [smem:[#allocation24_spill]] %s6048_s27 }
  0x24   :  { %6868 = sst [smem:[#allocation25_spill]] %s6053_s4 }
  0x25   :  { %s6058_s19 = sld [smem:[%s6798_s0 + %s5915_s7]]   ;;  %s5919_s7 = smov 22  }
  0x26   :  { %s6063_s20 = sld [smem:[%s6798_s0 + %s5916_s15]]   ;;  %s5920_s15 = smov 23  }
  0x27   :  { %s6068_s27 = sld [smem:[%s6798_s0 + %s5917_s22]]   ;;  %s5921_s22 = smov 24  }
  0x28   :  { %s6073_s4 = sld [smem:[%s6798_s0 + %s5918_s28]]   ;;  %s5922_s28 = smov 25  }
  0x2b   :  { %6869 = sst [smem:[#allocation26_spill]] %s6058_s19 }
  0x2c   :  { %6870 = sst [smem:[#allocation27_spill]] %s6063_s20 }
  0x2d   :  { %6871 = sst [smem:[#allocation28_spill]] %s6068_s27 }
  0x2e   :  { %6872 = sst [smem:[#allocation29_spill]] %s6073_s4 }
  0x2f   :  { %s6078_s19 = sld [smem:[%s6798_s0 + %s5919_s7]]   ;;  %s5923_s7 = smov 26  }
  0x30   :  { %s6083_s20 = sld [smem:[%s6798_s0 + %s5920_s15]]   ;;  %s5924_s15 = smov 27  }
  0x31   :  { %s6088_s27 = sld [smem:[%s6798_s0 + %s5921_s22]]   ;;  %s5925_s22 = smov 28  }
  0x32   :  { %s6093_s4 = sld [smem:[%s6798_s0 + %s5922_s28]]   ;;  %s5926_s28 = smov 29  }
  0x35   :  { %6873 = sst [smem:[#allocation30_spill]] %s6078_s19 }
  0x36   :  { %6874 = sst [smem:[#allocation31_spill]] %s6083_s20 }
  0x37   :  { %6875 = sst [smem:[#allocation32_spill]] %s6088_s27 }
  0x38   :  { %6876 = sst [smem:[#allocation33_spill]] %s6093_s4 }
  0x39   :  { %s6098_s19 = sld [smem:[%s6798_s0 + %s5923_s7]]   ;;  %s5927_s7 = smov 30  }
  0x3a   :  { %s6103_s20 = sld [smem:[%s6798_s0 + %s5924_s15]]   ;;  %s5928_s15 = smov 31  }
  0x3b   :  { %s6108_s27 = sld [smem:[%s6798_s0 + %s5925_s22]]   ;;  %s5929_s22 = smov 32  }
  0x3c   :  { %s6113_s4 = sld [smem:[%s6798_s0 + %s5926_s28]]   ;;  %s5930_s28 = smov 33  }
  0x3f   :  { %6877 = sst [smem:[#allocation34_spill]] %s6098_s19 }
  0x40   :  { %6878 = sst [smem:[#allocation35_spill]] %s6103_s20 }
  0x41   :  { %6879 = sst [smem:[#allocation36_spill]] %s6108_s27 }
  0x42   :  { %6880 = sst [smem:[#allocation37_spill]] %s6113_s4 }
  0x43   :  { %s6118_s19 = sld [smem:[%s6798_s0 + %s5927_s7]]   ;;  %s5931_s7 = smov 34  }
  0x44   :  { %s6123_s20 = sld [smem:[%s6798_s0 + %s5928_s15]]  }
  0x45   :  { %s6128_s27 = sld [smem:[%s6798_s0 + %s5929_s22]]  }
  0x46   :  { %s6133_s4 = sld [smem:[%s6798_s0 + %s5930_s28]]  }
  0x49   :  { %6881 = sst [smem:[#allocation38_spill]] %s6118_s19 }
  0x4a   :  { %s6138_s19 = sld [smem:[%s6798_s0 + %s5931_s7]]  }
  0x4c   :  { %6882 = sst [smem:[#allocation39_spill]] %s6133_s4 }
  0x4d   :  { %74 = vsyncpa [#allocation4], 0 }
  0x4e   :  { %75 = vsyncpa [#allocation3], 0 }
  0x4f   :  { %77 = vsyncpa [#allocation3 + $0x1], 0  ;;  %s6140_s15 = smov 0   ;;  %s6142_s16 = smov 0  }
  0x50   :  { %s6144_s18 = smov 0   ;;  %s6146_s22 = smov 0  }
  0x51 LB: > { %s6883_s25 = sld [smem:[#allocation13_spill]]  ;;  %s6884_s24 = sld [smem:[#allocation19_spill]]  ;;  %s5884_s15 = sphi %s6140_s15, %s6942_s15   ;;  %s5896_s22 = sphi %s6146_s22, %s6945_s22   ;;  %s5892_s18 = sphi %s6144_s18, %s6944_s18   ;;  %s5888_s16 = sphi %s6142_s16, %s6943_s16  }
  0x52   : > { %s6885_s8 = sld [smem:[#allocation16_spill]]  ;;  %s6886_s6 = sld [smem:[#allocation21_spill]] }
  0x53   : > { %s6887_s3 = sld [smem:[#allocation15_spill]]  ;;  %s6161_s0 = sadd.s32 4294967295, %s5896_s22  }
  0x54   : > { %s4957_s23 = sadd.s32 4294967294, %s5896_s22   ;;  %s6888_s4 = sld [smem:[#allocation39_spill]] }
  0x55   : > { %s6165_s26 = sadd.s32 1, %s5896_s22   ;;  %s809_s28 = sadd.s32 1, %s5892_s18 }
  0x56   : > { %s806_s1 = ssub.s32 %s5896_s22, %s6165_s26  ;;  %p819_p0 = scmp.ne.s32.totalorder %s5892_s18, %s5888_s16 }
  0x57   : > { %p807_p1 = scmp.eq.s32.totalorder %s806_s1, 0  ;;  %p820_p2 = scmp.eq.s32.totalorder %s6161_s0, 1 }
  0x58   : > { %p825_p3 = scmp.ne.s32.totalorder %s5888_s16, %s5884_s15  ;;  %p826_p4 = scmp.eq.s32.totalorder %s4957_s23, 1 }
  0x59   : > { %s6176_s2 = scalar_select %p807_p1, %s5892_s18, %s809_s28  }
  0x5a   : > { %p6178_p5 = por %p820_p2, %p819_p0  ;;  %p6182_p6 = por %p826_p4, %p825_p3 }
  0x5b   : > { %p4958_p7 = scmp.ge.s32.totalorder %s5896_s22, 1  ;;  %p833_p8 = scmp.lt.s32.totalorder %s5896_s22, 3 }
  0x5c   : > { %s6889_s7 = scalar_select %p6178_p5, 1, 0 }
  0x5d   : > { %s6890_s10 = scalar_select %p6182_p6, 1, 0 }
  0x5e   : > { %p5675_p9 = scmp.eq.s32.totalorder %s6161_s0, 0  ;;  %p6189_p10 = pnand %p4958_p7, %p833_p8 }
  0x5f   : > { %s942_s1 = sshll.u32 %s6888_s4, 4  ;;  %s943_s1 = int_to_ptr.vmem [resolvable:$true] %s942_s1 }
  0x60   : > { %p5667_p11 = pneg %p6189_p10  ;;  %s5815_s23 = scalar_lea.vmem %s943_s1, 16 }
  0x61   : > { %p5816_p13 = scmp.ne.s32.totalorder %s943_s1, %s5815_s23  ;;  %p5823_p3 = scmp.lt.s32.totalorder %s943_s1, %s943_s1 }
  0x62   : > { %p5668_p12 = pnand %p5675_p9, %p5667_p11  ;;  %p5824_p4 = scmp.lt.s32.totalorder %s5815_s23, %s5815_s23 }
  0x64   : > { %p5817_p0 = pneg %p5668_p12  ;;  %p5825_p6 = por %p5824_p4, %p5823_p3 }
  0x66   : > { %p5818_p1 = pnand %p5817_p0, %p5816_p13 }
  0x68   : > { %p5819_p2 = pneg %p5818_p1 }
  0x6a   : > { %p5826_p5 = pnand %p5825_p6, %p5819_p2 }
  0x6c   : > { %5829 = shalt.err (!%p5826_p5)
}
  0x6d   : > { %s5932_s28 = smov [#allocation2]   ;;  %962 = sbr.rel (%p6189_p10) target bundleno = 9941 (0x26d5), region = 156 }
  0x6e   : > { %5670 = dma.vmem_to_smem (!%p5668_p12), %s943_s1, 16, %s5932_s28, [#allocation4]  }
  0x74   : > { %5875 = dma.done.wait (%p5675_p9), [#allocation4], 16  }
  0x75   : > { %5877 = vsyncadd (%p5675_p9), [#allocation4], 4294967280 }
  0x76   : > { %968 = sfence }
  0x77   : > { %s6892_s17 = sld [smem:[#allocation11_spill]]  ;;  %s6893_s9 = sld [smem:[#allocation9_spill]]  ;;  %vm1066_vm0 = vcmask 64512   ;;  %v5933_v2 = vmov 0.0   ;;  %vm5934_vm1 = vmmov 0   ;;  %v1144_v3 = vld [vmem:[%s6883_s25] sm:$0xff] }
  0x78   : > { %5220 = vmatprep.subr.mxu0 %v5933_v2  ;;  %5222 = vmatprep.mubr.msk.f32.mxu0 %vm5934_vm1, %v5933_v2  ;;  %s6894_s13 = sld [smem:[#allocation10_spill]]  ;;  %v1145_v4 = vld [vmem:[%s6883_s25 + $0x8] sm:$0xff]  ;;  %v5935_v5 = vmov 0.0|0.0   ;;  %v1146_v7 = vld [vmem:[%s6883_s25 + $0x10] sm:$0xff]  ;;  %v1147_v8 = vld [vmem:[%s6883_s25 + $0x18] sm:$0xff]  ;;  %s6895_s21 = sld [smem:[#allocation12_spill]] }
  0x79   : > { %5547 = vmatprep.subr.bf16.mxu1 %v5935_v5  ;;  %v5548_v6 = vpack.c.bf16 %v1145_v4, %v1144_v3  ;;  %5233 = vmatprep.mubr.msk.f32.mxu1 %vm5934_vm1, %v5933_v2  ;;  %v5551_v9 = vpack.c.bf16 %v1147_v8, %v1146_v7  ;;  %v1229_v11 = vld [vmem:[%s6887_s3] sm:$0xff]  ;;  %v1230_v12 = vld [vmem:[%s6887_s3 + $0x8] sm:$0xff]  ;;  %v1231_v13 = vld [vmem:[%s6887_s3 + $0x10] sm:$0xff]  ;;  %v5936_v17 = vmov 0   ;;  %s1052_s11 = sld [smem:[#allocation2]]  ;;  %vm1155_vm3 = vcmask 261120  }
  0x7a   : > { %v1232_v14 = vld [vmem:[%s6887_s3 + $0x18] sm:$0xff]  ;;  %v1234_v15 = vld [vmem:[%s6885_s8] sm:$0xff]  ;;  %v1236_v16 = vld [vmem:[%s6885_s8 + $0x10] sm:$0xff]  ;;  %5771 = vset.pattern.permute.xlu0 %v5936_v17  ;;  %5772 = vset.pattern.permute.xlu1 %v5936_v17  ;;  %p1048_p5 = scmp.lt.s32.totalorder %s6161_s0, 1  ;;  %s6896_s5 = sld [smem:[#allocation8_spill]]  ;;  %vm1845_vm10 = vcmask 1040384  }
  0x7b   : > { %5549 = vmatpush3.bf16.msra.mxu1 %v5548_v6  ;;  %1240 = vperm.xlu0 %5771, %v1234_v15   ;;  %v1235_v18 = vld [vmem:[%s6885_s8 + $0x8] sm:$0xff]  ;;  %v1237_v19 = vld [vmem:[%s6885_s8 + $0x18] sm:$0xff]  ;;  %v1449_v23 = vld [vmem:[%s6884_s24] sm:$0xff]  ;;  %s6897_s14 = sld [smem:[#allocation17_spill]]  ;;  %s6898_s30 = sld [smem:[#allocation20_spill]]  ;;  %vm1847_vm11 = vcmask 1041408  }
  0x7c   : > { %5550 = vmatprep.subr.bf16.mxu1 %v5935_v5  ;;  %1250 = vperm.xlu1 %5772, %v1236_v16   ;;  %v1450_v24 = vld [vmem:[%s6884_s24 + $0x8] sm:$0xff]  ;;  %v1451_v29 = vld [vmem:[%s6884_s24 + $0x10] sm:$0xff]  ;;  %v1452_v30 = vld [vmem:[%s6884_s24 + $0x18] sm:$0xff]  ;;  %s1049_s1 = scalar_select %p1048_p5, %s6161_s0, 1  ;;  %vm1849_vm12 = vcmask 1042432   ;;  %vm1851_vm13 = vcmask 1043456  }
  0x7d   : > { %v1058_v0 = vld [vmem:[%s6892_s17] sm:$0xff]  ;;  %v5560_v28 = vpack.c.bf16 %v1450_v24, %v1449_v23  ;;  %v5563_v32 = vpack.c.bf16 %v1452_v30, %v1451_v29  ;;  %v1454_v34 = vld [vmem:[%s6884_s24 + $0x28] sm:$0xff]  ;;  %v1455_v36 = vld [vmem:[%s6884_s24 + $0x30] sm:$0xff]  ;;  %s6899_s12 = sld [smem:[#allocation22_spill]]  ;;  %s6814_s3 = smov 96   ;;  %vm1853_vm14 = vcmask 1044480  }
  0x7e   : > { %v1057_v1 = vld [vmem:[%s6893_s9] sm:$0xff]  ;;  %5221 = vmatpush3.msra.mxu0 %v1058_v0  ;;  %v1456_v37 = vld [vmem:[%s6884_s24 + $0x38] sm:$0xff]  ;;  %v1458_v40 = vld [vmem:[%s6884_s24 + $0x48] sm:$0xff]  ;;  %s4964_s23 = sshll.u32 %s1049_s1, 3  ;;  %s4966_s1 = sld [smem:[#allocation2 + $0x2]]  ;;  %vm1855_vm15 = vcmask 1045504  }
  0x7f   : > { %5223 = vmatmul.mubr.msk.f32.vlgmr.msra.gmra.mrb[0].mxu0 %vm1066_vm0, %v1057_v1  ;;  %5552 = vmatpush3.bf16.msra.mxu1 %v5551_v9  ;;  %v1233_v10 = vld [vmem:[%s6894_s13] sm:$0xff]  ;;  %v1141_v22 = vstv %s1052_s11  ;;  %v5569_v38 = vpack.c.bf16 %v1456_v37, %v1455_v36  ;;  %v1459_v42 = vld [vmem:[%s6884_s24 + $0x50] sm:$0xff]  ;;  %v1460_v43 = vld [vmem:[%s6884_s24 + $0x58] sm:$0xff]  ;;  %s4965_s11 = sld [smem:[#allocation2 + $0x1]]  ;;  %s6900_s29 = sld [smem:[#allocation14_spill]] }
  0x80   : > { %5559 = vmatprep.subr.bf16.mxu1 %v5935_v5  ;;  %5236 = vmatprep.subr.mxu0 %v1233_v10  ;;  %v4969_v20 = vld [vmem:[%s6895_s21] ss:$0 sm:$0xff]  ;;  %v5575_v44 = vpack.c.bf16 %v1460_v43, %v1459_v42  ;;  %v1462_v46 = vld [vmem:[%s6884_s24 + $0x68] sm:$0xff]  ;;  %v1463_v48 = vld [vmem:[%s6884_s24 + $0x70] sm:$0xff]  ;;  %s1051_s28 = scalar_lea.vmem %s6896_s5, %s4964_s23  ;;  %s6901_s23 = sld [smem:[#allocation18_spill]] }
  0x81   : > { %5238 = vmatprep.mubr.msk.f32.mxu0 %vm1066_vm0, %v1229_v11  ;;  %5237 = vmatpush3.msra.mxu0 %v1233_v10  ;;  %v1453_v33 = vld [vmem:[%s6884_s24 + $0x20] sm:$0xff]  ;;  %v1464_v49 = vld [vmem:[%s6884_s24 + $0x78] sm:$0xff]  ;;  %v1548_v17 = vld [vmem:[%s6886_s6 + $0x10] sm:$0xff]  ;;  %s6840_s4 = smov 1   ;;  %s6831_s5 = smov 4  }
  0x82   : > { %5553 = vmatprep.subr.bf16.mxu0 %v5935_v5  ;;  %1245 = vperm.xlu0 %5771, %v1235_v18   ;;  %v5566_v35 = vpack.c.bf16 %v1454_v34, %v1453_v33  ;;  %v1457_v39 = vld [vmem:[%s6884_s24 + $0x40] sm:$0xff]  ;;  %v5581_v50 = vpack.c.bf16 %v1464_v49, %v1463_v48  ;;  %v1549_v18 = vld [vmem:[%s6886_s6 + $0x18] sm:$0xff]  ;;  %s6820_s8 = smov 6   ;;  %s6834_s9 = smov 5  }
  0x83   : > { %5239 = vmatmul.mubr.msk.f32.vlgmr.msra.gmra.mrb[2].mxu0 %vm1066_vm0, %v1230_v12  ;;  %1255 = vperm.xlu1 %5772, %v1237_v19   ;;  %v5572_v41 = vpack.c.bf16 %v1458_v40, %v1457_v39  ;;  %v1461_v45 = vld [vmem:[%s6884_s24 + $0x60] sm:$0xff]  ;;  %v5587_v19 = vpack.c.bf16 %v1549_v18, %v1548_v17  ;;  %s6910_s13 = smov 7   ;;  %s6838_s17 = smov 48  }
  0x84   : > { %5241 = vmatprep.mubr.msk.f32.mxu0 %vm1066_vm0, %v1231_v13  ;;  %v5578_v47 = vpack.c.bf16 %v1462_v46, %v1461_v45  ;;  %v1448_v51 = vld [vmem:[%s1051_s28] sm:$0xff]  ;;  %v1547_v13 = vld [vmem:[%s6886_s6 + $0x8] sm:$0xff]  ;;  %v1543_v24 = vstv %s4966_s1  ;;  %s4967_s28 = sld [smem:[#allocation2 + $0x3]]  ;;  %s6842_s21 = smov 40  }
  0x85   : > { %v1360_v56 = vstv %s4965_s11  ;;  %v1546_v12 = vld [vmem:[%s6886_s6] sm:$0xff]  ;;  %s6902_s11 = sld [smem:[#allocation23_spill]]  ;;  %s6903_s1 = sld [smem:[#allocation27_spill]] }
  0x86   : > { %v1355_v15 = vld [vmem:[%s6897_s14] sm:$0xff]  ;;  %v5584_v16 = vpack.c.bf16 %v1547_v13, %v1546_v12  ;;  %s6825_s6 = smov 3   ;;  %s6837_s14 = smov 104  }
  0x87   : > { %5242 = vmatmul.mubr.msk.f32.gmra.mrb[4].mxu0 %vm1066_vm0, %v1232_v14  ;;  %v4971_v34 = vld [vmem:[%s6900_s29] ss:$0 sm:$0xff]  ;;  %s6917_s24 = sld [smem:[#allocation33_spill]]  ;;  %s6918_s25 = sld [smem:[#allocation34_spill]] }
  0x88   : > { %5252 = vmatprep.mubr.msk.f32.mxu0 %vm5934_vm1, %v5933_v2  ;;  %v1369_v42 = vld [vmem:[%s6901_s23] sm:$0xff]  ;;  %s6904_s23 = sld [smem:[#allocation28_spill]]  ;;  %s6919_s29 = sld [smem:[#allocation30_spill]] }
  0x89   : > { %p6940_p7 = scmp.ne.s32.totalorder %s6889_s7, 0 }
  0x8a   : > { %v1631_v33 = vstv %s4967_s28  ;;  %s6905_s28 = sld [smem:[#allocation24_spill]] }
  0xfa   : > { %v1241_v52 = vpop.permute.xlu0 %1240 }
  0xfb   : > { %v1251_v53 = vpop.permute.xlu1 %1250 }
 0x101   : > { %v1246_v54 = vpop.permute.xlu0 %1245 }
 0x102   : > { %v1256_v60 = vpop.permute.xlu1 %1255 }
 0x152   : > { %v1136_v21 = vpop.f32.mrb[0].mxu0 }
 0x153   : > { %v1137_v25 = vadd.f32 %v4969_v20, %v1136_v21  ;;  %v5224_v26 = vpop.f32.mrb[1].mxu0 }
 0x155   : > { %vm1140_vm2 = vcmp.ge.f32.partialorder %v1137_v25, 0.0  ;;  %v1142_v27 = vmul.f32 %v1141_v22, %v1137_v25  ;;  %v4978_v22 = vld [vmem:[%s6898_s30] ss:$0 sm:$0xff]  ;;  %s6920_s30 = sld [smem:[#allocation32_spill]] }
 0x156   : > { %v5240_v55 = vpop.f32.mrb[2].mxu0 }
 0x157   : > { %v1143_v31 = vsel %vm1140_vm2, %v1137_v25, %v1142_v27  ;;  %v1342_v57 = vadd.f32 %v5240_v55, %v1246_v54  ;;  %v1336_v58 = vpop.f32.mrb[3].mxu0  ;;  %v1668_v54 = vld [vmem:[%s6902_s11 + $0x18] sm:$0xff]  ;;  %vm1857_vm2 = vcmask 1046528  }
 0x158   : > { %5234 = vmatmul.mubr.msk.f32.vlgmr.msra.gmra.mrb[0].mxu1 %vm1155_vm3, %v1143_v31  ;;  %v1337_v59 = vadd.f32 %v1336_v58, %v1241_v52  ;;  %v4979_v31 = vld [vmem:[%s6899_s12] ss:$0 sm:$0xff]  ;;  %s6827_s12 = smov 7  }
 0x159   : > { %5561 = vmatpush3.bf16.msra.mxu1 %v5560_v28  ;;  %5287 = vmatprep.mubr.msk.f32.mxu1 %vm5934_vm1, %v5933_v2  ;;  %vm1357_vm4 = vcmp.ge.f32.partialorder %v1342_v57, 0.0  ;;  %v1362_v61 = vmul.f32 %v1360_v56, %v1342_v57 }
 0x15a   : > { %5562 = vmatprep.subr.bf16.mxu1 %v5935_v5  ;;  %vm1356_vm5 = vcmp.ge.f32.partialorder %v1337_v59, 0.0  ;;  %v1361_v62 = vmul.f32 %v1360_v56, %v1337_v59  ;;  %v5243_v63 = vpop.f32.mrb[4].mxu0 }
 0x15b   : > { %v1366_v0 = vsel %vm1357_vm4, %v1342_v57, %v1362_v61  ;;  %v1352_v1 = vadd.f32 %v5243_v63, %v1256_v60  ;;  %v1346_v3 = vpop.f32.mrb[5].mxu0  ;;  %v4981_v60 = vld [vmem:[%s6903_s1] ss:$0 sm:$0xff]  ;;  %vm2842_vm4 = vcmask 130048  }
 0x15c   : > { %v1365_v4 = vsel %vm1356_vm5, %v1337_v59, %v1361_v62  ;;  %v1347_v6 = vadd.f32 %v1346_v3, %v1251_v53  ;;  %v1667_v53 = vld [vmem:[%s6902_s11 + $0x10] sm:$0xff]  ;;  %v4982_v62 = vld [vmem:[%s6904_s23] ss:$0 sm:$0xff]  ;;  %vm2844_vm5 = vcmask 195584  }
 0x15d   : > { %5564 = vmatpush3.bf16.msra.mxu1 %v5563_v32  ;;  %v5554_v7 = vpack.c.bf16 %v1366_v0, %v1365_v4  ;;  %vm1359_vm6 = vcmp.ge.f32.partialorder %v1352_v1, 0.0  ;;  %v1364_v8 = vmul.f32 %v1360_v56, %v1352_v1  ;;  %v5593_v55 = vpack.c.bf16 %v1668_v54, %v1667_v53 }
 0x15e   : > { %5565 = vmatprep.subr.bf16.mxu1 %v5935_v5  ;;  %vm1358_vm7 = vcmp.ge.f32.partialorder %v1347_v6, 0.0  ;;  %v1363_v9 = vmul.f32 %v1360_v56, %v1347_v6 }
 0x15f   : > { %v1368_v10 = vsel %vm1359_vm6, %v1352_v1, %v1364_v8  ;;  %5555 = vmatpush3.bf16.msra.mxu0 %v5554_v7  ;;  %v4983_v1 = vld [vmem:[%s6905_s28] ss:$0 sm:$0xff]  ;;  %vm3060_vm6 = vcmask 523264  }
 0x160   : > { %v1367_v11 = vsel %vm1358_vm7, %v1347_v6, %v1363_v9  ;;  %5556 = vmatprep.subr.bf16.mxu0 %v5935_v5 }
 0x161   : > { %5567 = vmatpush3.bf16.msra.mxu1 %v5566_v35  ;;  %v5557_v14 = vpack.c.bf16 %v1368_v10, %v1367_v11 }
 0x162   : > { %5568 = vmatprep.subr.bf16.mxu1 %v5935_v5 }
 0x163   : > { %5558 = vmatpush3.bf16.msra.mxu0 %v5557_v14 }
 0x164   : > { %5583 = vmatprep.subr.bf16.mxu0 %v5935_v5 }
 0x165   : > { %5570 = vmatpush3.bf16.msra.mxu1 %v5569_v38 }
 0x166   : > { %5571 = vmatprep.subr.bf16.mxu1 %v5935_v5  ;;  %5253 = vmatmul.mubr.msk.f32.vlgmr.msra.gmra.mrb[6].mxu0 %vm1155_vm3, %v1355_v15 }
 0x167   : > { %5585 = vmatpush3.bf16.msra.mxu0 %v5584_v16  ;;  %5298 = vmatprep.mubr.msk.f32.mxu0 %vm5934_vm1, %v5933_v2 }
 0x168   : > { %5586 = vmatprep.subr.bf16.mxu0 %v5935_v5 }
 0x169   : > { %5573 = vmatpush3.bf16.msra.mxu1 %v5572_v41 }
 0x16a   : > { %5574 = vmatprep.subr.bf16.mxu1 %v5935_v5 }
 0x16b   : > { %5588 = vmatpush3.bf16.msra.mxu0 %v5587_v19 }
 0x16c   : > { %5589 = vmatprep.subr.bf16.mxu0 %v5935_v5 }
 0x16d   : > { %5576 = vmatpush3.bf16.msra.mxu1 %v5575_v44 }
 0x16e   : > { %5577 = vmatprep.subr.bf16.mxu1 %v5935_v5 }
 0x171   : > { %5579 = vmatpush3.bf16.msra.mxu1 %v5578_v47 }
 0x172   : > { %5580 = vmatprep.subr.bf16.mxu1 %v5935_v5 }
 0x175   : > { %5582 = vmatpush3.bf16.msra.mxu1 %v5581_v50  ;;  %v1665_v50 = vld [vmem:[%s6902_s11] sm:$0xff] }
 0x176   : > { %5327 = vmatprep.subr.mxu1 %v5933_v2 }
 0x178   : > { %5288 = vmatmul.mubr.f32.vlgmr.msra.gmra.mrb[2].mxu1 %v1448_v51  ;;  %v1666_v51 = vld [vmem:[%s6902_s11 + $0x8] sm:$0xff] }
 0x179   : > { %5329 = vmatprep.mubr.msk.f32.mxu1 %vm5934_vm1, %v5933_v2  ;;  %v5590_v52 = vpack.c.bf16 %v1666_v51, %v1665_v50 }
 0x22b   : > { %v1225_v20 = vpop.f32.mrb[0].mxu1 }
 0x22c   : > { %v5235_v21 = vpop.f32.mrb[1].mxu1  ;;  %v1226_v38 = vadd.f32 %v4971_v34, %v1225_v20 }
 0x239   : > { %v1444_v29 = vpop.f32.mrb[6].mxu0 }
 0x23a   : > { %v5254_v30 = vpop.f32.mrb[7].mxu0 }
 0x24b   : > { %v1538_v23 = vpop.f32.mrb[2].mxu1 }
 0x24c   : > { %v1539_v25 = vadd.f32 %v4978_v22, %v1538_v23  ;;  %v5289_v26 = vpop.f32.mrb[3].mxu1 }
 0x24e   : > { %vm1542_vm8 = vcmp.ge.f32.partialorder %v1539_v25, 0.0  ;;  %v1544_v27 = vmul.f32 %v1543_v24, %v1539_v25 }
 0x250   : > { %v1545_v28 = vsel %vm1542_vm8, %v1539_v25, %v1544_v27 }
 0x251   : > { %5299 = vmatmul.mubr.msk.f32.vlgmr.msra.gmra.mrb[8].mxu0 %vm1155_vm3, %v1545_v28 }
 0x252   : > { %5309 = vmatprep.mubr.msk.f32.mxu0 %vm5934_vm1, %v5933_v2  ;;  %5591 = vmatpush3.bf16.msra.mxu0 %v5590_v52 }
 0x253   : > { %5592 = vmatprep.subr.bf16.mxu0 %v5935_v5 }
 0x256   : > { %5594 = vmatpush3.bf16.msra.mxu0 %v5593_v55 }
 0x257   : > { %5312 = vmatprep.subr.mxu0 %v5933_v2 }
 0x324   : > { %v1626_v32 = vpop.f32.mrb[8].mxu0 }
 0x325   : > { %v1627_v35 = vadd.f32 %v4979_v31, %v1626_v32  ;;  %v5300_v36 = vpop.f32.mrb[9].mxu0 }
 0x327   : > { %vm1630_vm9 = vcmp.ge.f32.partialorder %v1627_v35, 0.0  ;;  %v1632_v37 = vmul.f32 %v1631_v33, %v1627_v35 }
 0x329   : > { %v1633_v39 = vsel %vm1630_vm9, %v1627_v35, %v1632_v37 }
 0x32a   : > { %v6286_v40 = vadd.f32 %v1633_v39, %v1226_v38 }
 0x32c   : > { %v1637_v41 = vsel %vm1155_vm3, %v6286_v40, 0.0 }
 0x32d   : > { %1638 = vadd.xlane.f32.xlu0 %v1637_v41 }
 0x343   : > { %1372 = vperm.xlu0 %5771, %v1369_v42  }
 0x3ba   : > { %v1639_v43 = vpop.xlane.xlu0 %1638 }
 0x3bb   : > { %v1641_v44 = vmul.f32 0.03125, %v1639_v43 }
 0x3bd   : > { %v1642_v45 = vsub.f32 %v6286_v40, %v1641_v44 }
 0x3bf   : > { %v1643_v46 = vmul.f32 %v1642_v45, %v1642_v45 }
 0x3c1   : > { %v1644_v47 = vsel %vm1155_vm3, %v1643_v46, 0.0 }
 0x3c2   : > { %1645 = vadd.xlane.f32.xlu1 %v1644_v47  ;;  %v1373_v48 = vpop.permute.xlu0 %1372 }
 0x3c3   : > { %v6293_v49 = vadd.f32 %v1444_v29, %v1373_v48 }
 0x3c5   : > { %5328 = vmatpush3.msra.mxu1 %v6293_v49 }
 0x3c6   : > { %5337 = vmatprep.subr.mxu1 %v5933_v2 }
 0x44f   : > { %v1646_v56 = vpop.xlane.xlu1 %1645 }
 0x450   : > { %v1647_v57 = vmul.f32 0.03125, %v1646_v56 }
 0x452   : > { %v1648_v58 = vadd.f32 1e-05, %v1647_v57 }
 0x454   : > { %5773 = vrsqrt.f32 %v1648_v58 }
 0x45e   : > { %v5774_v59 = vpop.eup %5773 }
 0x45f   : > { %v1650_v61 = vmul.f32 %v5774_v59, %v1642_v45 }
 0x461   : > { %v1657_v63 = vmul.f32 %v4981_v60, %v1650_v61 }
 0x463   : > { %v1664_v0 = vadd.f32 %v4982_v62, %v1657_v63 }
 0x465   : > { %5310 = vmatmul.mubr.msk.f32.vlgmr.msra.gmra.mrb[10].mxu0 %vm1155_vm3, %v1664_v0 }
 0x466   : > { %5313 = vmatpush3.msra.mxu0 %v6293_v49  ;;  %5314 = vmatprep.mubr.msk.f32.mxu0 %vm5934_vm1, %v5933_v2 }
 0x467   : > { %5317 = vmatprep.subr.mxu0 %v5933_v2 }
 0x538   : > { %v1745_v3 = vpop.f32.mrb[10].mxu0 }
 0x539   : > { %v6311_v4 = vadd.f32 %v4983_v1, %v1745_v3  ;;  %v5311_v6 = vpop.f32.mrb[11].mxu0 }
 0x53b   : > { %1860 = vrot.lane.b32.xlu1 %v6311_v4, %s6814_s3  ;;  %v6316_v7 = vmul.f32 0.35355338, %v6311_v4  ;;  %s6817_s3 = smov 2  }
 0x53d   : > { %5315 = vmatmul.mubr.msk.f32.vlgmr.msra.gmra.mrb[12].mxu0 %vm1066_vm0, %v6316_v7 }
 0x53e   : > { %5319 = vmatprep.mubr.msk.f32.mxu0 %vm5934_vm1, %v5933_v2 }
 0x5ad   : > { %v1861_v8 = vpop.permute.xlu1 %1860 }
 0x5ae   : > { %5318 = vmatpush3.xpose.msk.msra.mxu0 %vm1066_vm0, %v1861_v8 }
 0x5af   : > { %5322 = vmatprep.subr.mxu0 %v5933_v2 }
 0x5b1   : > { %5320 = vmatmul.mubr.msk.f32.vlgmr.msra.gmra.mrb[14].mxu0 %vm1066_vm0, %v6316_v7 }
 0x5b2   : > { %5324 = vmatprep.mubr.msk.f32.mxu0 %vm5934_vm1, %v5933_v2 }
 0x610   : > { %v1819_v9 = vpop.f32.mrb[12].mxu0 }
 0x611   : > { %1827 = vrot.lane.b32.xlu1 %v1819_v9, %s6817_s3  ;;  %1824 = vrot.lane.b32.xlu0 %v1819_v9, %s6840_s4  ;;  %v5316_v10 = vpop.f32.mrb[13].mxu0  ;;  %s6819_s3 = smov 120  }
 0x615   : > { %1833 = vrot.lane.b32.xlu1 %v1819_v9, %s6831_s5  ;;  %1830 = vrot.lane.b32.xlu0 %v1819_v9, %s6825_s6 }
 0x619   : > { %1839 = vrot.lane.b32.xlu1 %v1819_v9, %s6820_s8  ;;  %1836 = vrot.lane.b32.xlu0 %v1819_v9, %s6834_s9  ;;  %s6824_s8 = smov 88  }
 0x61d   : > { %1842 = vrot.lane.b32.xlu0 %v1819_v9, %s6827_s12 }
 0x621   : > { %2025 = vrot.lane.b32.xlu0 %v6316_v7, %s6819_s3  ;;  %s6822_s3 = smov 121  }
 0x683   : > { %v1828_v11 = vpop.permute.xlu1 %1827  ;;  %v1825_v12 = vpop.permute.xlu0 %1824 }
 0x684   : > { %v1846_v13 = vsel %vm1845_vm10, %v1819_v9, %v1825_v12  ;;  %v1934_v14 = vpop.f32.mrb[14].mxu0 }
 0x685   : > { %v5321_v15 = vpop.f32.mrb[15].mxu0  ;;  %v1848_v17 = vsel %vm1847_vm11, %v1846_v13, %v1828_v11 }
 0x687   : > { %v1834_v16 = vpop.permute.xlu1 %1833  ;;  %v1831_v18 = vpop.permute.xlu0 %1830 }
 0x688   : > { %v1850_v19 = vsel %vm1849_vm12, %v1848_v17, %v1831_v18 }
 0x689   : > { %v1852_v20 = vsel %vm1851_vm13, %v1850_v19, %v1834_v16 }
 0x68b   : > { %v1837_v21 = vpop.permute.xlu0 %1836  ;;  %v1840_v22 = vpop.permute.xlu1 %1839 }
 0x68c   : > { %v1854_v23 = vsel %vm1853_vm14, %v1852_v20, %v1837_v21 }
 0x68d   : > { %v1856_v25 = vsel %vm1855_vm15, %v1854_v23, %v1840_v22 }
 0x68f   : > { %v1843_v24 = vpop.permute.xlu0 %1842 }
 0x690   : > { %v1858_v26 = vsel %vm1857_vm2, %v1856_v25, %v1843_v24 }
 0x691   : > { %1863 = vrot.lane.b32.xlu1 %v1858_v26, %s6822_s3  ;;  %s6830_s3 = smov 112  }
 0x693   : > { %v2026_v27 = vpop.permute.xlu0 %2025 }
 0x694   : > { %5330 = vmatmul.mubr.msk.f32.vlgmr.msra.gmra.mrb[4].mxu1 %vm1066_vm0, %v2026_v27 }
 0x695   : > { %5339 = vmatprep.mubr.msk.f32.mxu1 %vm5934_vm1, %v5933_v2 }
 0x703   : > { %v1864_v28 = vpop.permute.xlu1 %1863 }
 0x704   : > { %v1935_v29 = vadd.f32 %v1934_v14, %v1864_v28 }
 0x706   : > { %v1938_v30 = vsel %vm1066_vm0, %v1935_v29, -inf }
 0x707   : > { %1939 = vmax.xlane.f32.xlu1 %v1938_v30 }
 0x718   : > { %2128 = vrot.lane.b32.xlu1 %v6311_v4, %s6824_s8  ;;  %s6829_s8 = smov 64  }
 0x767   : > { %v2095_v31 = vpop.f32.mrb[4].mxu1 }
 0x768   : > { %2100 = vrot.lane.b32.xlu1 %v2095_v31, %s6840_s4  ;;  %v5331_v32 = vpop.f32.mrb[5].mxu1 }
 0x76c   : > { %2106 = vrot.lane.b32.xlu1 %v2095_v31, %s6825_s6  ;;  %s6906_s6 = smov 2  }
 0x770   : > { %2112 = vrot.lane.b32.xlu1 %v2095_v31, %s6834_s9 }
 0x774   : > { %2118 = vrot.lane.b32.xlu1 %v2095_v31, %s6827_s12  ;;  %s6907_s12 = smov 6  }
 0x778   : > { %2293 = vrot.lane.b32.xlu1 %v6316_v7, %s6830_s3  ;;  %s6833_s3 = smov 56  }
 0x794   : > { %v1940_v33 = vpop.xlane.xlu1 %1939 }
 0x795   : > { %v1941_v34 = vsub.f32 %v1935_v29, %v1940_v33 }
 0x797   : > { %v1942_v35 = vmul.f32 1.442695, %v1941_v34 }
 0x798   : > { %v2129_v38 = vpop.permute.xlu1 %2128 }
 0x799   : > { %5775 = vpow2.f32 %v1942_v35 }
 0x7a3   : > { %v5776_v36 = vpop.eup %5775 }
 0x7a4   : > { %v1944_v37 = vsel %vm1066_vm0, %v5776_v36, 0.0 }
 0x7a5   : > { %1945 = vadd.xlane.f32.xlu0 %v1944_v37 }
 0x7bb   : > { %1949 = vrot.lane.b32.xlu0 %v6311_v4, %s6829_s8  ;;  %s6908_s8 = smov 121  }
 0x7bf   : > { %2103 = vrot.lane.b32.xlu0 %v2095_v31, %s6906_s6 }
 0x7c3   : > { %2109 = vrot.lane.b32.xlu0 %v2095_v31, %s6831_s5  ;;  %s6909_s5 = smov 3  }
 0x7c7   : > { %2115 = vrot.lane.b32.xlu0 %v2095_v31, %s6907_s12 }
 0x7da   : > { %v2101_v39 = vpop.permute.xlu1 %2100 }
 0x7db   : > { %v2121_v44 = vsel %vm1845_vm10, %v2095_v31, %v2101_v39 }
 0x7de   : > { %v2107_v42 = vpop.permute.xlu1 %2106 }
 0x7e2   : > { %v2113_v46 = vpop.permute.xlu1 %2112 }
 0x7e6   : > { %v2119_v54 = vpop.permute.xlu1 %2118 }
 0x7ea   : > { %v2294_v59 = vpop.permute.xlu1 %2293 }
 0x832   : > { %v1946_v41 = vpop.xlane.xlu0 %1945 }
 0x833   : > { %5777 = vrcp.f32 %v1946_v41 }
 0x836   : > { %v1950_v43 = vpop.permute.xlu0 %1949 }
 0x837   : > { %5323 = vmatpush3.msra.mxu0 %v1950_v43 }
 0x838   : > { %5332 = vmatprep.subr.mxu0 %v5933_v2 }
 0x83a   : > { %v2104_v45 = vpop.permute.xlu0 %2103 }
 0x83b   : > { %v2122_v47 = vsel %vm1847_vm11, %v2121_v44, %v2104_v45 }
 0x83c   : > { %v2123_v51 = vsel %vm1849_vm12, %v2122_v47, %v2107_v42 }
 0x83d   : > { %v5778_v48 = vpop.eup %5777 }
 0x83e   : > { %v2110_v50 = vpop.permute.xlu0 %2109  ;;  %v1948_v52 = vmul.f32 %v5778_v48, %v5776_v36 }
 0x83f   : > { %v2124_v53 = vsel %vm1851_vm13, %v2123_v51, %v2110_v50 }
 0x840   : > { %5325 = vmatmul.mubr.msk.f32.vlgmr.msra.gmra.mrb[16].mxu0 %vm1066_vm0, %v1948_v52  ;;  %v2125_v56 = vsel %vm1853_vm14, %v2124_v53, %v2113_v46 }
 0x841   : > { %5333 = vmatpush3.xpose.msk.msra.mxu0 %vm1066_vm0, %v2129_v38  ;;  %5334 = vmatprep.mubr.msk.f32.mxu0 %vm5934_vm1, %v5933_v2 }
 0x842   : > { %v2116_v55 = vpop.permute.xlu0 %2115  ;;  %5342 = vmatprep.subr.mxu0 %v5933_v2 }
 0x843   : > { %v2126_v57 = vsel %vm1855_vm15, %v2125_v56, %v2116_v55 }
 0x844   : > { %5335 = vmatmul.mubr.msk.f32.vlgmr.msra.gmra.mrb[18].mxu0 %vm1066_vm0, %v2026_v27  ;;  %v2127_v58 = vsel %vm1857_vm2, %v2126_v57, %v2119_v54 }
 0x845   : > { %5343 = vmatpush3.msra.mxu0 %v6293_v49  ;;  %2131 = vrot.lane.b32.xlu0 %v2127_v58, %s6908_s8 }
 0x846   : > { %5344 = vmatprep.mubr.msk.f32.mxu0 %vm5934_vm1, %v5933_v2  ;;  %5352 = vmatprep.subr.mxu0 %v5933_v2 }
 0x848   : > { %5345 = vmatmul.mubr.msk.f32.vlgmr.msra.gmra.mrb[20].mxu0 %vm1066_vm0, %v2294_v59 }
 0x849   : > { %5354 = vmatprep.mubr.msk.f32.mxu0 %vm5934_vm1, %v5933_v2 }
 0x8b7   : > { %v2132_v62 = vpop.permute.xlu0 %2131 }
 0x913   : > { %v6385_v60 = vpop.f32.mrb[16].mxu0 }
 0x914   : > { %v5326_v61 = vpop.f32.mrb[17].mxu0 }
 0x917   : > { %v2202_v63 = vpop.f32.mrb[18].mxu0 }
 0x918   : > { %v2203_v0 = vadd.f32 %v2202_v63, %v2132_v62  ;;  %v5336_v1 = vpop.f32.mrb[19].mxu0 }
 0x91a   : > { %v2206_v3 = vsel %vm1066_vm0, %v2203_v0, -inf }
 0x91b   : > { %2207 = vmax.xlane.f32.xlu0 %v2206_v3  ;;  %v2363_v6 = vpop.f32.mrb[20].mxu0 }
 0x91c   : > { %v5346_v8 = vpop.f32.mrb[21].mxu0 }
 0x931   : > { %2217 = vrot.lane.b32.xlu0 %v6311_v4, %s6833_s3  ;;  %s6836_s3 = smov 80  }
 0x935   : > { %2368 = vrot.lane.b32.xlu0 %v2363_v6, %s6840_s4 }
 0x939   : > { %2374 = vrot.lane.b32.xlu0 %v2363_v6, %s6909_s5 }
 0x93d   : > { %2380 = vrot.lane.b32.xlu0 %v2363_v6, %s6834_s9  ;;  %s6911_s9 = smov 4  }
 0x941   : > { %2386 = vrot.lane.b32.xlu0 %v2363_v6, %s6910_s13 }
 0x945   : > { %2561 = vrot.lane.b32.xlu0 %v6316_v7, %s6837_s14  ;;  %s6912_s14 = smov 5  }
 0x9a8   : > { %v2208_v9 = vpop.xlane.xlu0 %2207 }
 0x9a9   : > { %v2209_v10 = vsub.f32 %v2203_v0, %v2208_v9 }
 0x9ab   : > { %v2210_v11 = vmul.f32 1.442695, %v2209_v10 }
 0x9ac   : > { %v2218_v12 = vpop.permute.xlu0 %2217 }
 0x9ad   : > { %5779 = vpow2.f32 %v2210_v11  ;;  %5338 = vmatpush3.msra.mxu1 %v2218_v12 }
 0x9ae   : > { %5347 = vmatprep.subr.mxu1 %v5933_v2 }
 0x9b0   : > { %v2369_v7 = vpop.permute.xlu0 %2368 }
 0x9b1   : > { %v2389_v18 = vsel %vm1845_vm10, %v2363_v6, %v2369_v7 }
 0x9b4   : > { %v2375_v16 = vpop.permute.xlu0 %2374 }
 0x9b7   : > { %v5780_v13 = vpop.eup %5779 }
 0x9b8   : > { %v2212_v14 = vsel %vm1066_vm0, %v5780_v13, 0.0  ;;  %v2381_v20 = vpop.permute.xlu0 %2380 }
 0x9b9   : > { %2213 = vadd.xlane.f32.xlu1 %v2212_v14 }
 0x9bc   : > { %v2387_v27 = vpop.permute.xlu0 %2386 }
 0x9c0   : > { %v2562_v32 = vpop.permute.xlu0 %2561 }
 0x9ca   : > { %2396 = vrot.lane.b32.xlu1 %v6311_v4, %s6836_s3  ;;  %s6839_s3 = smov 72  }
 0x9ce   : > { %2371 = vrot.lane.b32.xlu1 %v2363_v6, %s6906_s6 }
 0x9d2   : > { %2377 = vrot.lane.b32.xlu1 %v2363_v6, %s6911_s9 }
 0x9d6   : > { %2383 = vrot.lane.b32.xlu1 %v2363_v6, %s6907_s12 }
 0xa46   : > { %v2214_v15 = vpop.xlane.xlu1 %2213 }
 0xa47   : > { %5781 = vrcp.f32 %v2214_v15 }
 0xa4a   : > { %v2397_v17 = vpop.permute.xlu1 %2396 }
 0xa4e   : > { %v2372_v19 = vpop.permute.xlu1 %2371 }
 0xa4f   : > { %v2390_v21 = vsel %vm1847_vm11, %v2389_v18, %v2372_v19 }
 0xa50   : > { %v2391_v24 = vsel %vm1849_vm12, %v2390_v21, %v2375_v16 }
 0xa51   : > { %v5782_v22 = vpop.eup %5781 }
 0xa52   : > { %v2216_v23 = vmul.f32 %v5782_v22, %v5780_v13  ;;  %v2378_v25 = vpop.permute.xlu1 %2377 }
 0xa53   : > { %v2392_v26 = vsel %vm1851_vm13, %v2391_v24, %v2378_v25 }
 0xa54   : > { %5340 = vmatmul.mubr.msk.f32.vlgmr.msra.gmra.mrb[6].mxu1 %vm1066_vm0, %v2216_v23  ;;  %v2393_v28 = vsel %vm1853_vm14, %v2392_v26, %v2381_v20 }
 0xa55   : > { %5348 = vmatpush3.xpose.msk.msra.mxu1 %vm1066_vm0, %v2397_v17  ;;  %5349 = vmatprep.mubr.msk.f32.mxu1 %vm5934_vm1, %v5933_v2 }
 0xa56   : > { %v2384_v29 = vpop.permute.xlu1 %2383  ;;  %5357 = vmatprep.subr.mxu1 %v5933_v2 }
 0xa57   : > { %v2394_v30 = vsel %vm1855_vm15, %v2393_v28, %v2384_v29 }
 0xa58   : > { %5350 = vmatmul.mubr.msk.f32.vlgmr.msra.gmra.mrb[8].mxu1 %vm1066_vm0, %v2294_v59  ;;  %v2395_v31 = vsel %vm1857_vm2, %v2394_v30, %v2387_v27 }
 0xa59   : > { %5358 = vmatpush3.msra.mxu1 %v6293_v49  ;;  %2399 = vrot.lane.b32.xlu1 %v2395_v31, %s6908_s8 }
 0xa5a   : > { %5359 = vmatprep.mubr.msk.f32.mxu1 %vm5934_vm1, %v5933_v2  ;;  %5367 = vmatprep.subr.mxu1 %v5933_v2 }
 0xa5c   : > { %5360 = vmatmul.mubr.msk.f32.vlgmr.msra.gmra.mrb[10].mxu1 %vm1066_vm0, %v2562_v32 }
 0xa5d   : > { %5369 = vmatprep.mubr.msk.f32.mxu1 %vm5934_vm1, %v5933_v2 }
 0xacb   : > { %v2400_v35 = vpop.permute.xlu1 %2399 }
 0xb27   : > { %v6424_v33 = vpop.f32.mrb[6].mxu1 }
 0xb28   : > { %v5341_v34 = vpop.f32.mrb[7].mxu1 }
 0xb2b   : > { %v2470_v36 = vpop.f32.mrb[8].mxu1 }
 0xb2c   : > { %v2471_v37 = vadd.f32 %v2470_v36, %v2400_v35  ;;  %v5351_v38 = vpop.f32.mrb[9].mxu1 }
 0xb2e   : > { %v2474_v39 = vsel %vm1066_vm0, %v2471_v37, -inf }
 0xb2f   : > { %2475 = vmax.xlane.f32.xlu1 %v2474_v39  ;;  %v2631_v41 = vpop.f32.mrb[10].mxu1 }
 0xb30   : > { %v5361_v42 = vpop.f32.mrb[11].mxu1 }
 0xb40   : > { %2664 = vrot.lane.b32.xlu1 %v6311_v4, %s6839_s3  ;;  %s6843_s3 = smov 16  }
 0xb44   : > { %2636 = vrot.lane.b32.xlu1 %v2631_v41, %s6840_s4  ;;  %s6913_s4 = sld [smem:[#allocation25_spill]] }
 0xb48   : > { %2642 = vrot.lane.b32.xlu1 %v2631_v41, %s6909_s5 }
 0xb4a   : > { %v2846_v24 = vld [vmem:[%s6913_s4] sm:$0xff]  ;;  %v2847_v25 = vld [vmem:[%s6913_s4 + $0x8] sm:$0xff]  ;;  %v2848_v26 = vld [vmem:[%s6913_s4 + $0x10] sm:$0xff] }
 0xb4b   : > { %v5596_v27 = vpack.c.bf16 %v2847_v25, %v2846_v24  ;;  %v2849_v28 = vld [vmem:[%s6913_s4 + $0x18] sm:$0xff] }
 0xb4c   : > { %2648 = vrot.lane.b32.xlu1 %v2631_v41, %s6912_s14 }
 0xb50   : > { %2654 = vrot.lane.b32.xlu1 %v2631_v41, %s6910_s13 }
 0xbbc   : > { %v2476_v43 = vpop.xlane.xlu1 %2475 }
 0xbbd   : > { %v2477_v44 = vsub.f32 %v2471_v37, %v2476_v43 }
 0xbbf   : > { %v2478_v45 = vmul.f32 1.442695, %v2477_v44 }
 0xbc0   : > { %v2665_v48 = vpop.permute.xlu1 %2664 }
 0xbc1   : > { %5783 = vpow2.f32 %v2478_v45 }
 0xbc4   : > { %v2637_v50 = vpop.permute.xlu1 %2636 }
 0xbc5   : > { %v2657_v54 = vsel %vm1845_vm10, %v2631_v41, %v2637_v50 }
 0xbc8   : > { %v2643_v53 = vpop.permute.xlu1 %2642 }
 0xbcb   : > { %v5784_v46 = vpop.eup %5783 }
 0xbcc   : > { %v2480_v47 = vsel %vm1066_vm0, %v5784_v46, 0.0  ;;  %v2649_v58 = vpop.permute.xlu1 %2648 }
 0xbcd   : > { %2481 = vadd.xlane.f32.xlu0 %v2480_v47 }
 0xbd0   : > { %v2655_v3 = vpop.permute.xlu1 %2654 }
 0xbe3   : > { %2485 = vrot.lane.b32.xlu0 %v6311_v4, %s6838_s17  ;;  %s6844_s17 = smov 8  }
 0xbe7   : > { %2639 = vrot.lane.b32.xlu0 %v2631_v41, %s6906_s6 }
 0xbeb   : > { %2645 = vrot.lane.b32.xlu0 %v2631_v41, %s6911_s9 }
 0xbef   : > { %2651 = vrot.lane.b32.xlu0 %v2631_v41, %s6907_s12 }
 0xc5a   : > { %v2482_v51 = vpop.xlane.xlu0 %2481 }
 0xc5b   : > { %5785 = vrcp.f32 %v2482_v51 }
 0xc5e   : > { %v2486_v52 = vpop.permute.xlu0 %2485 }
 0xc5f   : > { %5353 = vmatpush3.msra.mxu0 %v2486_v52 }
 0xc60   : > { %5362 = vmatprep.subr.mxu0 %v5933_v2 }
 0xc62   : > { %v2640_v55 = vpop.permute.xlu0 %2639 }
 0xc63   : > { %v2658_v56 = vsel %vm1847_vm11, %v2657_v54, %v2640_v55 }
 0xc64   : > { %v2659_v62 = vsel %vm1849_vm12, %v2658_v56, %v2643_v53 }
 0xc65   : > { %v5786_v57 = vpop.eup %5785 }
 0xc66   : > { %v2484_v59 = vmul.f32 %v5786_v57, %v5784_v46  ;;  %v2646_v61 = vpop.permute.xlu0 %2645 }
 0xc67   : > { %v2660_v63 = vsel %vm1851_vm13, %v2659_v62, %v2646_v61 }
 0xc68   : > { %5355 = vmatmul.mubr.msk.f32.vlgmr.msra.gmra.mrb[22].mxu0 %vm1066_vm0, %v2484_v59  ;;  %v2661_v1 = vsel %vm1853_vm14, %v2660_v63, %v2649_v58 }
 0xc69   : > { %5363 = vmatpush3.xpose.msk.msra.mxu0 %vm1066_vm0, %v2665_v48  ;;  %5364 = vmatprep.mubr.msk.f32.mxu0 %vm5934_vm1, %v5933_v2 }
 0xc6a   : > { %v2652_v0 = vpop.permute.xlu0 %2651  ;;  %5595 = vmatprep.subr.bf16.mxu0 %v5935_v5 }
 0xc6b   : > { %v2662_v6 = vsel %vm1855_vm15, %v2661_v1, %v2652_v0 }
 0xc6c   : > { %5365 = vmatmul.mubr.msk.f32.vlgmr.msra.gmra.mrb[24].mxu0 %vm1066_vm0, %v2562_v32  ;;  %v2663_v8 = vsel %vm1857_vm2, %v2662_v6, %v2655_v3 }
 0xc6d   : > { %2667 = vrot.lane.b32.xlu0 %v2663_v8, %s6908_s8  ;;  %5380 = vmatprep.mubr.msk.f32.mxu0 %vm5934_vm1, %v5933_v2  ;;  %v5003_v8 = vld [vmem:[%s6917_s24] ss:$0 sm:$0xff] }
 0xc6e   : > { %5597 = vmatpush3.bf16.msra.mxu0 %v5596_v27 }
 0xc6f   : > { %5598 = vmatprep.subr.bf16.mxu0 %v5935_v5 }
 0xcdf   : > { %v2668_v11 = vpop.permute.xlu0 %2667 }
 0xd3b   : > { %v2557_v9 = vpop.f32.mrb[22].mxu0 }
 0xd3c   : > { %v5356_v10 = vpop.f32.mrb[23].mxu0 }
 0xd3d   : > { %v5004_v10 = vld [vmem:[%s6918_s25] ss:$0 sm:$0xff] }
 0xd3f   : > { %v2738_v12 = vpop.f32.mrb[24].mxu0 }
 0xd40   : > { %v2739_v13 = vadd.f32 %v2738_v12, %v2668_v11  ;;  %v5366_v14 = vpop.f32.mrb[25].mxu0 }
 0xd42   : > { %v2742_v7 = vsel %vm1066_vm0, %v2739_v13, -inf }
 0xd43   : > { %2743 = vmax.xlane.f32.xlu1 %v2742_v7 }
 0xd54   : > { %2830 = vrot.lane.b32.xlu1 %v6424_v33, %s6844_s17  ;;  %s6915_s17 = sld [smem:[#allocation29_spill]] }
 0xd58   : > { %2834 = vrot.lane.b32.xlu1 %v2557_v9, %s6843_s3  ;;  %s6845_s3 = smov 24  }
 0xd5a   : > { %v2960_v48 = vld [vmem:[%s6915_s17] sm:$0xff]  ;;  %v2961_v50 = vld [vmem:[%s6915_s17 + $0x8] sm:$0xff]  ;;  %v2962_v51 = vld [vmem:[%s6915_s17 + $0x10] sm:$0xff] }
 0xd5b   : > { %v2963_v52 = vld [vmem:[%s6915_s17 + $0x18] sm:$0xff] }
 0xd5c   : > { %v5605_v53 = vpack.c.bf16 %v2963_v52, %v2962_v51 }
 0xdd0   : > { %v2744_v15 = vpop.xlane.xlu1 %2743 }
 0xdd1   : > { %v2745_v16 = vsub.f32 %v2739_v13, %v2744_v15  ;;  %v5005_v15 = vld [vmem:[%s6919_s29] ss:$0 sm:$0xff] }
 0xdd3   : > { %v2746_v17 = vmul.f32 1.442695, %v2745_v16 }
 0xdd4   : > { %v2831_v31 = vpop.permute.xlu1 %2830 }
 0xdd5   : > { %5787 = vpow2.f32 %v2746_v17  ;;  %v2841_v33 = vsel %vm1066_vm0, %v6385_v60, %v2831_v31  ;;  %v5014_v31 = vld [vmem:[%s6902_s11 + $0x28] sm:$0xff] }
 0xdd8   : > { %v2835_v32 = vpop.permute.xlu1 %2834 }
 0xdd9   : > { %v2843_v34 = vsel %vm2842_vm4, %v2841_v33, %v2835_v32  ;;  %v5015_v33 = vld [vmem:[%s6902_s11 + $0x30] sm:$0xff] }
 0xddf   : > { %v5788_v18 = vpop.eup %5787 }
 0xde0   : > { %v2748_v19 = vsel %vm1066_vm0, %v5788_v18, 0.0 }
 0xde1   : > { %2749 = vadd.xlane.f32.xlu0 %v2748_v19 }
 0xdf7   : > { %2753 = vrot.lane.b32.xlu0 %v6311_v4, %s6842_s21  ;;  %v5599_v4 = vpack.c.bf16 %v2849_v28, %v2848_v26  ;;  %s6914_s21 = sld [smem:[#allocation26_spill]] }
 0xdf9   : > { %5600 = vmatpush3.bf16.msra.mxu0 %v5599_v4 }
 0xdfa   : > { %5607 = vmatprep.subr.bf16.mxu0 %v5935_v5 }
 0xdfd   : > { %v5001_v37 = vld [vmem:[%s6914_s21] ss:$0 sm:$0xff] }
 0xe6e   : > { %v2750_v20 = vpop.xlane.xlu0 %2749 }
 0xe6f   : > { %5789 = vrcp.f32 %v2750_v20  ;;  %v5007_v20 = vld [vmem:[%s6920_s30] ss:$0 sm:$0xff] }
 0xe72   : > { %v2754_v21 = vpop.permute.xlu0 %2753 }
 0xe73   : > { %5368 = vmatpush3.msra.mxu1 %v2754_v21 }
 0xe74   : > { %5601 = vmatprep.subr.bf16.mxu1 %v5935_v5 }
 0xe79   : > { %v5790_v22 = vpop.eup %5789 }
 0xe7a   : > { %v2752_v23 = vmul.f32 %v5790_v22, %v5788_v18 }
 0xe7c   : > { %5370 = vmatmul.mubr.msk.f32.vlgmr.msra.gmra.mrb[12].mxu1 %vm1066_vm0, %v2752_v23 }
 0xe7d   : > { %5391 = vmatprep.mubr.msk.f32.mxu1 %vm5934_vm1, %v5933_v2 }
 0xf4f   : > { %v2825_v29 = vpop.f32.mrb[12].mxu1 }
 0xf50   : > { %2838 = vrot.lane.b32.xlu0 %v2825_v29, %s6845_s3  ;;  %v5371_v30 = vpop.f32.mrb[13].mxu1  ;;  %s6916_s3 = sld [smem:[#allocation31_spill]] }
 0xf51   : > { %v5013_v30 = vld [vmem:[%s6902_s11 + $0x20] sm:$0xff] }
 0xf52   : > { %v5620_v32 = vpack.c.bf16 %v5014_v31, %v5013_v30 }
 0xf56   : > { %v3045_v54 = vld [vmem:[%s6916_s3] sm:$0xff]  ;;  %v3046_v55 = vld [vmem:[%s6916_s3 + $0x8] sm:$0xff]  ;;  %v3047_v56 = vld [vmem:[%s6916_s3 + $0x10] sm:$0xff] }
 0xf57   : > { %v5608_v57 = vpack.c.bf16 %v3046_v55, %v3045_v54  ;;  %v3048_v58 = vld [vmem:[%s6916_s3 + $0x18] sm:$0xff]  ;;  %v3049_v61 = vld [vmem:[%s6916_s3 + $0x20] sm:$0xff]  ;;  %v3050_v62 = vld [vmem:[%s6916_s3 + $0x28] sm:$0xff] }
 0xf58   : > { %v5611_v59 = vpack.c.bf16 %v3048_v58, %v3047_v56  ;;  %v5614_v63 = vpack.c.bf16 %v3050_v62, %v3049_v61  ;;  %v3051_v13 = vld [vmem:[%s6916_s3 + $0x30] sm:$0xff]  ;;  %v3052_v14 = vld [vmem:[%s6916_s3 + $0x38] sm:$0xff] }
 0xf59   : > { %v5617_v7 = vpack.c.bf16 %v3052_v14, %v3051_v13 }
 0xfc2   : > { %v2839_v35 = vpop.permute.xlu0 %2838 }
 0xfc3   : > { %v2845_v36 = vsel %vm2844_vm5, %v2843_v34, %v2839_v35  ;;  %v5016_v34 = vld [vmem:[%s6902_s11 + $0x38] sm:$0xff]  ;;  %s6921_s11 = smov 96  }
 0xfc4   : > { %5381 = vmatmul.mubr.msk.f32.vlgmr.msra.gmra.mrb[26].mxu0 %vm1155_vm3, %v2845_v36  ;;  %v5623_v35 = vpack.c.bf16 %v5016_v34, %v5015_v33 }
 0xfc5   : > { %5410 = vmatprep.mubr.msk.f32.mxu0 %vm5934_vm1, %v5933_v2  ;;  %5609 = vmatpush3.bf16.msra.mxu0 %v5608_v57 }
 0xfc6   : > { %5610 = vmatprep.subr.bf16.mxu0 %v5935_v5 }
 0xfc9   : > { %5612 = vmatpush3.bf16.msra.mxu0 %v5611_v59 }
 0xfca   : > { %5613 = vmatprep.subr.bf16.mxu0 %v5935_v5 }
 0xfcd   : > { %5615 = vmatpush3.bf16.msra.mxu0 %v5614_v63 }
 0xfce   : > { %5616 = vmatprep.subr.bf16.mxu0 %v5935_v5 }
 0xfd1   : > { %5618 = vmatpush3.bf16.msra.mxu0 %v5617_v7 }
 0xfd2   : > { %5434 = vmatprep.subr.mxu0 %v5933_v2 }
0x1097   : > { %v2926_v38 = vpop.f32.mrb[26].mxu0 }
0x1098   : > { %v2927_v39 = vadd.f32 %v5001_v37, %v2926_v38  ;;  %v5382_v41 = vpop.f32.mrb[27].mxu0 }
0x1099   : > { %v5011_v41 = vld [vmem:[%s6903_s1 + $0x1] ss:$0 sm:$0xff]  ;;  %s6923_s1 = smov 120  }
0x109a   : > { %v6483_v60 = vadd.f32 %v2927_v39, %v6286_v40  ;;  %v5602_v40 = vpack.c.bf16 %v2961_v50, %v2960_v48 }
0x109c   : > { %v2933_v42 = vsel %vm1155_vm3, %v6483_v60, 0.0  ;;  %5603 = vmatpush3.bf16.msra.mxu1 %v5602_v40 }
0x109d   : > { %2934 = vadd.xlane.f32.xlu1 %v2933_v42  ;;  %5604 = vmatprep.subr.bf16.mxu1 %v5935_v5  ;;  %v5012_v42 = vld [vmem:[%s6904_s23 + $0x1] ss:$0 sm:$0xff]  ;;  %s6925_s23 = smov 112  }
0x10a0   : > { %5606 = vmatpush3.bf16.msra.mxu1 %v5605_v53 }
0x10a1   : > { %5619 = vmatprep.subr.bf16.mxu1 %v5935_v5 }
0x112a   : > { %v2935_v43 = vpop.xlane.xlu1 %2934 }
0x112b   : > { %v2936_v44 = vmul.f32 0.03125, %v2935_v43 }
0x112d   : > { %v2937_v45 = vsub.f32 %v6483_v60, %v2936_v44 }
0x112f   : > { %v2938_v46 = vmul.f32 %v2937_v45, %v2937_v45 }
0x1131   : > { %v2939_v47 = vsel %vm1155_vm3, %v2938_v46, 0.0 }
0x1132   : > { %2940 = vadd.xlane.f32.xlu0 %v2939_v47 }
0x11bf   : > { %v2941_v0 = vpop.xlane.xlu0 %2940 }
0x11c0   : > { %v2942_v1 = vmul.f32 0.03125, %v2941_v0 }
0x11c2   : > { %v2943_v3 = vadd.f32 1e-05, %v2942_v1 }
0x11c4   : > { %5791 = vrsqrt.f32 %v2943_v3 }
0x11ce   : > { %v5792_v6 = vpop.eup %5791 }
0x11cf   : > { %v2945_v9 = vmul.f32 %v5792_v6, %v2937_v45  ;;  %v5018_v45 = vld [vmem:[%s6905_s28 + $0x1] ss:$0 sm:$0xff] }
0x11d1   : > { %v2952_v11 = vmul.f32 %v5003_v8, %v2945_v9 }
0x11d3   : > { %v2959_v12 = vadd.f32 %v5004_v10, %v2952_v11 }
0x11d5   : > { %5392 = vmatmul.mubr.msk.f32.vlgmr.msra.gmra.mrb[14].mxu1 %vm1155_vm3, %v2959_v12 }
0x11d6   : > { %5421 = vmatprep.mubr.msk.f32.mxu1 %vm5934_vm1, %v5933_v2  ;;  %5621 = vmatpush3.bf16.msra.mxu1 %v5620_v32 }
0x11d7   : > { %5622 = vmatprep.subr.bf16.mxu1 %v5935_v5 }
0x11da   : > { %5624 = vmatpush3.bf16.msra.mxu1 %v5623_v35 }
0x11db   : > { %5424 = vmatprep.subr.mxu1 %v5933_v2 }
0x12a8   : > { %v3040_v16 = vpop.f32.mrb[14].mxu1 }
0x12a9   : > { %v3041_v17 = vadd.f32 %v5005_v15, %v3040_v16  ;;  %v5393_v18 = vpop.f32.mrb[15].mxu1 }
0x12ab   : > { %v3044_v19 = vmax.f32 %v3041_v17, 0.0 }
0x12ad   : > { %5411 = vmatmul.mubr.msk.f32.vlgmr.msra.gmra.mrb[28].mxu0 %vm3060_vm6, %v3044_v19 }
0x12ae   : > { %5436 = vmatprep.mubr.msk.f32.mxu0 %vm5934_vm1, %v5933_v2 }
0x1380   : > { %v3130_v21 = vpop.f32.mrb[28].mxu0 }
0x1381   : > { %v3131_v22 = vadd.f32 %v5007_v20, %v3130_v21  ;;  %v5412_v23 = vpop.f32.mrb[29].mxu0 }
0x1383   : > { %v6518_v24 = vadd.f32 %v3131_v22, %v6483_v60 }
0x1385   : > { %v3139_v25 = vsel %vm1155_vm3, %v6518_v24, 0.0 }
0x1386   : > { %3140 = vadd.xlane.f32.xlu0 %v3139_v25 }
0x1413   : > { %v3141_v26 = vpop.xlane.xlu0 %3140 }
0x1414   : > { %v3142_v27 = vmul.f32 0.03125, %v3141_v26 }
0x1416   : > { %v3143_v28 = vsub.f32 %v6518_v24, %v3142_v27 }
0x1418   : > { %v3144_v4 = vmul.f32 %v3143_v28, %v3143_v28 }
0x141a   : > { %v3145_v29 = vsel %vm1155_vm3, %v3144_v4, 0.0 }
0x141b   : > { %3146 = vadd.xlane.f32.xlu1 %v3145_v29 }
0x14a8   : > { %v3147_v36 = vpop.xlane.xlu1 %3146 }
0x14a9   : > { %v3148_v37 = vmul.f32 0.03125, %v3147_v36 }
0x14ab   : > { %v3149_v38 = vadd.f32 1e-05, %v3148_v37 }
0x14ad   : > { %5793 = vrsqrt.f32 %v3149_v38 }
0x14b7   : > { %v5794_v39 = vpop.eup %5793 }
0x14b8   : > { %v3151_v60 = vmul.f32 %v5794_v39, %v3143_v28 }
0x14ba   : > { %v3158_v43 = vmul.f32 %v5011_v41, %v3151_v60 }
0x14bc   : > { %v3165_v44 = vadd.f32 %v5012_v42, %v3158_v43 }
0x14be   : > { %5422 = vmatmul.mubr.msk.f32.vlgmr.msra.gmra.mrb[16].mxu1 %vm1155_vm3, %v3165_v44 }
0x14bf   : > { %5425 = vmatpush3.msra.mxu1 %v6293_v49  ;;  %5426 = vmatprep.mubr.msk.f32.mxu1 %vm5934_vm1, %v5933_v2 }
0x14c0   : > { %5429 = vmatprep.subr.mxu1 %v5933_v2 }
0x1591   : > { %v3248_v46 = vpop.f32.mrb[16].mxu1 }
0x1592   : > { %v6538_v47 = vadd.f32 %v5018_v45, %v3248_v46  ;;  %v5423_v48 = vpop.f32.mrb[17].mxu1 }
0x1594   : > { %3356 = vrot.lane.b32.xlu0 %v6538_v47, %s6921_s11  ;;  %v6543_v50 = vmul.f32 0.35355338, %v6538_v47  ;;  %s6922_s11 = smov 1  }
0x1596   : > { %5427 = vmatmul.mubr.msk.f32.vlgmr.msra.gmra.mrb[18].mxu1 %vm1066_vm0, %v6543_v50 }
0x1597   : > { %5431 = vmatprep.mubr.msk.f32.mxu1 %vm5934_vm1, %v5933_v2 }
0x1606   : > { %v3357_v40 = vpop.permute.xlu0 %3356 }
0x1607   : > { %5430 = vmatpush3.xpose.msk.msra.mxu1 %vm1066_vm0, %v3357_v40 }
0x1608   : > { %5439 = vmatprep.subr.mxu1 %v5933_v2 }
0x160a   : > { %5432 = vmatmul.mubr.msk.f32.vlgmr.msra.gmra.mrb[20].mxu1 %vm1066_vm0, %v6543_v50 }
0x160b   : > { %5440 = vmatpush3.msra.mxu1 %v6293_v49  ;;  %5441 = vmatprep.mubr.msk.f32.mxu1 %vm5934_vm1, %v5933_v2 }
0x160c   : > { %5449 = vmatprep.subr.mxu1 %v5933_v2 }
0x1669   : > { %v3322_v51 = vpop.f32.mrb[18].mxu1 }
0x166a   : > { %3333 = vrot.lane.b32.xlu0 %v3322_v51, %s6909_s5  ;;  %3327 = vrot.lane.b32.xlu1 %v3322_v51, %s6922_s11  ;;  %v5428_v52 = vpop.f32.mrb[19].mxu1 }
0x166e   : > { %3339 = vrot.lane.b32.xlu0 %v3322_v51, %s6912_s14  ;;  %3330 = vrot.lane.b32.xlu1 %v3322_v51, %s6906_s6 }
0x1672   : > { %3345 = vrot.lane.b32.xlu0 %v3322_v51, %s6910_s13  ;;  %3336 = vrot.lane.b32.xlu1 %v3322_v51, %s6911_s9 }
0x1676   : > { %3521 = vrot.lane.b32.xlu0 %v6543_v50, %s6923_s1  ;;  %3342 = vrot.lane.b32.xlu1 %v3322_v51, %s6907_s12  ;;  %s6924_s1 = smov 88  }
0x16dc   : > { %v3334_v53 = vpop.permute.xlu0 %3333  ;;  %v3328_v54 = vpop.permute.xlu1 %3327 }
0x16dd   : > { %v3430_v55 = vpop.f32.mrb[20].mxu1  ;;  %v3348_v57 = vsel %vm1845_vm10, %v3322_v51, %v3328_v54 }
0x16de   : > { %v5433_v56 = vpop.f32.mrb[21].mxu1 }
0x16e0   : > { %v3340_v58 = vpop.permute.xlu0 %3339  ;;  %v3331_v59 = vpop.permute.xlu1 %3330 }
0x16e1   : > { %v3349_v61 = vsel %vm1847_vm11, %v3348_v57, %v3331_v59 }
0x16e2   : > { %v3350_v63 = vsel %vm1849_vm12, %v3349_v61, %v3334_v53 }
0x16e4   : > { %v3346_v62 = vpop.permute.xlu0 %3345  ;;  %v3337_v0 = vpop.permute.xlu1 %3336 }
0x16e5   : > { %v3351_v1 = vsel %vm1851_vm13, %v3350_v63, %v3337_v0 }
0x16e6   : > { %v3352_v6 = vsel %vm1853_vm14, %v3351_v1, %v3340_v58 }
0x16e8   : > { %v3522_v3 = vpop.permute.xlu0 %3521  ;;  %v3343_v8 = vpop.permute.xlu1 %3342 }
0x16e9   : > { %v3353_v9 = vsel %vm1855_vm15, %v3352_v6, %v3343_v8  ;;  %5442 = vmatmul.mubr.msk.f32.vlgmr.msra.gmra.mrb[22].mxu1 %vm1066_vm0, %v3522_v3 }
0x16ea   : > { %v3354_v10 = vsel %vm1857_vm2, %v3353_v9, %v3346_v62  ;;  %5451 = vmatprep.mubr.msk.f32.mxu1 %vm5934_vm1, %v5933_v2 }
0x16eb   : > { %3359 = vrot.lane.b32.xlu1 %v3354_v10, %s6908_s8 }
0x175d   : > { %v3360_v11 = vpop.permute.xlu1 %3359 }
0x175e   : > { %v3431_v12 = vadd.f32 %v3430_v55, %v3360_v11 }
0x1760   : > { %v3434_v13 = vsel %vm1066_vm0, %v3431_v12, -inf }
0x1761   : > { %3435 = vmax.xlane.f32.xlu1 %v3434_v13 }
0x1772   : > { %3624 = vrot.lane.b32.xlu1 %v6538_v47, %s6924_s1  ;;  %s6926_s1 = smov 64  }
0x17bc   : > { %v3591_v14 = vpop.f32.mrb[22].mxu1 }
0x17bd   : > { %3596 = vrot.lane.b32.xlu1 %v3591_v14, %s6922_s11  ;;  %v5443_v7 = vpop.f32.mrb[23].mxu1 }
0x17c1   : > { %3602 = vrot.lane.b32.xlu1 %v3591_v14, %s6909_s5 }
0x17c5   : > { %3608 = vrot.lane.b32.xlu1 %v3591_v14, %s6912_s14 }
0x17c9   : > { %3614 = vrot.lane.b32.xlu1 %v3591_v14, %s6910_s13 }
0x17cd   : > { %3789 = vrot.lane.b32.xlu1 %v6543_v50, %s6925_s23  ;;  %s6927_s23 = smov 56  }
0x17ee   : > { %v3436_v15 = vpop.xlane.xlu1 %3435 }
0x17ef   : > { %v3437_v16 = vsub.f32 %v3431_v12, %v3436_v15 }
0x17f1   : > { %v3438_v17 = vmul.f32 1.442695, %v3437_v16 }
0x17f2   : > { %v3625_v20 = vpop.permute.xlu1 %3624 }
0x17f3   : > { %5795 = vpow2.f32 %v3438_v17 }
0x17fd   : > { %v5796_v18 = vpop.eup %5795 }
0x17fe   : > { %v3440_v19 = vsel %vm1066_vm0, %v5796_v18, 0.0 }
0x17ff   : > { %3441 = vadd.xlane.f32.xlu0 %v3440_v19 }
0x1815   : > { %3445 = vrot.lane.b32.xlu0 %v6538_v47, %s6926_s1  ;;  %s6928_s1 = smov 104  }
0x1819   : > { %3599 = vrot.lane.b32.xlu0 %v3591_v14, %s6906_s6 }
0x181d   : > { %3605 = vrot.lane.b32.xlu0 %v3591_v14, %s6911_s9 }
0x1821   : > { %3611 = vrot.lane.b32.xlu0 %v3591_v14, %s6907_s12 }
0x182f   : > { %v3597_v21 = vpop.permute.xlu1 %3596 }
0x1830   : > { %v3617_v26 = vsel %vm1845_vm10, %v3591_v14, %v3597_v21 }
0x1833   : > { %v3603_v23 = vpop.permute.xlu1 %3602 }
0x1837   : > { %v3609_v28 = vpop.permute.xlu1 %3608 }
0x183b   : > { %v3615_v34 = vpop.permute.xlu1 %3614 }
0x183f   : > { %v3790_v39 = vpop.permute.xlu1 %3789 }
0x188c   : > { %v3442_v22 = vpop.xlane.xlu0 %3441 }
0x188d   : > { %5797 = vrcp.f32 %v3442_v22 }
0x1890   : > { %v3446_v25 = vpop.permute.xlu0 %3445 }
0x1891   : > { %5435 = vmatpush3.msra.mxu0 %v3446_v25 }
0x1892   : > { %5444 = vmatprep.subr.mxu0 %v5933_v2 }
0x1894   : > { %v3600_v27 = vpop.permute.xlu0 %3599 }
0x1895   : > { %v3618_v4 = vsel %vm1847_vm11, %v3617_v26, %v3600_v27 }
0x1896   : > { %v3619_v32 = vsel %vm1849_vm12, %v3618_v4, %v3603_v23 }
0x1897   : > { %v5798_v29 = vpop.eup %5797 }
0x1898   : > { %v3444_v30 = vmul.f32 %v5798_v29, %v5796_v18  ;;  %v3606_v31 = vpop.permute.xlu0 %3605 }
0x1899   : > { %v3620_v33 = vsel %vm1851_vm13, %v3619_v32, %v3606_v31 }
0x189a   : > { %5437 = vmatmul.mubr.msk.f32.vlgmr.msra.gmra.mrb[30].mxu0 %vm1066_vm0, %v3444_v30  ;;  %v3621_v36 = vsel %vm1853_vm14, %v3620_v33, %v3609_v28 }
0x189b   : > { %5445 = vmatpush3.xpose.msk.msra.mxu0 %vm1066_vm0, %v3625_v20  ;;  %5446 = vmatprep.mubr.msk.f32.mxu0 %vm5934_vm1, %v5933_v2 }
0x189c   : > { %v3612_v35 = vpop.permute.xlu0 %3611  ;;  %5454 = vmatprep.subr.mxu0 %v5933_v2 }
0x189d   : > { %v3622_v37 = vsel %vm1855_vm15, %v3621_v36, %v3612_v35 }
0x189e   : > { %5447 = vmatmul.mubr.msk.f32.vlgmr.msra.gmra.mrb[32].mxu0 %vm1066_vm0, %v3522_v3  ;;  %v3623_v38 = vsel %vm1857_vm2, %v3622_v37, %v3615_v34 }
0x189f   : > { %5455 = vmatpush3.msra.mxu0 %v6293_v49  ;;  %3627 = vrot.lane.b32.xlu0 %v3623_v38, %s6908_s8 }
0x18a0   : > { %5456 = vmatprep.mubr.msk.f32.mxu0 %vm5934_vm1, %v5933_v2  ;;  %5464 = vmatprep.subr.mxu0 %v5933_v2 }
0x18a2   : > { %5457 = vmatmul.mubr.msk.f32.vlgmr.msra.gmra.mrb[34].mxu0 %vm1066_vm0, %v3790_v39 }
0x18a3   : > { %5466 = vmatprep.mubr.msk.f32.mxu0 %vm5934_vm1, %v5933_v2 }
0x1911   : > { %v3628_v42 = vpop.permute.xlu0 %3627 }
0x196d   : > { %v6614_v41 = vpop.f32.mrb[30].mxu0 }
0x196e   : > { %v5438_v60 = vpop.f32.mrb[31].mxu0 }
0x1971   : > { %v3698_v43 = vpop.f32.mrb[32].mxu0 }
0x1972   : > { %v3699_v44 = vadd.f32 %v3698_v43, %v3628_v42  ;;  %v5448_v45 = vpop.f32.mrb[33].mxu0 }
0x1974   : > { %v3702_v46 = vsel %vm1066_vm0, %v3699_v44, -inf }
0x1975   : > { %3703 = vmax.xlane.f32.xlu0 %v3702_v46  ;;  %v3859_v48 = vpop.f32.mrb[34].mxu0 }
0x1976   : > { %v5458_v40 = vpop.f32.mrb[35].mxu0 }
0x198b   : > { %3713 = vrot.lane.b32.xlu0 %v6538_v47, %s6927_s23  ;;  %s6929_s23 = smov 80  }
0x198f   : > { %3864 = vrot.lane.b32.xlu0 %v3859_v48, %s6922_s11 }
0x1993   : > { %3870 = vrot.lane.b32.xlu0 %v3859_v48, %s6909_s5 }
0x1997   : > { %3876 = vrot.lane.b32.xlu0 %v3859_v48, %s6912_s14 }
0x199b   : > { %3882 = vrot.lane.b32.xlu0 %v3859_v48, %s6910_s13 }
0x199f   : > { %4057 = vrot.lane.b32.xlu0 %v6543_v50, %s6928_s1  ;;  %s6930_s1 = smov 72  }
0x1a02   : > { %v3704_v51 = vpop.xlane.xlu0 %3703 }
0x1a03   : > { %v3705_v52 = vsub.f32 %v3699_v44, %v3704_v51 }
0x1a05   : > { %v3706_v53 = vmul.f32 1.442695, %v3705_v52 }
0x1a06   : > { %v3714_v54 = vpop.permute.xlu0 %3713 }
0x1a07   : > { %5799 = vpow2.f32 %v3706_v53  ;;  %5450 = vmatpush3.msra.mxu1 %v3714_v54 }
0x1a08   : > { %5459 = vmatprep.subr.mxu1 %v5933_v2 }
0x1a0a   : > { %v3865_v50 = vpop.permute.xlu0 %3864 }
0x1a0b   : > { %v3885_v61 = vsel %vm1845_vm10, %v3859_v48, %v3865_v50 }
0x1a0e   : > { %v3871_v58 = vpop.permute.xlu0 %3870 }
0x1a11   : > { %v5800_v55 = vpop.eup %5799 }
0x1a12   : > { %v3708_v56 = vsel %vm1066_vm0, %v5800_v55, 0.0  ;;  %v3877_v63 = vpop.permute.xlu0 %3876 }
0x1a13   : > { %3709 = vadd.xlane.f32.xlu1 %v3708_v56 }
0x1a16   : > { %v3883_v10 = vpop.permute.xlu0 %3882 }
0x1a1a   : > { %v4058_v7 = vpop.permute.xlu0 %4057 }
0x1a24   : > { %3892 = vrot.lane.b32.xlu1 %v6538_v47, %s6929_s23  ;;  %s6931_s23 = smov 48  }
0x1a28   : > { %3867 = vrot.lane.b32.xlu1 %v3859_v48, %s6906_s6 }
0x1a2c   : > { %3873 = vrot.lane.b32.xlu1 %v3859_v48, %s6911_s9 }
0x1a30   : > { %3879 = vrot.lane.b32.xlu1 %v3859_v48, %s6907_s12 }
0x1aa0   : > { %v3710_v57 = vpop.xlane.xlu1 %3709 }
0x1aa1   : > { %5801 = vrcp.f32 %v3710_v57 }
0x1aa4   : > { %v3893_v59 = vpop.permute.xlu1 %3892 }
0x1aa8   : > { %v3868_v62 = vpop.permute.xlu1 %3867 }
0x1aa9   : > { %v3886_v0 = vsel %vm1847_vm11, %v3885_v61, %v3868_v62 }
0x1aaa   : > { %v3887_v6 = vsel %vm1849_vm12, %v3886_v0, %v3871_v58 }
0x1aab   : > { %v5802_v1 = vpop.eup %5801 }
0x1aac   : > { %v3712_v3 = vmul.f32 %v5802_v1, %v5800_v55  ;;  %v3874_v8 = vpop.permute.xlu1 %3873 }
0x1aad   : > { %v3888_v9 = vsel %vm1851_vm13, %v3887_v6, %v3874_v8  ;;  %v5037_v6 = vld [vmem:[%s6913_s4 + $0x28] sm:$0xff]  ;;  %v5038_v8 = vld [vmem:[%s6913_s4 + $0x30] sm:$0xff] }
0x1aae   : > { %5452 = vmatmul.mubr.msk.f32.vlgmr.msra.gmra.mrb[24].mxu1 %vm1066_vm0, %v3712_v3  ;;  %v3889_v11 = vsel %vm1853_vm14, %v3888_v9, %v3877_v63  ;;  %v5036_v3 = vld [vmem:[%s6913_s4 + $0x20] sm:$0xff] }
0x1aaf   : > { %5460 = vmatpush3.xpose.msk.msra.mxu1 %vm1066_vm0, %v3893_v59  ;;  %5461 = vmatprep.mubr.msk.f32.mxu1 %vm5934_vm1, %v5933_v2  ;;  %v5626_v9 = vpack.c.bf16 %v5037_v6, %v5036_v3 }
0x1ab0   : > { %v3880_v12 = vpop.permute.xlu1 %3879  ;;  %5469 = vmatprep.subr.mxu1 %v5933_v2 }
0x1ab1   : > { %v3890_v13 = vsel %vm1855_vm15, %v3889_v11, %v3880_v12 }
0x1ab2   : > { %5462 = vmatmul.mubr.msk.f32.vlgmr.msra.gmra.mrb[26].mxu1 %vm1066_vm0, %v3790_v39  ;;  %v3891_v14 = vsel %vm1857_vm2, %v3890_v13, %v3883_v10  ;;  %v5039_v10 = vld [vmem:[%s6913_s4 + $0x38] sm:$0xff] }
0x1ab3   : > { %5470 = vmatpush3.msra.mxu1 %v6293_v49  ;;  %3895 = vrot.lane.b32.xlu1 %v3891_v14, %s6908_s8 }
0x1ab4   : > { %5471 = vmatprep.mubr.msk.f32.mxu1 %vm5934_vm1, %v5933_v2  ;;  %5479 = vmatprep.subr.mxu1 %v5933_v2 }
0x1ab6   : > { %5472 = vmatmul.mubr.msk.f32.vlgmr.msra.gmra.mrb[28].mxu1 %vm1066_vm0, %v4058_v7 }
0x1ab7   : > { %5481 = vmatprep.mubr.msk.f32.mxu1 %vm5934_vm1, %v5933_v2 }
0x1b25   : > { %v3896_v17 = vpop.permute.xlu1 %3895 }
0x1b81   : > { %v3785_v15 = vpop.f32.mrb[24].mxu1 }
0x1b82   : > { %v5453_v16 = vpop.f32.mrb[25].mxu1 }
0x1b85   : > { %v3966_v18 = vpop.f32.mrb[26].mxu1 }
0x1b86   : > { %v3967_v19 = vadd.f32 %v3966_v18, %v3896_v17  ;;  %v5463_v20 = vpop.f32.mrb[27].mxu1  ;;  %v5041_v18 = vld [vmem:[%s6914_s21 + $0x1] ss:$0 sm:$0xff] }
0x1b88   : > { %v3970_v49 = vsel %vm1066_vm0, %v3967_v19, -inf }
0x1b89   : > { %3971 = vmax.xlane.f32.xlu1 %v3970_v49  ;;  %v4127_v21 = vpop.f32.mrb[28].mxu1 }
0x1b8a   : > { %v5473_v22 = vpop.f32.mrb[29].mxu1 }
0x1b9a   : > { %4160 = vrot.lane.b32.xlu1 %v6538_v47, %s6930_s1  ;;  %s4968_s1 = sld [smem:[#allocation2 + $0x4]] }
0x1b9e   : > { %4132 = vrot.lane.b32.xlu1 %v4127_v21, %s6922_s11  ;;  %s6939_s11 = sld [smem:[#allocation38_spill]] }
0x1ba2   : > { %4138 = vrot.lane.b32.xlu1 %v4127_v21, %s6909_s5  ;;  %s6932_s5 = smov 8  }
0x1ba6   : > { %4144 = vrot.lane.b32.xlu1 %v4127_v21, %s6912_s14  ;;  %s6936_s14 = sld [smem:[#allocation37_spill]] }
0x1baa   : > { %4150 = vrot.lane.b32.xlu1 %v4127_v21, %s6910_s13  ;;  %s6934_s13 = smov 40  }
0x1c16   : > { %v3972_v23 = vpop.xlane.xlu1 %3971 }
0x1c17   : > { %v3973_v25 = vsub.f32 %v3967_v19, %v3972_v23 }
0x1c19   : > { %v3974_v26 = vmul.f32 1.442695, %v3973_v25 }
0x1c1a   : > { %v4161_v4 = vpop.permute.xlu1 %4160 }
0x1c1b   : > { %5803 = vpow2.f32 %v3974_v26 }
0x1c1e   : > { %v4133_v29 = vpop.permute.xlu1 %4132 }
0x1c1f   : > { %v4153_v33 = vsel %vm1845_vm10, %v4127_v21, %v4133_v29 }
0x1c22   : > { %v4139_v32 = vpop.permute.xlu1 %4138 }
0x1c25   : > { %v5804_v27 = vpop.eup %5803 }
0x1c26   : > { %v3976_v28 = vsel %vm1066_vm0, %v5804_v27, 0.0  ;;  %v4145_v37 = vpop.permute.xlu1 %4144 }
0x1c27   : > { %3977 = vadd.xlane.f32.xlu0 %v3976_v28  ;;  %v5047_v28 = vld [vmem:[%s6915_s17 + $0x20] sm:$0xff] }
0x1c2a   : > { %v4151_v45 = vpop.permute.xlu1 %4150 }
0x1c3d   : > { %3981 = vrot.lane.b32.xlu0 %v6538_v47, %s6931_s23  ;;  %s1045_s23 = sand.u32 1, %s5888_s16  }
0x1c41   : > { %4135 = vrot.lane.b32.xlu0 %v4127_v21, %s6906_s6  ;;  %s6937_s6 = sld [smem:[#allocation35_spill]] }
0x1c45   : > { %4141 = vrot.lane.b32.xlu0 %v4127_v21, %s6911_s9  ;;  %s6933_s9 = smov 16  }
0x1c49   : > { %4147 = vrot.lane.b32.xlu0 %v4127_v21, %s6907_s12  ;;  %s6938_s12 = sld [smem:[#allocation36_spill]] }
0x1cb4   : > { %v3978_v30 = vpop.xlane.xlu0 %3977 }
0x1cb5   : > { %5805 = vrcp.f32 %v3978_v30  ;;  %v5050_v30 = vld [vmem:[%s6915_s17 + $0x38] sm:$0xff] }
0x1cb8   : > { %v3982_v31 = vpop.permute.xlu0 %3981 }
0x1cb9   : > { %5465 = vmatpush3.msra.mxu0 %v3982_v31 }
0x1cba   : > { %5474 = vmatprep.subr.mxu0 %v5933_v2 }
0x1cbc   : > { %v4136_v34 = vpop.permute.xlu0 %4135 }
0x1cbd   : > { %v4154_v35 = vsel %vm1847_vm11, %v4153_v33, %v4136_v34  ;;  %v5055_v33 = vld [vmem:[%s6916_s3 + $0x48] sm:$0xff]  ;;  %v5056_v34 = vld [vmem:[%s6916_s3 + $0x50] sm:$0xff] }
0x1cbe   : > { %v4155_v60 = vsel %vm1849_vm12, %v4154_v35, %v4139_v32  ;;  %v5054_v32 = vld [vmem:[%s6916_s3 + $0x40] sm:$0xff] }
0x1cbf   : > { %v5806_v36 = vpop.eup %5805  ;;  %v5638_v35 = vpack.c.bf16 %v5055_v33, %v5054_v32 }
0x1cc0   : > { %v3980_v38 = vmul.f32 %v5806_v36, %v5804_v27  ;;  %v4142_v39 = vpop.permute.xlu0 %4141  ;;  %v5057_v36 = vld [vmem:[%s6916_s3 + $0x58] sm:$0xff] }
0x1cc1   : > { %v4156_v42 = vsel %vm1851_vm13, %v4155_v60, %v4142_v39  ;;  %v5059_v39 = vld [vmem:[%s6916_s3 + $0x68] sm:$0xff] }
0x1cc2   : > { %5467 = vmatmul.mubr.msk.f32.vlgmr.msra.gmra.mrb[36].mxu0 %vm1066_vm0, %v3980_v38  ;;  %v4157_v44 = vsel %vm1853_vm14, %v4156_v42, %v4145_v37  ;;  %v5641_v37 = vpack.c.bf16 %v5057_v36, %v5056_v34  ;;  %v5058_v38 = vld [vmem:[%s6916_s3 + $0x60] sm:$0xff] }
0x1cc3   : > { %5475 = vmatpush3.xpose.msk.msra.mxu0 %vm1066_vm0, %v4161_v4  ;;  %5476 = vmatprep.mubr.msk.f32.mxu0 %vm5934_vm1, %v5933_v2  ;;  %v5048_v4 = vld [vmem:[%s6915_s17 + $0x28] sm:$0xff]  ;;  %v5644_v60 = vpack.c.bf16 %v5059_v39, %v5058_v38 }
0x1cc4   : > { %v4148_v43 = vpop.permute.xlu0 %4147  ;;  %5625 = vmatprep.subr.bf16.mxu0 %v5935_v5  ;;  %v5632_v29 = vpack.c.bf16 %v5048_v4, %v5047_v28  ;;  %v4756_v28 = vld [vmem:[%s6123_s20 + $0x18] sm:$0xff] }
0x1cc5   : > { %v4158_v46 = vsel %vm1855_vm15, %v4157_v44, %v4148_v43 }
0x1cc6   : > { %5477 = vmatmul.mubr.msk.f32.vlgmr.msra.gmra.mrb[38].mxu0 %vm1066_vm0, %v4058_v7  ;;  %v4159_v48 = vsel %vm1857_vm2, %v4158_v46, %v4151_v45  ;;  %v5045_v46 = vld [vmem:[%s6917_s24 + $0x1] ss:$0 sm:$0xff] }
0x1cc7   : > { %4163 = vrot.lane.b32.xlu0 %v4159_v48, %s6908_s8  ;;  %5492 = vmatprep.mubr.msk.f32.mxu0 %vm5934_vm1, %v5933_v2  ;;  %s6935_s8 = smov 24  }
0x1cc8   : > { %5627 = vmatpush3.bf16.msra.mxu0 %v5626_v9 }
0x1cc9   : > { %5628 = vmatprep.subr.bf16.mxu0 %v5935_v5 }
0x1d39   : > { %v4164_v52 = vpop.permute.xlu0 %4163 }
0x1d95   : > { %v4053_v40 = vpop.f32.mrb[36].mxu0 }
0x1d96   : > { %v5468_v51 = vpop.f32.mrb[37].mxu0 }
0x1d99   : > { %v4234_v53 = vpop.f32.mrb[38].mxu0 }
0x1d9a   : > { %v4235_v54 = vadd.f32 %v4234_v53, %v4164_v52  ;;  %v5478_v55 = vpop.f32.mrb[39].mxu0  ;;  %v5060_v53 = vld [vmem:[%s6916_s3 + $0x70] sm:$0xff] }
0x1d9c   : > { %v4238_v56 = vsel %vm1066_vm0, %v4235_v54, -inf }
0x1d9d   : > { %4239 = vmax.xlane.f32.xlu1 %v4238_v56  ;;  %v5052_v56 = vld [vmem:[%s6919_s29 + $0x1] ss:$0 sm:$0xff] }
0x1dae   : > { %4326 = vrot.lane.b32.xlu1 %v3785_v15, %s6932_s5  ;;  %s4963_s5 = sshll.u32 %s1045_s23, 3 }
0x1db2   : > { %4330 = vrot.lane.b32.xlu1 %v4053_v40, %s6933_s9  ;;  %v5046_v40 = vld [vmem:[%s6918_s25 + $0x1] ss:$0 sm:$0xff]  ;;  %s5072_s9 = sshll.u32 %s6161_s0, 7  ;;  %s5959_s0 = smov [#allocation5]  }
0x1e2a   : > { %v4240_v50 = vpop.xlane.xlu1 %4239 }
0x1e2b   : > { %v4241_v57 = vsub.f32 %v4235_v54, %v4240_v50  ;;  %v5061_v54 = vld [vmem:[%s6916_s3 + $0x78] sm:$0xff] }
0x1e2c   : > { %v5647_v55 = vpack.c.bf16 %v5061_v54, %v5060_v53 }
0x1e2d   : > { %v4242_v58 = vmul.f32 1.442695, %v4241_v57 }
0x1e2e   : > { %v4327_v13 = vpop.permute.xlu1 %4326 }
0x1e2f   : > { %5807 = vpow2.f32 %v4242_v58  ;;  %v4337_v7 = vsel %vm1066_vm0, %v6614_v41, %v4327_v13 }
0x1e32   : > { %v4331_v14 = vpop.permute.xlu1 %4330 }
0x1e33   : > { %v4338_v15 = vsel %vm2842_vm4, %v4337_v7, %v4331_v14  ;;  %v4667_v14 = vld [vmem:[%s6936_s14 + $0x10] sm:$0xff]  ;;  %v4668_v7 = vld [vmem:[%s6936_s14 + $0x18] sm:$0xff] }
0x1e39   : > { %v5808_v59 = vpop.eup %5807 }
0x1e3a   : > { %v4244_v61 = vsel %vm1066_vm0, %v5808_v59, 0.0 }
0x1e3b   : > { %4245 = vadd.xlane.f32.xlu0 %v4244_v61  ;;  %v5063_v61 = vld [vmem:[%s6920_s30 + $0x1] ss:$0 sm:$0xff] }
0x1e51   : > { %4249 = vrot.lane.b32.xlu0 %v6538_v47, %s6934_s13  ;;  %v5629_v47 = vpack.c.bf16 %v5039_v10, %v5038_v8  ;;  %s1047_s13 = scalar_lea.vmem [#allocation5], %s4963_s5 }
0x1e53   : > { %5630 = vmatpush3.bf16.msra.mxu0 %v5629_v47 }
0x1e54   : > { %5637 = vmatprep.subr.bf16.mxu0 %v5935_v5 }
0x1ec8   : > { %v4246_v62 = vpop.xlane.xlu0 %4245 }
0x1ec9   : > { %5809 = vrcp.f32 %v4246_v62 }
0x1ecc   : > { %v4250_v63 = vpop.permute.xlu0 %4249 }
0x1ecd   : > { %5480 = vmatpush3.msra.mxu1 %v4250_v63 }
0x1ece   : > { %5631 = vmatprep.subr.bf16.mxu1 %v5935_v5 }
0x1ed3   : > { %v5810_v0 = vpop.eup %5809 }
0x1ed4   : > { %v4248_v1 = vmul.f32 %v5810_v0, %v5808_v59 }
0x1ed6   : > { %5482 = vmatmul.mubr.msk.f32.vlgmr.msra.gmra.mrb[30].mxu1 %vm1066_vm0, %v4248_v1 }
0x1ed7   : > { %5503 = vmatprep.mubr.msk.f32.mxu1 %vm5934_vm1, %v5933_v2  ;;  %5633 = vmatpush3.bf16.msra.mxu1 %v5632_v29  ;;  %v5067_v29 = vld [vmem:[%s6939_s11] ss:$0 sm:$0xff] }
0x1ed8   : > { %5634 = vmatprep.subr.bf16.mxu1 %v5935_v5 }
0x1fa9   : > { %v4321_v11 = vpop.f32.mrb[30].mxu1 }
0x1faa   : > { %4334 = vrot.lane.b32.xlu0 %v4321_v11, %s6935_s8  ;;  %v5483_v12 = vpop.f32.mrb[31].mxu1  ;;  %v4665_v11 = vld [vmem:[%s6936_s14] sm:$0xff]  ;;  %s4852_s8 = sshll.u32 %s1047_s13, 4  ;;  %s6762_s8 = int_to_ptr.vmem [resolvable:$true] %s4852_s8 }
0x1fab   : > { %v4666_v12 = vld [vmem:[%s6936_s14 + $0x8] sm:$0xff]  ;;  %s5830_s11 = scalar_lea.vmem %s6762_s8, 128 }
0x1fac   : > { %v5650_v13 = vpack.c.bf16 %v4666_v12, %v4665_v11  ;;  %p5831_p6 = scmp.ne.s32.totalorder %s6762_s8, %s5830_s11 }
0x1fae   : > { %p5832_p8 = pnand %p5831_p6, %p6940_p7 }
0x1fb0   : > { %p5833_p9 = pneg %p5832_p8 }
0x201c   : > { %v4335_v16 = vpop.permute.xlu0 %4334 }
0x201d   : > { %v4339_v17 = vsel %vm2844_vm5, %v4338_v15, %v4335_v16  ;;  %v5653_v15 = vpack.c.bf16 %v4668_v7, %v4667_v14 }
0x201e   : > { %5493 = vmatmul.mubr.msk.f32.vlgmr.msra.gmra.mrb[40].mxu0 %vm1155_vm3, %v4339_v17 }
0x201f   : > { %5522 = vmatprep.mubr.msk.f32.mxu0 %vm5934_vm1, %v5933_v2  ;;  %5639 = vmatpush3.bf16.msra.mxu0 %v5638_v35 }
0x2020   : > { %5640 = vmatprep.subr.bf16.mxu0 %v5935_v5 }
0x2023   : > { %5642 = vmatpush3.bf16.msra.mxu0 %v5641_v37 }
0x2024   : > { %5643 = vmatprep.subr.bf16.mxu0 %v5935_v5 }
0x2027   : > { %5645 = vmatpush3.bf16.msra.mxu0 %v5644_v60 }
0x2028   : > { %5646 = vmatprep.subr.bf16.mxu0 %v5935_v5 }
0x202b   : > { %5648 = vmatpush3.bf16.msra.mxu0 %v5647_v55 }
0x20f1   : > { %v4422_v19 = vpop.f32.mrb[40].mxu0 }
0x20f2   : > { %v4423_v20 = vadd.f32 %v5041_v18, %v4422_v19  ;;  %v5494_v49 = vpop.f32.mrb[41].mxu0 }
0x20f4   : > { %v4426_v41 = vadd.f32 %v4423_v20, %v6518_v24  ;;  %v5049_v24 = vld [vmem:[%s6915_s17 + $0x30] sm:$0xff]  ;;  %v5065_v20 = vld [vmem:[%s6937_s6] ss:$0 sm:$0xff]  ;;  %s6760_s6 = scalar_lea.hbm %s6138_s19, %s5072_s9 }
0x20f5   : > { %v5635_v31 = vpack.c.bf16 %v5050_v30, %v5049_v24  ;;  %v4750_v30 = vstv %s4968_s1  ;;  %s5834_s1 = sshll.u32 %s5959_s0, 4  ;;  %s5835_s1 = int_to_ptr.vmem [resolvable:$false] %s5834_s1 }
0x20f6   : > { %v4431_v21 = vsel %vm1155_vm3, %v4426_v41, 0.0  ;;  %s5836_s5 = scalar_lea.vmem %s5835_s1, 256  ;;  %p5837_p10 = scmp.lt.s32.totalorder %s6762_s8, %s5835_s1 }
0x20f7   : > { %4432 = vadd.xlane.f32.xlu1 %v4431_v21  ;;  %5636 = vmatpush3.bf16.msra.mxu1 %v5635_v31  ;;  %v4754_v21 = vld [vmem:[%s6123_s20 + $0x8] sm:$0xff]  ;;  %p5838_p11 = scmp.lt.s32.totalorder %s5836_s5, %s5830_s11 }
0x20f8   : > { %5649 = vmatprep.subr.bf16.mxu1 %v5935_v5 }
0x20f9   : > { %p5839_p12 = por %p5838_p11, %p5837_p10 }
0x20fb   : > { %p5840_p13 = pnand %p5839_p12, %p5833_p9 }
0x2184   : > { %v4433_v22 = vpop.xlane.xlu1 %4432 }
0x2185   : > { %v4434_v23 = vmul.f32 0.03125, %v4433_v22  ;;  %v5066_v22 = vld [vmem:[%s6938_s12] ss:$0 sm:$0xff]  ;;  %s4839_s12 = scalar_lea.sflag [#allocation3], %s1045_s23 }
0x2187   : > { %v4435_v25 = vsub.f32 %v4426_v41, %v4434_v23 }
0x2189   : > { %v4436_v26 = vmul.f32 %v4435_v25, %v4435_v25 }
0x218b   : > { %v4437_v27 = vsel %vm1155_vm3, %v4436_v26, 0.0 }
0x218c   : > { %4438 = vadd.xlane.f32.xlu0 %v4437_v27  ;;  %v4755_v27 = vld [vmem:[%s6123_s20 + $0x10] sm:$0xff] }
0x218d   : > { %v5659_v4 = vpack.c.bf16 %v4756_v28, %v4755_v27 }
0x2219   : > { %v4439_v42 = vpop.xlane.xlu0 %4438 }
0x221a   : > { %v4440_v43 = vmul.f32 0.03125, %v4439_v42 }
0x221c   : > { %v4441_v44 = vadd.f32 1e-05, %v4440_v43 }
0x221e   : > { %5811 = vrsqrt.f32 %v4441_v44 }
0x2228   : > { %v5812_v45 = vpop.eup %5811 }
0x2229   : > { %v4443_v48 = vmul.f32 %v5812_v45, %v4435_v25 }
0x222b   : > { %v4450_v51 = vmul.f32 %v5045_v46, %v4443_v48 }
0x222d   : > { %v4457_v52 = vadd.f32 %v5046_v40, %v4450_v51 }
0x222f   : > { %5504 = vmatmul.mubr.msk.f32.vlgmr.msra.gmra.mrb[32].mxu1 %vm1155_vm3, %v4457_v52 }
0x2230   : > { %5533 = vmatprep.mubr.msk.f32.mxu1 %vm5934_vm1, %v5933_v2  ;;  %5651 = vmatpush3.bf16.msra.mxu1 %v5650_v13 }
0x2231   : > { %5652 = vmatprep.subr.bf16.mxu1 %v5935_v5 }
0x2234   : > { %5654 = vmatpush3.bf16.msra.mxu1 %v5653_v15 }
0x2235   : > { %5655 = vmatprep.subr.bf16.mxu1 %v5935_v5 }
0x2302   : > { %v4540_v50 = vpop.f32.mrb[32].mxu1 }
0x2303   : > { %v4541_v57 = vadd.f32 %v5052_v56, %v4540_v50  ;;  %v5505_v58 = vpop.f32.mrb[33].mxu1 }
0x2305   : > { %v4544_v59 = vmax.f32 %v4541_v57, 0.0 }
0x2307   : > { %5523 = vmatmul.mubr.msk.f32.vlgmr.msra.gmra.mrb[42].mxu0 %vm3060_vm6, %v4544_v59 }
0x23da   : > { %v4631_v62 = vpop.f32.mrb[42].mxu0 }
0x23db   : > { %v4632_v63 = vadd.f32 %v5063_v61, %v4631_v62  ;;  %v5524_v0 = vpop.f32.mrb[43].mxu0 }
0x23dd   : > { %v4635_v1 = vadd.f32 %v4632_v63, %v4426_v41  ;;  %v4753_v41 = vld [vmem:[%s6123_s20] sm:$0xff] }
0x23de   : > { %v5656_v25 = vpack.c.bf16 %v4754_v21, %v4753_v41 }
0x23df   : > { %v4638_v3 = vsel %vm1155_vm3, %v4635_v1, 0.0 }
0x23e0   : > { %4639 = vadd.xlane.f32.xlu0 %v4638_v3 }
0x246d   : > { %v4640_v6 = vpop.xlane.xlu0 %4639 }
0x246e   : > { %v4641_v8 = vmul.f32 0.03125, %v4640_v6 }
0x2470   : > { %v4642_v9 = vsub.f32 %v4635_v1, %v4641_v8 }
0x2472   : > { %v4643_v10 = vmul.f32 %v4642_v9, %v4642_v9 }
0x2474   : > { %v4644_v47 = vsel %vm1155_vm3, %v4643_v10, 0.0 }
0x2475   : > { %4645 = vadd.xlane.f32.xlu1 %v4644_v47 }
0x2502   : > { %v4646_v16 = vpop.xlane.xlu1 %4645 }
0x2503   : > { %v4647_v17 = vmul.f32 0.03125, %v4646_v16 }
0x2505   : > { %v4648_v18 = vadd.f32 1e-05, %v4647_v17 }
0x2507   : > { %5813 = vrsqrt.f32 %v4648_v18 }
0x2511   : > { %v5814_v19 = vpop.eup %5813 }
0x2512   : > { %v4650_v49 = vmul.f32 %v5814_v19, %v4642_v9 }
0x2514   : > { %v4657_v23 = vmul.f32 %v5065_v20, %v4650_v49 }
0x2516   : > { %v4664_v26 = vadd.f32 %v5066_v22, %v4657_v23 }
0x2518   : > { %5534 = vmatmul.mubr.msk.f32.vlgmr.msra.gmra.mrb[34].mxu1 %vm1155_vm3, %v4664_v26 }
0x2519   : > { %5657 = vmatpush3.bf16.msra.mxu1 %v5656_v25  ;;  %5544 = vmatprep.mubr.msk.f32.mxu1 %vm5934_vm1, %v5933_v2  ;;  %v5069_v2 = vld [vmem:[%s6128_s27] ss:$0 sm:$0xff] }
0x251a   : > { %5658 = vmatprep.subr.bf16.mxu1 %v5935_v5 }
0x251d   : > { %5660 = vmatpush3.bf16.msra.mxu1 %v5659_v4 }
0x25eb   : > { %v4745_v24 = vpop.f32.mrb[34].mxu1 }
0x25ec   : > { %v4746_v31 = vadd.f32 %v5067_v29, %v4745_v24  ;;  %v5535_v32 = vpop.f32.mrb[35].mxu1 }
0x25ee   : > { %vm4749_vm0 = vcmp.ge.f32.partialorder %v4746_v31, 0.0  ;;  %v4751_v33 = vmul.f32 %v4750_v30, %v4746_v31 }
0x25f0   : > { %v4752_v34 = vsel %vm4749_vm0, %v4746_v31, %v4751_v33 }
0x25f1   : > { %5545 = vmatmul.mubr.msk.f32.vlgmr.msra.gmra.mrb[36].mxu1 %vm1155_vm3, %v4752_v34 }
0x26c4   : > { %v4833_v5 = vpop.f32.mrb[36].mxu1 }
0x26c5   : > { %v4834_v35 = vadd.f32 %v5069_v2, %v4833_v5  ;;  %v5546_v36 = vpop.f32.mrb[37].mxu1 }
0x26c7   : > { %4837 = vst [vmem:[%s1047_s13] sm:$0xff] %v4834_v35 }
0x26c8   : > { %5843 = shalt.err (!%p5840_p13)
}
0x26c9   : > { %s5844_s23 = scalar_lea.hbm %s6760_s6, 128  ;;  %s5848_s9 = scalar_lea.hbm %s6138_s19, 256 }
0x26ca   : > { %p5845_p0 = scmp.ne.s32.totalorder %s6760_s6, %s5844_s23  ;;  %p5849_p3 = scmp.lt.u32.totalorder %s6760_s6, %s6138_s19 }
0x26cb   : > { %p5850_p4 = scmp.lt.u32.totalorder %s5848_s9, %s5844_s23  ;;  %p5852_p6 = scmp.lt.u32.totalorder %s5844_s23, %s6760_s6 }
0x26cc   : > { %p5846_p1 = pnand %p5845_p0, %p6940_p7 }
0x26cd   : > { %p5851_p5 = por %p5850_p4, %p5849_p3 }
0x26ce   : > { %p5847_p2 = pneg %p5846_p1 }
0x26cf   : > { %p5853_p8 = por %p5852_p6, %p5851_p5 }
0x26d1   : > { %p5854_p9 = pnand %p5853_p8, %p5847_p2 }
0x26d3   : > { %5857 = shalt.err (!%p5854_p9)
}
0x26d4   : > { %5665 = dma.vmem_to_hbm [thread:$0]  (%p6940_p7), %s6762_s8, 128, %s6760_s6, %s4839_s12  }
0x26d5 PF: > { %p5677_p10 = scmp.ge.s32.totalorder %s5896_s22, 2  ;;  %s4864_s13 = sand.u32 1, %s5884_s15  }
0x26d6   : > { %p6941_p11 = scmp.ne.s32.totalorder %s6890_s10, 0  ;;  %s4865_s11 = scalar_lea.sflag [#allocation3], %s4864_s13 }
0x26d8   : > { %p5672_p12 = pnand %p5677_p10, %p6941_p11 }
0x26da   : > { %5879 = dma.done.wait (!%p5672_p12), %s4865_s11, 128  }
0x26db   : > { %5881 = vsyncadd (!%p5672_p12), %s4865_s11, 4294967168  ;;  %p80_p13 = scmp.ge.s32.totalorder %s6165_s26, 4   ;;  %s6942_s15 = smov %s5888_s16 }
0x26dc   : > { %s6943_s16 = smov %s5892_s18  ;;  %s6944_s18 = smov %s6176_s2 }
0x26dd   : > { %s6945_s22 = smov %s6165_s26  ;;  %82 = sbr.rel (!%p80_p13) target bundleno = 81 (0x51), region = 242 }
0x26e4   :  { %4870 = vsyncpa [#allocation3], 1 }
0x26e5   :  { %4872 = vsyncpa [#allocation3 + $0x1], 1 }
0x26e6   :  { %4873 = vsyncpa [#allocation4], 1 }
0x26e7   :  { %4875 = vsyncpa [#allocation4 + $0x1], 1 }

</bundles_post_ra>
